<compile_context>
chip_gen: v7x
topology: tpu7x:2x2x1
jax: 0.10.0
libtpu: 0.0.40
codegen_flags: <defaults>
</compile_context>

<pallas_src>
import functools

import jax
import jax.numpy as jnp
from jax import lax
from jax.experimental import pallas as pl
from jax.experimental.pallas import tpu as pltpu


def _round_up(x, m):
    return (x + m - 1) // m * m


def _apply_act(r, act):
    if act == "lrelu":
        return jnp.where(r >= 0, r, 0.1 * r)
    if act == "relu":
        return jnp.maximum(r, 0.0)
    if act == "sigmoid":
        return jax.nn.sigmoid(r)
    return r


# ----------------------------------------------------------------------------
# Pallas kernel 1: tiled matmul + bias + optional residual + fused activation
# ----------------------------------------------------------------------------
def _mm_kernel(x_ref, w_ref, b_ref, *refs, act, has_res):
    if has_res:
        r_ref, o_ref = refs
    else:
        (o_ref,) = refs
    acc = jnp.dot(x_ref[...], w_ref[...], preferred_element_type=jnp.float32)
    r = acc + b_ref[...]
    if has_res:
        r = r + r_ref[...].astype(jnp.float32)
    r = _apply_act(r, act)
    o_ref[...] = r.astype(o_ref.dtype)


@functools.partial(jax.jit, static_argnames=("act",))
def matmul_bias_act(x, w, b, residual=None, *, act="linear"):
    """(M,K) @ (K,N) + b (+ residual), fused activation.  bf16 in, f32 acc."""
    M, K = x.shape
    _, N = w.shape
    xb = x.astype(jnp.bfloat16)
    wb = w.astype(jnp.bfloat16)
    bb = b.astype(jnp.float32).reshape(1, N)

    if M <= 32:
        TM = _round_up(M, 8)                       # single tiny block
    else:
        TM = min(256, max(16, _round_up(pl.cdiv(M, 2), 16)))   # >= 2 grid steps
    Mp = _round_up(M, TM)
    if Mp != M:
        xb = jnp.pad(xb, ((0, Mp - M), (0, 0)))

    has_res = residual is not None
    args = [xb, wb, bb]
    in_specs = [
        pl.BlockSpec((TM, K), lambda i: (i, 0)),
        pl.BlockSpec((K, N), lambda i: (0, 0)),
        pl.BlockSpec((1, N), lambda i: (0, 0)),
    ]
    if has_res:
        rb = residual.astype(jnp.bfloat16)
        if Mp != M:
            rb = jnp.pad(rb, ((0, Mp - M), (0, 0)))
        args.append(rb)
        in_specs.append(pl.BlockSpec((TM, N), lambda i: (i, 0)))

    out = pl.pallas_call(
        functools.partial(_mm_kernel, act=act, has_res=has_res),
        out_shape=jax.ShapeDtypeStruct((Mp, N), jnp.bfloat16),
        grid=(Mp // TM,),
        in_specs=in_specs,
        out_specs=pl.BlockSpec((TM, N), lambda i: (i, 0)),
        compiler_params=pltpu.CompilerParams(
            dimension_semantics=("parallel",),
            vmem_limit_bytes=32 * 1024 * 1024),
    )(*args)
    if Mp != M:
        out = out[:M]
    return out


# ----------------------------------------------------------------------------
# Pallas kernel 2: halo direct conv (3x3 / 1x1, stride 1, 'same' padding)
# One padded image per grid step; 9 shifted tap matmuls accumulated in f32.
# ----------------------------------------------------------------------------
def _conv2d_halo_kernel(x_ref, w_ref, b_ref, *refs,
                        H, W, Cin, Cout, KH, KW, act, has_res):
    if has_res:
        r_ref, o_ref = refs
    else:
        (o_ref,) = refs
    acc = None
    tap = 0
    for ky in range(KH):
        # slice on an outer dim (free); f32 so the kx sublane shift is 32-bit
        xrow = x_ref[0, ky:ky + H].astype(jnp.float32)      # (H, Wp, Cin)
        for kx in range(KW):
            xs = xrow[:, kx:kx + W, :].reshape(H * W, Cin).astype(jnp.bfloat16)
            d = jnp.dot(xs, w_ref[tap], preferred_element_type=jnp.float32)
            acc = d if acc is None else acc + d
            tap += 1
    r = acc + b_ref[...]
    if has_res:
        r = r + r_ref[...].astype(jnp.float32).reshape(H * W, Cout)
    r = _apply_act(r, act)
    o_ref[...] = r.reshape(1, H, W, Cout).astype(o_ref.dtype)


@functools.partial(jax.jit, static_argnames=("act",))
def _conv2d_halo(x, w, b, residual=None, *, act="linear"):
    B, H, W, Cin = x.shape
    KH, KW, _, Cout = w.shape
    pad = KH // 2
    Hp, Wp = H + 2 * pad, W + 2 * pad
    xp = jnp.pad(x.astype(jnp.bfloat16), ((0, 0), (pad, pad), (pad, pad), (0, 0)))
    wf = w.reshape(KH * KW, Cin, Cout).astype(jnp.bfloat16)
    bb = b.astype(jnp.float32).reshape(1, Cout)

    has_res = residual is not None
    args = [xp, wf, bb]
    in_specs = [
        pl.BlockSpec((1, Hp, Wp, Cin), lambda i: (i, 0, 0, 0)),
        pl.BlockSpec((KH * KW, Cin, Cout), lambda i: (0, 0, 0)),
        pl.BlockSpec((1, Cout), lambda i: (0, 0)),
    ]
    if has_res:
        args.append(residual.astype(jnp.bfloat16))
        in_specs.append(pl.BlockSpec((1, H, W, Cout), lambda i: (i, 0, 0, 0)))

    return pl.pallas_call(
        functools.partial(_conv2d_halo_kernel, H=H, W=W, Cin=Cin, Cout=Cout,
                          KH=KH, KW=KW, act=act, has_res=has_res),
        out_shape=jax.ShapeDtypeStruct((B, H, W, Cout), jnp.bfloat16),
        grid=(B,),
        in_specs=in_specs,
        out_specs=pl.BlockSpec((1, H, W, Cout), lambda i: (i, 0, 0, 0)),
        compiler_params=pltpu.CompilerParams(
            dimension_semantics=("parallel",),
            vmem_limit_bytes=32 * 1024 * 1024),
    )(*args)


# im2col + matmul fallback (stride-2 convs and tiny W%8!=0 maps only)
@functools.partial(jax.jit, static_argnames=("stride", "act"))
def _conv2d_im2col(x, w, b, residual=None, *, stride=1, act="linear"):
    B, H, W, Cin = x.shape
    KH, KW, _, Cout = w.shape
    pad = KH // 2
    Ho = (H + 2 * pad - KH) // stride + 1
    Wo = (W + 2 * pad - KW) // stride + 1
    xb = x.astype(jnp.bfloat16)
    xp = jnp.pad(xb, ((0, 0), (pad, pad), (pad, pad), (0, 0)))
    cols = []
    for ky in range(KH):
        for kx in range(KW):
            cols.append(xp[:, ky:ky + (Ho - 1) * stride + 1:stride,
                           kx:kx + (Wo - 1) * stride + 1:stride, :])
    patches = jnp.concatenate(cols, axis=-1)
    res = None if residual is None else residual.reshape(B * Ho * Wo, Cout)
    out = matmul_bias_act(patches.reshape(B * Ho * Wo, KH * KW * Cin),
                          w.reshape(KH * KW * Cin, Cout), b, res, act=act)
    return out.reshape(B, Ho, Wo, Cout)


def conv2d(x, w, b, residual=None, *, stride=1, act="linear"):
    W = x.shape[2]
    if stride == 1 and W % 8 == 0:
        return _conv2d_halo(x, w, b, residual, act=act)
    return _conv2d_im2col(x, w, b, residual, stride=stride, act=act)


# ----------------------------------------------------------------------------
# Pallas kernel 3: halo 3x3x3 conv3d (stride 1, pad 1, no bias)
# ----------------------------------------------------------------------------
def _conv3d_halo_kernel(x_ref, w_ref, o_ref, *, T, H, W, Cin, Cout):
    acc = None
    tap = 0
    for kt in range(3):
        for ky in range(3):
            xv = x_ref[0, kt:kt + T, ky:ky + H].astype(jnp.float32)  # (T,H,Wp,C)
            for kx in range(3):
                xs = xv[:, :, kx:kx + W, :].reshape(T * H * W, Cin)
                xs = xs.astype(jnp.bfloat16)
                d = jnp.dot(xs, w_ref[tap], preferred_element_type=jnp.float32)
                acc = d if acc is None else acc + d
                tap += 1
    o_ref[...] = acc.reshape(1, T, H, W, Cout).astype(o_ref.dtype)


@jax.jit
def _conv3d_halo(x, w):
    B, T, H, W, C = x.shape
    Cout = w.shape[-1]
    xp = jnp.pad(x.astype(jnp.bfloat16),
                 ((0, 0), (1, 1), (1, 1), (1, 1), (0, 0)))
    wf = w.reshape(27, C, Cout).astype(jnp.bfloat16)
    return pl.pallas_call(
        functools.partial(_conv3d_halo_kernel, T=T, H=H, W=W, Cin=C, Cout=Cout),
        out_shape=jax.ShapeDtypeStruct((B, T, H, W, Cout), jnp.bfloat16),
        grid=(B,),
        in_specs=[pl.BlockSpec((1, T + 2, H + 2, W + 2, C),
                               lambda i: (i, 0, 0, 0, 0)),
                  pl.BlockSpec((27, C, Cout), lambda i: (0, 0, 0))],
        out_specs=pl.BlockSpec((1, T, H, W, Cout), lambda i: (i, 0, 0, 0, 0)),
        compiler_params=pltpu.CompilerParams(
            dimension_semantics=("parallel",),
            vmem_limit_bytes=32 * 1024 * 1024),
    )(xp, wf)


@jax.jit
def _conv3d_im2col(x, w):
    B, T, H, W, C = x.shape
    Cout = w.shape[-1]
    xp = jnp.pad(x.astype(jnp.bfloat16), ((0, 0), (1, 1), (1, 1), (1, 1), (0, 0)))
    cols = []
    for kt in range(3):
        for ky in range(3):
            for kx in range(3):
                cols.append(xp[:, kt:kt + T, ky:ky + H, kx:kx + W, :])
    patches = jnp.concatenate(cols, axis=-1)
    out = matmul_bias_act(patches.reshape(-1, 27 * C), w.reshape(27 * C, Cout),
                          jnp.zeros((Cout,), jnp.float32), act="linear")
    return out.reshape(B, T, H, W, Cout)


def conv3d_3x3x3(x, w):
    if x.shape[3] % 8 == 0:
        return _conv3d_halo(x, w)
    return _conv3d_im2col(x, w)


# ----------------------------------------------------------------------------
# Pallas kernel 4: batched lane-dense window multi-head attention
# q: (NW, L, Dh)  k, v, o: (NW, Dh, L)   L = 128 on the lane axis
# ----------------------------------------------------------------------------
def _attn_kernel(q_ref, k_ref, v_ref, o_ref, *, scale):
    q = q_ref[...]                                   # (WB, L, Dh) bf16
    k = k_ref[...]                                   # (WB, Dh, L) bf16
    # scores: canonical batched MXU matmul, f32 accumulate
    s = lax.dot_general(q, k, (((2,), (1,)), ((0,), (0,))),
                        preferred_element_type=jnp.float32)   # (WB, L, L)
    s = s * scale
    s = s - jnp.max(s, axis=-1, keepdims=True)
    p = jnp.exp(s)
    denom = jnp.sum(p, axis=-1, keepdims=True)
    p = (p * pl.reciprocal(denom, approx=True)).astype(v_ref.dtype)   # bf16
    # PV: bf16 MXU matmul, contraction over L, lane-dense output (WB, Dh, L)
    o = lax.dot_general(v_ref[...], p, (((2,), (2,)), ((0,), (0,))),
                        preferred_element_type=jnp.float32)
    o_ref[...] = o.astype(o_ref.dtype)


@jax.jit
def window_attention(q, k, v):
    NW, L, Dh = q.shape
    scale = 1.0 / (Dh ** 0.5)
    WB = 2 if NW % 2 == 0 else 1                     # small WB: no spill, grid>=2
    return pl.pallas_call(
        functools.partial(_attn_kernel, scale=scale),
        out_shape=jax.ShapeDtypeStruct((NW, Dh, L), v.dtype),
        grid=(NW // WB,),
        in_specs=[pl.BlockSpec((WB, L, Dh), lambda i: (i, 0, 0)),
                  pl.BlockSpec((WB, Dh, L), lambda i: (i, 0, 0)),
                  pl.BlockSpec((WB, Dh, L), lambda i: (i, 0, 0))],
        out_specs=pl.BlockSpec((WB, Dh, L), lambda i: (i, 0, 0)),
        compiler_params=pltpu.CompilerParams(
            dimension_semantics=("parallel",),
            vmem_limit_bytes=32 * 1024 * 1024),
    )(q, k, v)


# ----------------------------------------------------------------------------
# JAX glue: bilinear resize, pixel shuffle, deformable conv
# ----------------------------------------------------------------------------
def lrelu(x):
    return jnp.where(x >= 0, x, 0.1 * x)


@functools.partial(jax.jit, static_argnums=(1, 2))
def resize_bilinear(x, oh, ow):
    B, H, W, C = x.shape
    sy, sx = H / oh, W / ow
    ys = jnp.maximum((jnp.arange(oh) + 0.5) * sy - 0.5, 0.0)
    xs = jnp.maximum((jnp.arange(ow) + 0.5) * sx - 0.5, 0.0)
    y0 = jnp.floor(ys).astype(jnp.int32)
    x0 = jnp.floor(xs).astype(jnp.int32)
    y1 = jnp.minimum(y0 + 1, H - 1)
    x1 = jnp.minimum(x0 + 1, W - 1)
    wy = (ys - y0)[None, :, None, None]
    wx = (xs - x0)[None, None, :, None]
    a = x[:, y0][:, :, x0]
    bq = x[:, y0][:, :, x1]
    c = x[:, y1][:, :, x0]
    d = x[:, y1][:, :, x1]
    out = (a * (1 - wy) * (1 - wx) + bq * (1 - wy) * wx
           + c * wy * (1 - wx) + d * wy * wx)
    return out.astype(x.dtype)


def resize2(x):
    B, H, W, C = x.shape
    return resize_bilinear(x, 2 * H, 2 * W)


def pixel_shuffle2(x):
    B, H, W, C = x.shape
    r = 2
    Cc = C // (r * r)
    x = x.reshape(B, H, W, Cc, r, r)
    x = jnp.transpose(x, (0, 1, 4, 2, 5, 3))
    return x.reshape(B, H * r, W * r, Cc)


@functools.partial(jax.jit, static_argnames=("G", "act"))
def dcn_v2_conv(x, off_y, off_x, mask, w, b, *, G, act="linear"):
    """Modulated deformable conv v2 (3x3, stride 1, pad 1).  Gather is XLA
    glue (data-dependent); bilinear blend in bf16; weighted sum + fused
    activation in the Pallas matmul."""
    B, H, W, C = x.shape
    KH = KW = 3
    K = KH * KW
    Cg = C // G
    Cout = w.shape[-1]
    oy = off_y.astype(jnp.float32).reshape(B, H, W, G, K)
    ox = off_x.astype(jnp.float32).reshape(B, H, W, G, K)
    m = mask.astype(jnp.bfloat16).reshape(B, H, W, G, K)
    kk = jnp.arange(K)
    ty = (kk // KW - 1).astype(jnp.float32)
    tx = (kk % KW - 1).astype(jnp.float32)
    grid_y = jnp.arange(H, dtype=jnp.float32)[None, :, None, None, None]
    grid_x = jnp.arange(W, dtype=jnp.float32)[None, None, :, None, None]
    py = grid_y + ty[None, None, None, None, :] + oy
    px = grid_x + tx[None, None, None, None, :] + ox
    xg = x.astype(jnp.bfloat16).reshape(B, H, W, G, Cg)

    def sample_b(img, pyb, pxb):
        y0f = jnp.floor(pyb)
        x0f = jnp.floor(pxb)
        wy = (pyb - y0f)[..., None].astype(jnp.bfloat16)
        wx = (pxb - x0f)[..., None].astype(jnp.bfloat16)
        y0 = y0f.astype(jnp.int32)
        x0 = x0f.astype(jnp.int32)
        g_idx = jnp.broadcast_to(jnp.arange(G)[None, None, :, None], pyb.shape)

        def gather(yy, xx):
            valid = (yy >= 0) & (yy < H) & (xx >= 0) & (xx < W)
            yc = jnp.clip(yy, 0, H - 1)
            xc = jnp.clip(xx, 0, W - 1)
            vals = img[yc, xc, g_idx]                   # (H,W,G,K,Cg) bf16
            return vals * valid[..., None].astype(vals.dtype)

        v00 = gather(y0, x0)
        v01 = gather(y0, x0 + 1)
        v10 = gather(y0 + 1, x0)
        v11 = gather(y0 + 1, x0 + 1)
        one = jnp.ones((), jnp.bfloat16)
        return (v00 * (one - wy) * (one - wx) + v01 * (one - wy) * wx
                + v10 * wy * (one - wx) + v11 * wy * wx)

    samp = jax.vmap(sample_b)(xg, py, px)               # (B,H,W,G,K,Cg) bf16
    samp = samp * m[..., None]
    cols = jnp.transpose(samp, (0, 1, 2, 4, 3, 5)).reshape(B * H * W, K * C)
    out = matmul_bias_act(cols, w.reshape(K * C, Cout), b, act=act)
    return out.reshape(B, H, W, Cout)


def dcn_sep(p, inp, fea, act="linear"):
    G = p["G"]
    K = 9
    om = conv2d(fea, p["ow"], p["ob"], act="linear")
    o1 = om[..., :G * K]
    o2 = om[..., G * K:2 * G * K]
    m = jax.nn.sigmoid(om[..., 2 * G * K:].astype(jnp.float32))
    return dcn_v2_conv(inp, o1, o2, m, p["w"], p["b"], G=G, act=act)


# ----------------------------------------------------------------------------
# Parameter initialization (deterministic, in-script; weights stored bf16)
# ----------------------------------------------------------------------------
class PInit:
    def __init__(self, key):
        self.key = key

    def _next(self):
        self.key, sub = jax.random.split(self.key)
        return sub

    def conv(self, kh, kw, cin, cout, zero=False):
        if zero:
            return (jnp.zeros((kh, kw, cin, cout), jnp.bfloat16),
                    jnp.zeros((cout,), jnp.float32))
        std = 0.2 / (kh * kw * cin) ** 0.5
        w = (std * jax.random.normal(self._next(), (kh, kw, cin, cout),
                                     jnp.float32)).astype(jnp.bfloat16)
        b = jnp.zeros((cout,), jnp.float32)
        return w, b

    def linear(self, cin, cout):
        std = 0.2 / cin ** 0.5
        w = (std * jax.random.normal(self._next(), (cin, cout),
                                     jnp.float32)).astype(jnp.bfloat16)
        b = jnp.zeros((cout,), jnp.float32)
        return w, b

    def resblock(self, nf):
        w1, b1 = self.conv(3, 3, nf, nf)
        w2, b2 = self.conv(3, 3, nf, nf)
        return {"w1": w1, "b1": b1, "w2": w2, "b2": b2}

    def conv3d_w(self, nf):
        std = 0.2 / (27 * nf) ** 0.5
        return (std * jax.random.normal(self._next(), (3, 3, 3, nf, nf),
                                        jnp.float32)).astype(jnp.bfloat16)

    def dcn(self, nf, G):
        ow, ob = self.conv(3, 3, nf, 3 * G * 9, zero=True)  # init_offset(): zeros
        w, b = self.conv(3, 3, nf, nf)
        return {"ow": ow, "ob": ob, "w": w, "b": b, "G": G}


def init_feature_encoder(pi, inc, nf, n_rb):
    return {
        "pre1": pi.conv(3, 3, inc, nf), "pre2": pi.conv(3, 3, nf, nf),
        "first1": pi.conv(3, 3, nf, nf), "first2": pi.conv(3, 3, nf, nf),
        "first_rbs": [pi.resblock(nf) for _ in range(2)],
        "ds1_conv": pi.conv(3, 3, nf, nf),
        "ds1_rbs": [pi.resblock(nf) for _ in range(2)],
        "ds2_conv": pi.conv(3, 3, nf, nf),
        "ds2_rbs": [pi.resblock(nf) for _ in range(n_rb)],
    }


def init_pcd(pi, nf, G):
    p = {}
    p["L3_oc1"] = pi.conv(3, 3, 2 * nf, nf)
    p["L3_oc2"] = pi.conv(3, 3, nf, nf)
    p["L3_dcn"] = pi.dcn(nf, G)
    p["L2_oc1_l3"] = pi.conv(3, 3, 2 * nf, nf)
    p["L2_oc2_l3"] = pi.conv(3, 3, 2 * nf, nf)
    p["L2_oc3_l3"] = pi.conv(3, 3, nf, nf)
    p["L2_dcn_l3"] = pi.dcn(nf, G)
    p["L2_oc1"] = pi.conv(3, 3, 3 * nf, nf)
    p["L2_oc2"] = pi.conv(3, 3, 3 * nf, nf)
    p["L2_oc3"] = pi.conv(3, 3, nf, nf)
    p["L2_dcn"] = pi.dcn(nf, G)  # created in __init__, unused in forward (as in torch)
    p["L1_oc1_l3"] = pi.conv(3, 3, 2 * nf, nf)
    p["L1_oc2_l3"] = pi.conv(3, 3, 2 * nf, nf)
    p["L1_oc3_l3"] = pi.conv(3, 3, nf, nf)
    p["L1_dcn_l3"] = pi.dcn(nf, G)
    p["L1_oc1_l2"] = pi.conv(3, 3, 3 * nf, nf)
    p["L1_oc2_l2"] = pi.conv(3, 3, 3 * nf, nf)
    p["L1_oc3_l2"] = pi.conv(3, 3, nf, nf)
    p["L1_dcn_l2"] = pi.dcn(nf, G)
    p["L1_oc1"] = pi.conv(3, 3, 4 * nf, nf)
    p["L1_oc2"] = pi.conv(3, 3, 4 * nf, nf)
    p["L1_oc3"] = pi.conv(3, 3, nf, nf)
    p["L1_dcn"] = pi.dcn(nf, G)
    p["cas_oc1"] = pi.conv(3, 3, 4 * nf, nf)
    p["cas_oc2"] = pi.conv(3, 3, nf, nf)
    p["cas_dcn"] = pi.dcn(nf, G)
    p["fuse"] = pi.conv(3, 3, 3 * nf, nf)
    return p


def init_hr_align(pi, nf, G):
    return {
        "oc1": pi.conv(3, 3, 2 * nf, nf),
        "oc2": pi.conv(3, 3, nf, nf),
        "joint": pi.conv(3, 3, 2 * nf, nf),
        "rbs": [pi.resblock(nf) for _ in range(5)],
        "dcn": pi.dcn(nf, G),
        "scaling": pi.conv(3, 3, 2 * nf, nf),
    }


def init_sepsts(pi, nf, depth, heads):
    blocks = []
    for _ in range(depth):
        blocks.append({
            "qkv": pi.linear(nf, 3 * nf),
            "proj": pi.linear(nf, nf),
            "fc1": pi.linear(nf, 2 * nf),
            "fc2": pi.linear(2 * nf, nf),
        })
    return {"blocks": blocks, "heads": heads}


def init_ivm(key, nf=32, back_rb=2, depth=2, groups=8, heads=8):
    pi = PInit(key)
    p = {"nf": nf, "heads": heads}
    p["fea_extract"] = init_feature_encoder(pi, 3, nf, 5)
    p["denoise_extract"] = init_feature_encoder(pi, 3 + 2, nf, 8)
    p["py_align"] = init_pcd(pi, nf, groups)
    p["hd_align"] = init_hr_align(pi, nf, groups)
    p["fuse1"] = pi.conv(3, 3, 2 * nf + 2, nf)   # nf1 == nf (residual add fuse_fea + fuse_fea1)
    p["recon"] = [pi.resblock(nf) for _ in range(back_rb)]
    p["up_conv1"] = pi.conv(3, 3, nf, 64 * 4)
    p["hr_conv"] = pi.conv(3, 3, 64, 64)
    p["out_conv"] = pi.conv(1, 1, 64, 3)
    p["fuseAtt"] = pi.conv(3, 3, 2 * nf + 2, nf)
    p["l0_fuse"] = pi.conv3d_w(nf)
    p["l0_attention"] = init_sepsts(pi, nf, depth, heads)
    return p


# ----------------------------------------------------------------------------
# Sub-module forwards
# ----------------------------------------------------------------------------
def resblock(p, x, act_after="linear"):
    out = conv2d(x, p["w1"], p["b1"], act="relu")
    # residual add (+ optional trailing lrelu) fused into the conv kernel
    return conv2d(out, p["w2"], p["b2"], x, act=act_after)


def feature_encoder(p, x):
    x = conv2d(x, *p["pre1"], act="lrelu")
    x = conv2d(x, *p["pre2"], stride=2, act="lrelu")
    f = conv2d(x, *p["first1"], act="lrelu")
    f = conv2d(f, *p["first2"], act="lrelu")
    f = resblock(p["first_rbs"][0], f)
    fea_d0 = resblock(p["first_rbs"][1], f, act_after="lrelu")  # fused lrelu
    d = conv2d(fea_d0, *p["ds1_conv"], stride=2, act="lrelu")
    for rb in p["ds1_rbs"]:
        d = resblock(rb, d)
    fea_d1 = d
    d = conv2d(fea_d1, *p["ds2_conv"], stride=2, act="lrelu")
    for rb in p["ds2_rbs"]:
        d = resblock(rb, d)
    fea_d2 = d
    return fea_d0, fea_d1, fea_d2


def pcd_align(p, nbr, ref):
    L3_offset = jnp.concatenate([nbr[2], ref[2]], -1)
    L3_offset = conv2d(L3_offset, *p["L3_oc1"], act="lrelu")
    L3_offset = conv2d(L3_offset, *p["L3_oc2"], act="lrelu")
    L3_fea = dcn_sep(p["L3_dcn"], nbr[2], L3_offset, act="lrelu")
    L3_offset = resize2(L3_offset)
    nbr_l3_up = resize2(L3_fea)

    L2_offset_l3 = jnp.concatenate([nbr_l3_up, ref[1]], -1)
    L2_offset_l3 = conv2d(L2_offset_l3, *p["L2_oc1_l3"], act="lrelu")
    L2_offset_l3 = conv2d(jnp.concatenate([L2_offset_l3, L3_offset * 2], -1),
                          *p["L2_oc2_l3"], act="lrelu")
    L2_offset_l3 = conv2d(L2_offset_l3, *p["L2_oc3_l3"], act="lrelu")
    L2_fea_l3 = dcn_sep(p["L2_dcn_l3"], nbr_l3_up, L2_offset_l3)

    L2_offset = jnp.concatenate([nbr[1], L2_fea_l3, ref[1]], -1)
    L2_offset = conv2d(L2_offset, *p["L2_oc1"], act="lrelu")
    L2_offset = conv2d(jnp.concatenate([L2_offset, L2_offset_l3, L3_offset * 2], -1),
                       *p["L2_oc2"], act="lrelu")
    L2_offset = conv2d(L2_offset, *p["L2_oc3"], act="lrelu")
    L2_fea = dcn_sep(p["L2_dcn_l3"], nbr[1], L2_offset)  # torch reuses L2_dcnpack_l3
    L2_offset = resize2(L2_offset)

    L1_fea_l3_up = resize2(L2_fea_l3)
    L1_offset_l3 = jnp.concatenate([L1_fea_l3_up, ref[0]], -1)
    L1_offset_l3 = conv2d(L1_offset_l3, *p["L1_oc1_l3"], act="lrelu")
    L1_offset_l3 = conv2d(jnp.concatenate([L1_offset_l3, L2_offset * 2], -1),
                          *p["L1_oc2_l3"], act="lrelu")
    L1_offset_l3 = conv2d(L1_offset_l3, *p["L1_oc3_l3"], act="lrelu")
    L1_fea_l3 = dcn_sep(p["L1_dcn_l3"], L1_fea_l3_up, L1_offset_l3)

    L1_fea_l2_up = resize2(L2_fea)
    L1_offset_l2 = jnp.concatenate([L1_fea_l2_up, L1_fea_l3, ref[0]], -1)
    L1_offset_l2 = conv2d(L1_offset_l2, *p["L1_oc1_l2"], act="lrelu")
    L1_offset_l2 = conv2d(jnp.concatenate([L1_offset_l2, L1_offset_l3, L2_offset * 2], -1),
                          *p["L1_oc2_l2"], act="lrelu")
    L1_offset_l2 = conv2d(L1_offset_l2, *p["L1_oc3_l2"], act="lrelu")
    L1_fea_l2 = dcn_sep(p["L1_dcn_l2"], L1_fea_l2_up, L1_offset_l2)

    L1_offset = jnp.concatenate([nbr[0], L1_fea_l3, L1_fea_l2, ref[0]], -1)
    L1_offset = conv2d(L1_offset, *p["L1_oc1"], act="lrelu")
    L1_offset = conv2d(jnp.concatenate([L1_offset, L1_offset_l2, L1_offset_l3,
                                        L2_offset * 2], -1),
                       *p["L1_oc2"], act="lrelu")
    L1_offset = conv2d(L1_offset, *p["L1_oc3"], act="lrelu")
    L1_fea = dcn_sep(p["L1_dcn"], nbr[0], L1_offset)

    offset = jnp.concatenate([L1_fea, L1_fea_l3, L1_fea_l2, ref[0]], -1)
    offset = conv2d(offset, *p["cas_oc1"], act="lrelu")
    offset = conv2d(offset, *p["cas_oc2"], act="lrelu")
    fea_fuse = conv2d(jnp.concatenate([L1_fea, L1_fea_l3, L1_fea_l2], -1),
                      *p["fuse"], act="linear")
    fea = dcn_sep(p["cas_dcn"], fea_fuse, offset, act="lrelu")
    return fea, offset


def hr_align(p, nbr_fea, ref_fea, pre_offset_fea=None):
    _off = jnp.concatenate([nbr_fea, ref_fea], -1)
    _off = conv2d(_off, *p["oc1"], act="lrelu")
    _off = conv2d(_off, *p["oc2"], act="lrelu")
    if pre_offset_fea is None:
        off_fea = jnp.concatenate([_off, _off], -1)
    else:
        init_cat = jnp.concatenate([_off, pre_offset_fea], -1)
        scale = conv2d(init_cat, *p["scaling"], act="sigmoid")
        pre_offset_fea = pre_offset_fea * scale
        off_fea = jnp.concatenate([_off, pre_offset_fea], -1)
    offset = conv2d(off_fea, *p["joint"], act="linear")
    for rb in p["rbs"]:
        offset = resblock(rb, offset)
    align_fea = dcn_sep(p["dcn"], nbr_fea, offset, act="lrelu")
    return align_fea, offset


def sepsts_forward(p, x):
    """Stand-in SepSTSLayer: stack of (2,8,8)-window MSA + MLP blocks."""
    B, T, H, W, C = x.shape
    wt, wh, ww = 2, 8, 8
    heads = p["heads"]
    Dh = C // heads
    L = wt * wh * ww
    nT, nH, nW = T // wt, H // wh, W // ww
    nwin = B * nT * nH * nW * heads
    M = B * T * H * W
    for blk in p["blocks"]:
        tokens = x.reshape(M, C)
        qkv = matmul_bias_act(tokens, blk["qkv"][0], blk["qkv"][1], act="linear")
        qkv = qkv.reshape(B, nT, wt, nH, wh, nW, ww, 3, heads, Dh)
        base = jnp.transpose(qkv, (7, 0, 1, 3, 5, 8, 9, 2, 4, 6))
        base = base.reshape(3, nwin, Dh, L)
        q = jnp.swapaxes(base[0], 1, 2)                  # (nwin, L, Dh)
        o = window_attention(q, base[1], base[2])        # (nwin, Dh, L) Pallas
        o = o.reshape(B, nT, nH, nW, heads, Dh, wt, wh, ww)
        o = jnp.transpose(o, (0, 1, 6, 2, 7, 3, 8, 4, 5)).reshape(M, C)
        # residual adds fused into the Pallas matmuls
        xt = matmul_bias_act(o, blk["proj"][0], blk["proj"][1],
                             tokens, act="linear")
        m = matmul_bias_act(xt, blk["fc1"][0], blk["fc1"][1], act="lrelu")
        xt = matmul_bias_act(m, blk["fc2"][0], blk["fc2"][1], xt, act="linear")
        x = xt.reshape(B, T, H, W, C)
    return x


# ----------------------------------------------------------------------------
# IVM forward
# ----------------------------------------------------------------------------
def ivm_forward(p, x, noise_prior, k=3):
    """x: (B, n_frames>=3, 3, H, W) NCHW frames; noise_prior: (B, 2) -> (B,3,H,W)."""
    b, n, c, h, w = x.shape
    to_nhwc = lambda t: jnp.transpose(t, (0, 2, 3, 1))
    x0, x1, x2 = to_nhwc(x[:, 0]), to_nhwc(x[:, 1]), to_nhwc(x[:, 2])
    npr = noise_prior.reshape(b, 2).astype(jnp.bfloat16)
    np_full = jnp.broadcast_to(npr[:, None, None, :], (b, h, w, 2))
    np_half = jnp.broadcast_to(npr[:, None, None, :], (b, h // 2, w // 2, 2))

    fea_l = feature_encoder(p["fea_extract"], x0)
    fea_r = feature_encoder(p["fea_extract"], x2)
    fea_m = feature_encoder(p["denoise_extract"],
                            jnp.concatenate([x1.astype(jnp.bfloat16), np_full], -1))

    align_m_l, offset_ml = pcd_align(p["py_align"], list(fea_l), list(fea_m))
    align_m_r, offset_mr = pcd_align(p["py_align"], list(fea_r), list(fea_m))

    align_m_l_s2, offset_m_l_s2 = hr_align(p["hd_align"], align_m_l, align_m_r,
                                           offset_ml * 0.5)
    align_m_r_s2, offset_m_r_s2 = hr_align(p["hd_align"], align_m_r, align_m_l,
                                           offset_mr * 0.5)

    out_fea = jnp.concatenate([align_m_l_s2, align_m_r_s2], -1)
    fuse_fea = conv2d(jnp.concatenate([out_fea, np_half], -1),
                      *p["fuse1"], act="lrelu")

    fuse_fea1 = None
    for i in range(k):
        if i % 2 == 1:
            align_m_l_s2, offset_m_l_s2 = hr_align(
                p["hd_align"], align_m_l_s2, align_m_r_s2, offset_m_l_s2 * 0.5)
            align_m_r_s2, offset_m_r_s2 = hr_align(
                p["hd_align"], align_m_r_s2, align_m_l_s2, offset_m_r_s2 * 0.5)
        stacked = jnp.stack([align_m_l_s2, align_m_r_s2], axis=1)  # (B,T=2,H2,W2,C)
        l0_lm = sepsts_forward(p["l0_attention"], stacked)
        l0_rm = conv3d_3x3x3(l0_lm, p["l0_fuse"])
        if i < k - 1:
            align_m_l_s2 = l0_rm[:, 0]
            align_m_r_s2 = l0_rm[:, 1]
        else:
            # torch view(b, C*T, H2, W2): flattened channel index = c*T + t
            out_fea1 = jnp.transpose(l0_rm, (0, 2, 3, 4, 1)).reshape(
                b, h // 2, w // 2, -1)
            fuse_fea1 = conv2d(jnp.concatenate([out_fea1, np_half], -1),
                               *p["fuseAtt"], act="lrelu")

    recon_fea = fuse_fea + fuse_fea1
    for rb in p["recon"]:
        recon_fea = resblock(rb, recon_fea)
    up = conv2d(recon_fea, *p["up_conv1"], act="linear")
    hr_fea = lrelu(pixel_shuffle2(up))
    residue = conv2d(conv2d(hr_fea, *p["hr_conv"], act="lrelu"),
                     *p["out_conv"], act="linear")
    out = x1 + residue.astype(jnp.float32)
    return jnp.transpose(out, (0, 3, 1, 2))  # back to NCHW


# ----------------------------------------------------------------------------
if __name__ == "__main__":
    key = jax.random.PRNGKey(0)
    k_params, k_x, k_np = jax.random.split(key, 3)

    B, H, W = 2, 16, 16          # (h//2, w//2) = (8, 8) matches window_size (2, 8, 8)
    NF = 32                      # divisible by heads=8 and deformable groups=8
    params = init_ivm(k_params, nf=NF, back_rb=2, depth=2, groups=8, heads=8)

    x = 0.5 * jax.random.normal(k_x, (B, 3, 3, H, W), jnp.float32)
    noise_prior = jax.random.uniform(k_np, (B, 2), jnp.float32)

    out = ivm_forward(params, x, noise_prior, k=3)
    out = jax.block_until_ready(out)
    assert out.shape == (B, 3, H, W), out.shape
    assert bool(jnp.all(jnp.isfinite(out)))
    print("KERNEL_OK")
</pallas_src>

<mosaic_0001>
module attributes {stable_mosaic.version = 11 : i64} {
  func.func @_conv2d_halo_kernel(%arg0: i32, %arg1: memref<1x18x18x3xbf16, #tpu.memory_space<vmem>>, %arg2: memref<9x3x32xbf16, #tpu.memory_space<vmem>>, %arg3: memref<1x32xf32, #tpu.memory_space<vmem>>, %arg4: memref<1x16x16x32xbf16, #tpu.memory_space<vmem>>) attributes {dimension_semantics = [#tpu.dimension_semantics<parallel>], iteration_bounds = array<i64: 2>, scalar_prefetch = 0 : i64, scratch_operands = 0 : i64, tpu.core_type = #tpu.core_type<tc>, window_params = [{transform_indices = @transform_0, window_bounds = array<i64: 1, 18, 18, 3>}, {pipeline_mode = #tpu.pipeline_mode<synchronous>, transform_indices = @transform_1, window_bounds = array<i64: 9, 3, 32>}, {pipeline_mode = #tpu.pipeline_mode<synchronous>, transform_indices = @transform_2, window_bounds = array<i64: 1, 32>}, {transform_indices = @transform_3, window_bounds = array<i64: 1, 16, 16, 32>}]} {
    %c0 = arith.constant 0 : index
    %c0_0 = arith.constant 0 : index
    %c0_1 = arith.constant 0 : index
    %c0_2 = arith.constant 0 : index
    %0 = vector.load %arg1[%c0, %c0_0, %c0_1, %c0_2] : memref<1x18x18x3xbf16, #tpu.memory_space<vmem>>, vector<1x16x18x3xbf16>
    %1 = vector.shape_cast %0 : vector<1x16x18x3xbf16> to vector<16x18x3xbf16>
    %2 = arith.extf %1 : vector<16x18x3xbf16> to vector<16x18x3xf32>
    %3 = vector.extract_strided_slice %2 {offsets = [0, 0, 0], sizes = [16, 16, 3], strides = [1, 1, 1]} : vector<16x18x3xf32> to vector<16x16x3xf32>
    %4 = vector.shape_cast %3 : vector<16x16x3xf32> to vector<256x3xf32>
    %5 = arith.truncf %4 : vector<256x3xf32> to vector<256x3xbf16>
    %c0_3 = arith.constant 0 : index
    %c0_4 = arith.constant 0 : index
    %c0_5 = arith.constant 0 : index
    %6 = vector.load %arg2[%c0_3, %c0_4, %c0_5] : memref<9x3x32xbf16, #tpu.memory_space<vmem>>, vector<1x3x32xbf16>
    %7 = vector.shape_cast %6 : vector<1x3x32xbf16> to vector<3x32xbf16>
    %cst = arith.constant dense<0.000000e+00> : vector<256x32xf32>
    %8 = tpu.matmul %5, %7, %cst {dimension_numbers = #tpu.dot_dimension_numbers<[1], [0], [0], [1], [0, 0, 1, 1], [], []>} : vector<256x3xbf16>, vector<3x32xbf16>, vector<256x32xf32> -> vector<256x32xf32>
    %9 = vector.extract_strided_slice %2 {offsets = [0, 1, 0], sizes = [16, 16, 3], strides = [1, 1, 1]} : vector<16x18x3xf32> to vector<16x16x3xf32>
    %10 = vector.shape_cast %9 : vector<16x16x3xf32> to vector<256x3xf32>
    %11 = arith.truncf %10 : vector<256x3xf32> to vector<256x3xbf16>
    %c1 = arith.constant 1 : index
    %c0_6 = arith.constant 0 : index
    %c0_7 = arith.constant 0 : index
    %12 = vector.load %arg2[%c1, %c0_6, %c0_7] : memref<9x3x32xbf16, #tpu.memory_space<vmem>>, vector<1x3x32xbf16>
    %13 = vector.shape_cast %12 : vector<1x3x32xbf16> to vector<3x32xbf16>
    %cst_8 = arith.constant dense<0.000000e+00> : vector<256x32xf32>
    %14 = tpu.matmul %11, %13, %cst_8 {dimension_numbers = #tpu.dot_dimension_numbers<[1], [0], [0], [1], [0, 0, 1, 1], [], []>} : vector<256x3xbf16>, vector<3x32xbf16>, vector<256x32xf32> -> vector<256x32xf32>
    %15 = arith.addf %8, %14 : vector<256x32xf32>
    %16 = vector.extract_strided_slice %2 {offsets = [0, 2, 0], sizes = [16, 16, 3], strides = [1, 1, 1]} : vector<16x18x3xf32> to vector<16x16x3xf32>
    %17 = vector.shape_cast %16 : vector<16x16x3xf32> to vector<256x3xf32>
    %18 = arith.truncf %17 : vector<256x3xf32> to vector<256x3xbf16>
    %c2 = arith.constant 2 : index
    %c0_9 = arith.constant 0 : index
    %c0_10 = arith.constant 0 : index
    %19 = vector.load %arg2[%c2, %c0_9, %c0_10] : memref<9x3x32xbf16, #tpu.memory_space<vmem>>, vector<1x3x32xbf16>
    %20 = vector.shape_cast %19 : vector<1x3x32xbf16> to vector<3x32xbf16>
    %cst_11 = arith.constant dense<0.000000e+00> : vector<256x32xf32>
    %21 = tpu.matmul %18, %20, %cst_11 {dimension_numbers = #tpu.dot_dimension_numbers<[1], [0], [0], [1], [0, 0, 1, 1], [], []>} : vector<256x3xbf16>, vector<3x32xbf16>, vector<256x32xf32> -> vector<256x32xf32>
    %22 = arith.addf %15, %21 : vector<256x32xf32>
    %c0_12 = arith.constant 0 : index
    %c1_13 = arith.constant 1 : index
    %c0_14 = arith.constant 0 : index
    %c0_15 = arith.constant 0 : index
    %23 = vector.load %arg1[%c0_12, %c1_13, %c0_14, %c0_15] : memref<1x18x18x3xbf16, #tpu.memory_space<vmem>>, vector<1x16x18x3xbf16>
    %24 = vector.shape_cast %23 : vector<1x16x18x3xbf16> to vector<16x18x3xbf16>
    %25 = arith.extf %24 : vector<16x18x3xbf16> to vector<16x18x3xf32>
    %26 = vector.extract_strided_slice %25 {offsets = [0, 0, 0], sizes = [16, 16, 3], strides = [1, 1, 1]} : vector<16x18x3xf32> to vector<16x16x3xf32>
    %27 = vector.shape_cast %26 : vector<16x16x3xf32> to vector<256x3xf32>
    %28 = arith.truncf %27 : vector<256x3xf32> to vector<256x3xbf16>
    %c3 = arith.constant 3 : index
    %c0_16 = arith.constant 0 : index
    %c0_17 = arith.constant 0 : index
    %29 = vector.load %arg2[%c3, %c0_16, %c0_17] : memref<9x3x32xbf16, #tpu.memory_space<vmem>>, vector<1x3x32xbf16>
    %30 = vector.shape_cast %29 : vector<1x3x32xbf16> to vector<3x32xbf16>
    %cst_18 = arith.constant dense<0.000000e+00> : vector<256x32xf32>
    %31 = tpu.matmul %28, %30, %cst_18 {dimension_numbers = #tpu.dot_dimension_numbers<[1], [0], [0], [1], [0, 0, 1, 1], [], []>} : vector<256x3xbf16>, vector<3x32xbf16>, vector<256x32xf32> -> vector<256x32xf32>
    %32 = arith.addf %22, %31 : vector<256x32xf32>
    %33 = vector.extract_strided_slice %25 {offsets = [0, 1, 0], sizes = [16, 16, 3], strides = [1, 1, 1]} : vector<16x18x3xf32> to vector<16x16x3xf32>
    %34 = vector.shape_cast %33 : vector<16x16x3xf32> to vector<256x3xf32>
    %35 = arith.truncf %34 : vector<256x3xf32> to vector<256x3xbf16>
    %c4 = arith.constant 4 : index
    %c0_19 = arith.constant 0 : index
    %c0_20 = arith.constant 0 : index
    %36 = vector.load %arg2[%c4, %c0_19, %c0_20] : memref<9x3x32xbf16, #tpu.memory_space<vmem>>, vector<1x3x32xbf16>
    %37 = vector.shape_cast %36 : vector<1x3x32xbf16> to vector<3x32xbf16>
    %cst_21 = arith.constant dense<0.000000e+00> : vector<256x32xf32>
    %38 = tpu.matmul %35, %37, %cst_21 {dimension_numbers = #tpu.dot_dimension_numbers<[1], [0], [0], [1], [0, 0, 1, 1], [], []>} : vector<256x3xbf16>, vector<3x32xbf16>, vector<256x32xf32> -> vector<256x32xf32>
    %39 = arith.addf %32, %38 : vector<256x32xf32>
    %40 = vector.extract_strided_slice %25 {offsets = [0, 2, 0], sizes = [16, 16, 3], strides = [1, 1, 1]} : vector<16x18x3xf32> to vector<16x16x3xf32>
    %41 = vector.shape_cast %40 : vector<16x16x3xf32> to vector<256x3xf32>
    %42 = arith.truncf %41 : vector<256x3xf32> to vector<256x3xbf16>
    %c5 = arith.constant 5 : index
    %c0_22 = arith.constant 0 : index
    %c0_23 = arith.constant 0 : index
    %43 = vector.load %arg2[%c5, %c0_22, %c0_23] : memref<9x3x32xbf16, #tpu.memory_space<vmem>>, vector<1x3x32xbf16>
    %44 = vector.shape_cast %43 : vector<1x3x32xbf16> to vector<3x32xbf16>
    %cst_24 = arith.constant dense<0.000000e+00> : vector<256x32xf32>
    %45 = tpu.matmul %42, %44, %cst_24 {dimension_numbers = #tpu.dot_dimension_numbers<[1], [0], [0], [1], [0, 0, 1, 1], [], []>} : vector<256x3xbf16>, vector<3x32xbf16>, vector<256x32xf32> -> vector<256x32xf32>
    %46 = arith.addf %39, %45 : vector<256x32xf32>
    %c0_25 = arith.constant 0 : index
    %c2_26 = arith.constant 2 : index
    %c0_27 = arith.constant 0 : index
    %c0_28 = arith.constant 0 : index
    %47 = vector.load %arg1[%c0_25, %c2_26, %c0_27, %c0_28] : memref<1x18x18x3xbf16, #tpu.memory_space<vmem>>, vector<1x16x18x3xbf16>
    %48 = vector.shape_cast %47 : vector<1x16x18x3xbf16> to vector<16x18x3xbf16>
    %49 = arith.extf %48 : vector<16x18x3xbf16> to vector<16x18x3xf32>
    %50 = vector.extract_strided_slice %49 {offsets = [0, 0, 0], sizes = [16, 16, 3], strides = [1, 1, 1]} : vector<16x18x3xf32> to vector<16x16x3xf32>
    %51 = vector.shape_cast %50 : vector<16x16x3xf32> to vector<256x3xf32>
    %52 = arith.truncf %51 : vector<256x3xf32> to vector<256x3xbf16>
    %c6 = arith.constant 6 : index
    %c0_29 = arith.constant 0 : index
    %c0_30 = arith.constant 0 : index
    %53 = vector.load %arg2[%c6, %c0_29, %c0_30] : memref<9x3x32xbf16, #tpu.memory_space<vmem>>, vector<1x3x32xbf16>
    %54 = vector.shape_cast %53 : vector<1x3x32xbf16> to vector<3x32xbf16>
    %cst_31 = arith.constant dense<0.000000e+00> : vector<256x32xf32>
    %55 = tpu.matmul %52, %54, %cst_31 {dimension_numbers = #tpu.dot_dimension_numbers<[1], [0], [0], [1], [0, 0, 1, 1], [], []>} : vector<256x3xbf16>, vector<3x32xbf16>, vector<256x32xf32> -> vector<256x32xf32>
    %56 = arith.addf %46, %55 : vector<256x32xf32>
    %57 = vector.extract_strided_slice %49 {offsets = [0, 1, 0], sizes = [16, 16, 3], strides = [1, 1, 1]} : vector<16x18x3xf32> to vector<16x16x3xf32>
    %58 = vector.shape_cast %57 : vector<16x16x3xf32> to vector<256x3xf32>
    %59 = arith.truncf %58 : vector<256x3xf32> to vector<256x3xbf16>
    %c7 = arith.constant 7 : index
    %c0_32 = arith.constant 0 : index
    %c0_33 = arith.constant 0 : index
    %60 = vector.load %arg2[%c7, %c0_32, %c0_33] : memref<9x3x32xbf16, #tpu.memory_space<vmem>>, vector<1x3x32xbf16>
    %61 = vector.shape_cast %60 : vector<1x3x32xbf16> to vector<3x32xbf16>
    %cst_34 = arith.constant dense<0.000000e+00> : vector<256x32xf32>
    %62 = tpu.matmul %59, %61, %cst_34 {dimension_numbers = #tpu.dot_dimension_numbers<[1], [0], [0], [1], [0, 0, 1, 1], [], []>} : vector<256x3xbf16>, vector<3x32xbf16>, vector<256x32xf32> -> vector<256x32xf32>
    %63 = arith.addf %56, %62 : vector<256x32xf32>
    %64 = vector.extract_strided_slice %49 {offsets = [0, 2, 0], sizes = [16, 16, 3], strides = [1, 1, 1]} : vector<16x18x3xf32> to vector<16x16x3xf32>
    %65 = vector.shape_cast %64 : vector<16x16x3xf32> to vector<256x3xf32>
    %66 = arith.truncf %65 : vector<256x3xf32> to vector<256x3xbf16>
    %c8 = arith.constant 8 : index
    %c0_35 = arith.constant 0 : index
    %c0_36 = arith.constant 0 : index
    %67 = vector.load %arg2[%c8, %c0_35, %c0_36] : memref<9x3x32xbf16, #tpu.memory_space<vmem>>, vector<1x3x32xbf16>
    %68 = vector.shape_cast %67 : vector<1x3x32xbf16> to vector<3x32xbf16>
    %cst_37 = arith.constant dense<0.000000e+00> : vector<256x32xf32>
    %69 = tpu.matmul %66, %68, %cst_37 {dimension_numbers = #tpu.dot_dimension_numbers<[1], [0], [0], [1], [0, 0, 1, 1], [], []>} : vector<256x3xbf16>, vector<3x32xbf16>, vector<256x32xf32> -> vector<256x32xf32>
    %70 = arith.addf %63, %69 : vector<256x32xf32>
    %c0_38 = arith.constant 0 : index
    %c0_39 = arith.constant 0 : index
    %71 = vector.load %arg3[%c0_38, %c0_39] : memref<1x32xf32, #tpu.memory_space<vmem>>, vector<1x32xf32>
    %72 = vector.broadcast %71 : vector<1x32xf32> to vector<256x32xf32>
    %73 = arith.addf %70, %72 : vector<256x32xf32>
    %cst_40 = arith.constant 0.000000e+00 : f32
    %74 = vector.broadcast %cst_40 : f32 to vector<256x32xf32>
    %75 = arith.cmpf oge, %73, %74 : vector<256x32xf32>
    %cst_41 = arith.constant 1.000000e-01 : f32
    %76 = vector.broadcast %cst_41 : f32 to vector<256x32xf32>
    %77 = arith.mulf %76, %73 : vector<256x32xf32>
    %78 = arith.select %75, %73, %77 : vector<256x32xi1>, vector<256x32xf32>
    %79 = vector.shape_cast %78 : vector<256x32xf32> to vector<1x16x16x32xf32>
    %80 = arith.truncf %79 : vector<1x16x16x32xf32> to vector<1x16x16x32xbf16>
    %c0_42 = arith.constant 0 : index
    %c0_43 = arith.constant 0 : index
    %c0_44 = arith.constant 0 : index
    %c0_45 = arith.constant 0 : index
    %81 = vector.load %arg4[%c0_42, %c0_43, %c0_44, %c0_45] : memref<1x16x16x32xbf16, #tpu.memory_space<vmem>>, vector<1x16x16x32xbf16>
    tpu.vector_store %arg4[%c0_42, %c0_43, %c0_44, %c0_45], %80 {strides = array<i32>} : memref<1x16x16x32xbf16, #tpu.memory_space<vmem>>, vector<1x16x16x32xbf16>,
    return
  }
  func.func @transform_0(%arg0: i32) -> (i32, i32, i32, i32) {
    %c0_i32 = arith.constant 0 : i32
    %c0_i32_0 = arith.constant 0 : i32
    %c0_i32_1 = arith.constant 0 : i32
    %c0_i32_2 = arith.constant 0 : i32
    return %arg0, %c0_i32, %c0_i32_0, %c0_i32_1 : i32, i32, i32, i32
  }
  func.func @transform_1(%arg0: i32) -> (i32, i32, i32) {
    %c0_i32 = arith.constant 0 : i32
    %c0_i32_0 = arith.constant 0 : i32
    %c0_i32_1 = arith.constant 0 : i32
    %c0_i32_2 = arith.constant 0 : i32
    return %c0_i32, %c0_i32_0, %c0_i32_1 : i32, i32, i32
  }
  func.func @transform_2(%arg0: i32) -> (i32, i32) {
    %c0_i32 = arith.constant 0 : i32
    %c0_i32_0 = arith.constant 0 : i32
    %c0_i32_1 = arith.constant 0 : i32
    return %c0_i32, %c0_i32_0 : i32, i32
  }
  func.func @transform_3(%arg0: i32) -> (i32, i32, i32, i32) {
    %c0_i32 = arith.constant 0 : i32
    %c0_i32_0 = arith.constant 0 : i32
    %c0_i32_1 = arith.constant 0 : i32
    %c0_i32_2 = arith.constant 0 : i32
    return %arg0, %c0_i32, %c0_i32_0, %c0_i32_1 : i32, i32, i32, i32
  }
}

</mosaic_0001>

<bundles_post_ra>
// kernel: _conv2d_halo.1
= control target key start
LH: loop header
LB: loop body
LE: loop exit
PB: predicated region body
PF: predicated region fallthrough
CT: control target
= control target key end

     0   :  { %8 = vsyncpa [#allocation3], 0  ;;  %s7277_s0 = inlined_call_operand.vmem [shape: bf16[2,18,18,3], index: 0, kind: input, shape index: {}]   ;;  %s7278_s1 = inlined_call_operand.vmem [shape: bf16[9,3,32], index: 1, kind: input, shape index: {}]   ;;  %s7279_s2 = inlined_call_operand.vmem [shape: f32[1,32], index: 2, kind: input, shape index: {}]   ;;  %s7280_s3 = inlined_call_operand.hbm [shape: bf16[2,16,16,32], index: 3, kind: output, shape index: {}]  }
   0x1   :  { %10 = vsyncpa [#allocation3 + $0x1], 0  ;;  %s5281_s12 = smov 0   ;;  %s5283_s13 = smov 0  }
   0x2   :  { %s5285_s14 = smov 0   ;;  %s5287_s15 = smov 0  }
   0x3 LB: > { %s5302_s16 = sadd.s32 4294967295, %s5255_s15   ;;  %s3948_s17 = sadd.s32 4294967294, %s5255_s15   ;;  %s5255_s15 = sphi %s5287_s15, %s7704_s15   ;;  %s5251_s14 = sphi %s5285_s14, %s7703_s14   ;;  %s5247_s13 = sphi %s5283_s13, %s7702_s13   ;;  %s5243_s12 = sphi %s5281_s12, %s7701_s12  }
   0x4   : > { %s5306_s18 = sadd.s32 1, %s5255_s15   ;;  %s91_s19 = sadd.s32 1, %s5251_s14 }
   0x5   : > { %s88_s20 = ssub.s32 %s5255_s15, %s5306_s18  ;;  %p101_p0 = scmp.ne.s32.totalorder %s5251_s14, %s5247_s13 }
   0x6   : > { %p89_p1 = scmp.eq.s32.totalorder %s88_s20, 0  ;;  %p102_p2 = scmp.eq.s32.totalorder %s5302_s16, 1 }
   0x7   : > { %p107_p3 = scmp.ne.s32.totalorder %s5247_s13, %s5243_s12  ;;  %p108_p4 = scmp.eq.s32.totalorder %s3948_s17, 1 }
   0x8   : > { %s5317_s21 = scalar_select %p89_p1, %s5251_s14, %s91_s19  }
   0x9   : > { %p5319_p5 = por %p102_p2, %p101_p0  ;;  %p5323_p6 = por %p108_p4, %p107_p3 }
   0xa   : > { %p3951_p7 = scmp.ge.s32.totalorder %s5255_s15, 1  ;;  %p140_p8 = scmp.lt.s32.totalorder %s5255_s15, 3 }
   0xc   : > { %p141_p9 = pnand %p3951_p7, %p140_p8 }
   0xe   : > { %144 = sbr.rel (%p141_p9) target bundleno = 569 (0x239), region = 32 }
  0x15   : > { %v3970_v0 = vld [vmem:[%s7278_s1 + $0x2] sm:$0x3]  ;;  %vm511_vm0 = vcmask 1040384   ;;  %vm512_vm1 = vcmask 1041408   ;;  %p164_p10 = scmp.lt.s32.totalorder %s5302_s16, 1  ;;  %v5257_v1 = vmov 65535  }
  0x16   : > { %v513_v2 = vsel %vm511_vm0, 4294967295, %v5257_v1  ;;  %v4101_v3 = vld [vmem:[%s7278_s1 + $0x8] sm:$0x3]  ;;  %v282_v5 = vld [vmem:[%s7278_s1] sm:$0x3]  ;;  %vm331_vm2 = vcmask 1046528  }
  0x17   : > { %v5336_v4 = vsel %vm512_vm1, %v513_v2, 0  ;;  %s165_s28 = scalar_select %p164_p10, %s5302_s16, 1  ;;  %v4118_v6 = vld [vmem:[%s7278_s1 + $0xa] sm:$0x3]  ;;  %v4199_v26 = vld [vmem:[%s7278_s1 + $0xc] sm:$0x3] }
  0x18   : > { %v516_v7 = vand.u32 %v3970_v0, %v5336_v4  ;;  %v5347_v8 = vand.u32 %v4101_v3, %v5336_v4  ;;  %v5350_v9 = vand.u32 %v5336_v4, %v282_v5  ;;  %v5353_v10 = vand.u32 %v4118_v6, %v5336_v4  ;;  %v4003_v31 = vld [vmem:[%s7278_s1 + $0x4] sm:$0x3]  ;;  %v4216_v35 = vld [vmem:[%s7278_s1 + $0xe] sm:$0x3]  ;;  %s161_s4 = sand.u32 1, %s5247_s13   ;;  %s4320_s7 = sshll.u32 %s5302_s16, 11 }
  0x19   : > { %s5038_s6 = smul.u32 216, %s165_s28  ;;  %vm462_vm3 = vcmask 23552   ;;  %v5403_v39 = vand.u32 %v4199_v26, %v5336_v4  ;;  %v5414_v45 = vand.u32 %v4003_v31, %v5336_v4  ;;  %v5422_v49 = vand.u32 %v4216_v35, %v5336_v4  ;;  %s3952_s5 = sshll.u32 %s161_s4, 7 }
  0x1a   : > { %7437 = vst [vmem:[#allocation5_spill] sm:$0xff] %v5347_v8  ;;  %4474 = vmatprep.subr.bf16.mxu1 %v516_v7  ;;  %4610 = vmatprep.subr.bf16.mxu0 %v5347_v8  ;;  %vm891_vm4 = vcmask 1045504   ;;  %vm3839_vm7 = vcmask 257024   ;;  %s7224_s11 = scalar_lea.hbm %s7280_s3, %s4320_s7  ;;  %s7236_s16 = scalar_lea.sflag [#allocation3], %s161_s4 }
  0x1b   : > { %4475 = vmatpush3.bf16.msra.mxu1 %v516_v7  ;;  %4611 = vmatpush3.bf16.msra.mxu0 %v5347_v8  ;;  %s5360_s9 = scalar_lea.vmem %s7277_s0, %s5038_s6  ;;  %s7123_s6 = scalar_lea.vmem [#allocation2], %s3952_s5 }
  0x1c   : > { %v5363_v11 = vld [vmem:[%s5360_s9] sm:$0xff]   ;;  %v5366_v12 = vld [vmem:[%s5360_s9 + $0x8] sm:$0x1]  ;;  %4508 = vmatprep.subr.bf16.mxu1 %v5350_v9  ;;  %v4020_v13 = vld [vmem:[%s5360_s9 + $0xc] sm:$0xff]   ;;  %4644 = vmatprep.subr.bf16.mxu0 %v5353_v10  ;;  %s3886_s8 = sshll.u32 %s7123_s6, 4  ;;  %s5258_s19 = smov [#allocation2]   ;;  %s7226_s8 = int_to_ptr.vmem [resolvable:$true] %s3886_s8 }
  0x1d   : > { %v7298_v14 = vunpack.c.l.bf16 %v5363_v11  ;;  %v7297_v15 = vunpack.c.h.bf16 %v5363_v11  ;;  %v7296_v16 = vunpack.c.l.bf16 %v5366_v12  ;;  %v4022_v17 = vld [vmem:[%s5360_s9 + $0x14] sm:$0x1]  ;;  %v1315_v18 = vunpack.c.l.bf16 %v4020_v13  ;;  %v5376_v19 = vld [vmem:[%s5360_s9 + $0xc] sm:$0xff]   ;;  %v4023_v38 = vld [vmem:[%s5360_s9 + $0x18] sm:$0xff]   ;;  %s5193_s17 = scalar_lea.vmem %s7226_s8, 2048  ;;  %s5197_s20 = sshll.u32 %s5258_s19, 4  ;;  %s5198_s20 = int_to_ptr.vmem [resolvable:$false] %s5197_s20 }
  0x1e   : > { %v1316_v20 = vunpack.c.h.bf16 %v4020_v13  ;;  %v1317_v21 = vunpack.c.l.bf16 %v4022_v17  ;;  %v7295_v25 = vunpack.c.l.bf16 %v5376_v19  ;;  %v5389_v29 = vld [vmem:[%s5360_s9 + $0x14] sm:$0x1]  ;;  %v7294_v30 = vunpack.c.h.bf16 %v5376_v19  ;;  %v4025_v43 = vld [vmem:[%s5360_s9 + $0x20] sm:$0x1]  ;;  %v5411_v44 = vld [vmem:[%s5360_s9 + $0x18] sm:$0xff]   ;;  %p5194_p11 = scmp.ne.s32.totalorder %s7226_s8, %s5193_s17  ;;  %s5199_s24 = scalar_lea.vmem %s5198_s20, 4096 }
  0x1f   : > { %v332_v22 = vrot.slane %v7298_v14, 1  ;;  %v333_v23 = vrot.slane %v7297_v15, 1  ;;  %v335_v24 = vrot.slane %v7296_v16, 1  ;;  %v1673_v27 = vrot.slane %v1315_v18, 1  ;;  %v5433_v57 = vld [vmem:[%s5360_s9 + $0x20] sm:$0x1]  ;;  %p5200_p0 = scmp.lt.s32.totalorder %s7226_s8, %s5198_s20  ;;  %p5201_p1 = scmp.lt.s32.totalorder %s5199_s24, %s5193_s17 }
  0x20   : > { %v1674_v28 = vrot.slane %v1316_v20, 1  ;;  %v1676_v34 = vrot.slane %v1317_v21, 1  ;;  %v7293_v41 = vunpack.c.l.bf16 %v5389_v29  ;;  %v337_v42 = vrot.slane %v7295_v25, 1  ;;  %v5440_v63 = vld [vmem:[%s5360_s9 + $0x24] sm:$0xff]   ;;  %v5443_v0 = vld [vmem:[%s5360_s9 + $0x2c] sm:$0x1]  ;;  %p5195_p12 = pnand %p5194_p11, %p5319_p5 }
  0x21   : > { %v334_v32 = vsel %vm331_vm2, %v332_v22, %v333_v23  ;;  %v336_v33 = vsel %vm331_vm2, %v333_v23, %v335_v24  ;;  %v5417_v47 = vrot.slane %v1315_v18, 2  ;;  %v338_v48 = vrot.slane %v7294_v30, 1  ;;  %v5450_v6 = vld [vmem:[%s5360_s9 + $0x24] sm:$0xff]   ;;  %v5463_v24 = vld [vmem:[%s5360_s9 + $0x2c] sm:$0x1]  ;;  %v5479_v35 = vld [vmem:[%s5360_s9 + $0x30] sm:$0xff]   ;;  %p5202_p2 = por %p5201_p1, %p5200_p0 }
  0x22   : > { %v444_v36 = vpack.c.bf16 %v336_v33, %v334_v32  ;;  %v1675_v37 = vsel %vm331_vm2, %v1673_v27, %v1674_v28  ;;  %v1677_v40 = vsel %vm331_vm2, %v1674_v28, %v1676_v34  ;;  %v5424_v50 = vrot.slane %v1316_v20, 2  ;;  %p5196_p13 = pneg %p5195_p12 }
  0x23   : > { %v1785_v46 = vpack.c.bf16 %v1677_v40, %v1675_v37  ;;  %v340_v51 = vrot.slane %v7293_v41, 1  ;;  %v1318_v52 = vunpack.c.l.bf16 %v4023_v38  ;;  %v1319_v53 = vunpack.c.h.bf16 %v4023_v38  ;;  %v5598_v41 = vld [vmem:[%s5360_s9 + $0x54] sm:$0xff]  }
  0x24   : > { %4476 = vmatprep.mubr.msk.bf16.mxu1 %vm462_vm3, %v444_v36  ;;  %v5429_v54 = vrot.slane %v1317_v21, 2  ;;  %v339_v55 = vsel %vm331_vm2, %v337_v42, %v338_v48  ;;  %v1320_v56 = vunpack.c.l.bf16 %v4025_v43  ;;  %v7292_v58 = vunpack.c.l.bf16 %v5411_v44  ;;  %v5489_v42 = vld [vmem:[%s5360_s9 + $0x38] sm:$0x1]  ;;  %v5492_v43 = vld [vmem:[%s5360_s9 + $0x30] sm:$0xff]   ;;  %p5203_p3 = pnand %p5202_p2, %p5196_p13 }
  0x25   : > { %4612 = vmatprep.mubr.msk.bf16.mxu0 %vm462_vm3, %v1785_v46  ;;  %v341_v59 = vsel %vm331_vm2, %v338_v48, %v340_v51  ;;  %v1678_v60 = vrot.slane %v1318_v52, 1  ;;  %v1679_v61 = vrot.slane %v1319_v53, 1  ;;  %v5437_v62 = vrot.slane %v1318_v52, 2 }
  0x26   : > { %v445_v1 = vpack.c.bf16 %v341_v59, %v339_v55  ;;  %v1681_v2 = vrot.slane %v1320_v56, 1  ;;  %v5445_v3 = vrot.slane %v1319_v53, 2  ;;  %v5447_v5 = vrot.slane %v1320_v56, 2  ;;  %v5500_v53 = vld [vmem:[%s5360_s9 + $0x38] sm:$0x1] }
  0x27   : > { %v1680_v7 = vsel %vm331_vm2, %v1678_v60, %v1679_v61  ;;  %v7289_v13 = vunpack.c.h.bf16 %v5411_v44  ;;  %v7287_v17 = vunpack.c.l.bf16 %v5433_v57  ;;  %v342_v18 = vrot.slane %v7292_v58, 1 }
  0x28   : > { %4477 = vmatmul.mubr.msk.bf16.vlgmr.msra.gmra.mrb[0].mxu1 %vm462_vm3, %v445_v1  ;;  %v1682_v20 = vsel %vm331_vm2, %v1679_v61, %v1681_v2  ;;  %v1321_v21 = vunpack.c.l.bf16 %v5440_v63  ;;  %v1322_v22 = vunpack.c.h.bf16 %v5440_v63  ;;  %v1323_v23 = vunpack.c.l.bf16 %v5443_v0  ;;  %v5741_v0 = vld [vmem:[%s5360_s9 + $0x90] sm:$0xff]  }
  0x29   : > { %4509 = vmatpush3.bf16.msra.mxu1 %v5350_v9  ;;  %v1786_v26 = vpack.c.bf16 %v1682_v20, %v1680_v7  ;;  %v343_v27 = vrot.slane %v7289_v13, 1  ;;  %v345_v28 = vrot.slane %v7287_v17, 1  ;;  %v7286_v31 = vunpack.c.l.bf16 %v5450_v6  ;;  %v5513_v7 = vld [vmem:[%s5360_s9 + $0x3c] sm:$0xff]   ;;  %v5579_v17 = vld [vmem:[%s5360_s9 + $0x50] sm:$0x1] }
  0x2a   : > { %v1683_v32 = vrot.slane %v1321_v21, 1  ;;  %v1684_v33 = vrot.slane %v1322_v22, 1  ;;  %v1686_v9 = vrot.slane %v1323_v23, 1  ;;  %v7285_v34 = vunpack.c.h.bf16 %v5450_v6  ;;  %4542 = vmatprep.subr.bf16.mxu1 %v5414_v45 }
  0x2b   : > { %4613 = vmatmul.mubr.msk.bf16.vlgmr.msra.gmra.mrb[0].mxu0 %vm462_vm3, %v1786_v26  ;;  %v344_v36 = vsel %vm331_vm2, %v342_v18, %v343_v27  ;;  %v346_v37 = vsel %vm331_vm2, %v343_v27, %v345_v28  ;;  %v7284_v38 = vunpack.c.l.bf16 %v5463_v24  ;;  %v347_v40 = vrot.slane %v7286_v31, 1  ;;  %v5523_v28 = vld [vmem:[%s5360_s9 + $0x44] sm:$0x1] }
  0x2c   : > { %4645 = vmatpush3.bf16.msra.mxu0 %v5353_v10  ;;  %v446_v46 = vpack.c.bf16 %v346_v37, %v344_v36  ;;  %v1685_v48 = vsel %vm331_vm2, %v1683_v32, %v1684_v33  ;;  %v1687_v51 = vsel %vm331_vm2, %v1684_v33, %v1686_v9  ;;  %v348_v52 = vrot.slane %v7285_v34, 1  ;;  %v5526_v32 = vld [vmem:[%s5360_s9 + $0x3c] sm:$0xff]  }
  0x2d   : > { %v1787_v55 = vpack.c.bf16 %v1687_v51, %v1685_v48  ;;  %v350_v56 = vrot.slane %v7284_v38, 1  ;;  %v1324_v59 = vunpack.c.l.bf16 %v5479_v35  ;;  %v1325_v10 = vunpack.c.h.bf16 %v5479_v35  ;;  %4678 = vmatprep.subr.bf16.mxu0 %v5403_v39 }
  0x2e   : > { %4480 = vmatprep.mubr.msk.bf16.mxu1 %vm462_vm3, %v446_v46  ;;  %v349_v60 = vsel %vm331_vm2, %v347_v40, %v348_v52  ;;  %v1326_v61 = vunpack.c.l.bf16 %v5489_v42  ;;  %v7283_v1 = vunpack.c.l.bf16 %v5492_v43  ;;  %v7282_v2 = vunpack.c.h.bf16 %v5492_v43  ;;  %v5775_v42 = vld [vmem:[%s5360_s9 + $0xa4] sm:$0x1] }
  0x2f   : > { %4616 = vmatprep.mubr.msk.bf16.mxu0 %vm462_vm3, %v1787_v55  ;;  %v351_v18 = vsel %vm331_vm2, %v348_v52, %v350_v56  ;;  %v1688_v20 = vrot.slane %v1324_v59, 1  ;;  %v1689_v26 = vrot.slane %v1325_v10, 1  ;;  %v7281_v27 = vunpack.c.l.bf16 %v5500_v53  ;;  %v5540_v52 = vld [vmem:[%s5360_s9 + $0x44] sm:$0x1]  ;;  %7440 = vst [vmem:[#allocation7_spill] sm:$0xff] %v5775_v42 }
  0x30   : > { %v447_v33 = vpack.c.bf16 %v351_v18, %v349_v60  ;;  %v1691_v9 = vrot.slane %v1326_v61, 1  ;;  %v352_v36 = vrot.slane %v7283_v1, 1  ;;  %v353_v37 = vrot.slane %v7282_v2, 1 }
  0x31   : > { %v1690_v40 = vsel %vm331_vm2, %v1688_v20, %v1689_v26  ;;  %v355_v46 = vrot.slane %v7281_v27, 1  ;;  %v7313_v48 = vunpack.c.l.bf16 %v5513_v7  ;;  %v7310_v51 = vunpack.c.h.bf16 %v5513_v7  ;;  %v5548_v20 = vld [vmem:[%s5360_s9 + $0x48] sm:$0xff]  }
  0x32   : > { %4481 = vmatmul.mubr.msk.bf16.gmra.mrb[4].mxu1 %vm462_vm3, %v447_v33  ;;  %v1692_v55 = vsel %vm331_vm2, %v1689_v26, %v1691_v9  ;;  %v354_v56 = vsel %vm331_vm2, %v352_v36, %v353_v37  ;;  %v7307_v60 = vunpack.c.l.bf16 %v5523_v28  ;;  %v7288_v18 = vunpack.c.l.bf16 %v5526_v32  ;;  %v5556_v33 = vld [vmem:[%s5360_s9 + $0x50] sm:$0x1] }
  0x33   : > { %v1788_v27 = vpack.c.bf16 %v1692_v55, %v1690_v40  ;;  %v356_v2 = vsel %vm331_vm2, %v353_v37, %v355_v46  ;;  %v1693_v1 = vrot.slane %v7313_v48, 1  ;;  %v1694_v38 = vrot.slane %v7310_v51, 1  ;;  %v5563_v40 = vld [vmem:[%s5360_s9 + $0x48] sm:$0xff]  }
  0x34   : > { %v448_v26 = vpack.c.bf16 %v356_v2, %v354_v56  ;;  %v1696_v9 = vrot.slane %v7307_v60, 1  ;;  %v7290_v36 = vunpack.c.h.bf16 %v5526_v32  ;;  %v7291_v34 = vunpack.c.l.bf16 %v5540_v52  ;;  %v5650_v51 = vld [vmem:[%s5360_s9 + $0x68] sm:$0x1] }
  0x35   : > { %4617 = vmatmul.mubr.msk.bf16.gmra.mrb[4].mxu0 %vm462_vm3, %v1788_v27  ;;  %v1695_v37 = vsel %vm331_vm2, %v1693_v1, %v1694_v38  ;;  %v357_v46 = vrot.slane %v7288_v18, 1  ;;  %v7306_v55 = vunpack.c.l.bf16 %v5548_v20  ;;  %v7304_v2 = vunpack.c.h.bf16 %v5548_v20 }
  0x36   : > { %4484 = vmatprep.mubr.msk.bf16.mxu1 %vm462_vm3, %v448_v26  ;;  %v1697_v56 = vsel %vm331_vm2, %v1694_v38, %v1696_v9  ;;  %v358_v31 = vrot.slane %v7290_v36, 1  ;;  %v360_v27 = vrot.slane %v7291_v34, 1  ;;  %v7299_v1 = vunpack.c.l.bf16 %v5556_v33  ;;  %v5587_v9 = vld [vmem:[%s5360_s9 + $0x54] sm:$0xff]  }
  0x37   : > { %v1789_v18 = vpack.c.bf16 %v1697_v56, %v1695_v37  ;;  %v1698_v13 = vrot.slane %v7306_v55, 1  ;;  %v1699_v26 = vrot.slane %v7304_v2, 1  ;;  %v7301_v38 = vunpack.c.l.bf16 %v5563_v40  ;;  %v5595_v56 = vld [vmem:[%s5360_s9 + $0x5c] sm:$0x1]  ;;  %v5638_v2 = vld [vmem:[%s5360_s9 + $0x60] sm:$0xff]  }
  0x38   : > { %v359_v36 = vsel %vm331_vm2, %v357_v46, %v358_v31  ;;  %v361_v34 = vsel %vm331_vm2, %v358_v31, %v360_v27  ;;  %v1701_v58 = vrot.slane %v7299_v1, 1  ;;  %v7300_v37 = vunpack.c.h.bf16 %v5563_v40  ;;  %v5611_v1 = vld [vmem:[%s5360_s9 + $0x5c] sm:$0x1] }
  0x39   : > { %4620 = vmatprep.mubr.msk.bf16.mxu0 %vm462_vm3, %v1789_v18  ;;  %v449_v30 = vpack.c.bf16 %v361_v34, %v359_v36  ;;  %v1700_v25 = vsel %vm331_vm2, %v1698_v13, %v1699_v26  ;;  %v7302_v16 = vunpack.c.l.bf16 %v5579_v17  ;;  %v362_v31 = vrot.slane %v7301_v38, 1  ;;  %v5619_v36 = vld [vmem:[%s5360_s9 + $0x60] sm:$0xff]  }
  0x3a   : > { %v1702_v46 = vsel %vm331_vm2, %v1699_v26, %v1701_v58  ;;  %v363_v27 = vrot.slane %v7300_v37, 1  ;;  %v7303_v15 = vunpack.c.l.bf16 %v5587_v9  ;;  %v7305_v14 = vunpack.c.h.bf16 %v5587_v9 }
  0x3b   : > { %4485 = vmatmul.mubr.msk.bf16.gmra.mrb[8].mxu1 %vm462_vm3, %v449_v30  ;;  %v1790_v13 = vpack.c.bf16 %v1702_v46, %v1700_v25  ;;  %v365_v34 = vrot.slane %v7302_v16, 1  ;;  %v7308_v18 = vunpack.c.l.bf16 %v5595_v56  ;;  %v7309_v58 = vunpack.c.l.bf16 %v5598_v41  ;;  %v5628_v25 = vld [vmem:[%s5360_s9 + $0x68] sm:$0x1] }
  0x3c   : > { %v364_v26 = vsel %vm331_vm2, %v362_v31, %v363_v27  ;;  %v1703_v37 = vrot.slane %v7303_v15, 1  ;;  %v1704_v38 = vrot.slane %v7305_v14, 1  ;;  %v7312_v30 = vunpack.c.h.bf16 %v5598_v41 }
  0x3d   : > { %4621 = vmatmul.mubr.msk.bf16.gmra.mrb[8].mxu0 %vm462_vm3, %v1790_v13  ;;  %v366_v46 = vsel %vm331_vm2, %v363_v27, %v365_v34  ;;  %v1706_v16 = vrot.slane %v7308_v18, 1  ;;  %v7311_v31 = vunpack.c.l.bf16 %v5611_v1  ;;  %v367_v15 = vrot.slane %v7309_v58, 1 }
  0x3e   : > { %v450_v14 = vpack.c.bf16 %v366_v46, %v364_v26  ;;  %v1705_v55 = vsel %vm331_vm2, %v1703_v37, %v1704_v38  ;;  %v368_v60 = vrot.slane %v7312_v30, 1  ;;  %v7317_v13 = vunpack.c.l.bf16 %v5619_v36 }
  0x3f   : > { %v1707_v27 = vsel %vm331_vm2, %v1704_v38, %v1706_v16  ;;  %v370_v34 = vrot.slane %v7311_v31, 1  ;;  %v7315_v18 = vunpack.c.h.bf16 %v5619_v36  ;;  %v7314_v58 = vunpack.c.l.bf16 %v5628_v25 }
  0x40   : > { %4488 = vmatprep.mubr.msk.bf16.mxu1 %vm462_vm3, %v450_v14  ;;  %v1791_v37 = vpack.c.bf16 %v1707_v27, %v1705_v55  ;;  %v369_v26 = vsel %vm331_vm2, %v367_v15, %v368_v60  ;;  %v1708_v46 = vrot.slane %v7317_v13, 1  ;;  %v7316_v16 = vunpack.c.l.bf16 %v5638_v2  ;;  %v5664_v14 = vld [vmem:[%s5360_s9 + $0x6c] sm:$0xff]  }
  0x41   : > { %v371_v38 = vsel %vm331_vm2, %v368_v60, %v370_v34  ;;  %v1709_v31 = vrot.slane %v7315_v18, 1  ;;  %v1711_v30 = vrot.slane %v7314_v58, 1  ;;  %v7318_v48 = vunpack.c.h.bf16 %v5638_v2  ;;  %v5674_v34 = vld [vmem:[%s5360_s9 + $0x74] sm:$0x1] }
  0x42   : > { %4624 = vmatprep.mubr.msk.bf16.mxu0 %vm462_vm3, %v1791_v37  ;;  %v451_v15 = vpack.c.bf16 %v371_v38, %v369_v26  ;;  %v7346_v55 = vunpack.c.l.bf16 %v5650_v51  ;;  %v372_v27 = vrot.slane %v7316_v16, 1  ;;  %v2049_v60 = vsel %vm891_vm4, %v5417_v47, %v5424_v50  ;;  %v5684_v38 = vld [vmem:[%s5360_s9 + $0x78] sm:$0xff]  }
  0x43   : > { %v1710_v58 = vsel %vm331_vm2, %v1708_v46, %v1709_v31  ;;  %v1712_v18 = vsel %vm331_vm2, %v1709_v31, %v1711_v30  ;;  %v373_v37 = vrot.slane %v7318_v48, 1  ;;  %v2051_v26 = vsel %vm891_vm4, %v5424_v50, %v5429_v54  ;;  %v5697_v54 = vld [vmem:[%s5360_s9 + $0x80] sm:$0x1] }
  0x44   : > { %4489 = vmatmul.mubr.msk.bf16.gmra.mrb[12].mxu1 %vm462_vm3, %v451_v15  ;;  %v1792_v16 = vpack.c.bf16 %v1712_v18, %v1710_v58  ;;  %v375_v47 = vrot.slane %v7346_v55, 1  ;;  %v2159_v13 = vpack.c.bf16 %v2051_v26, %v2049_v60  ;;  %v7319_v46 = vunpack.c.l.bf16 %v5664_v14 }
  0x45   : > { %v374_v30 = vsel %vm331_vm2, %v372_v27, %v373_v37  ;;  %v7343_v31 = vunpack.c.h.bf16 %v5664_v14  ;;  %v7321_v48 = vunpack.c.l.bf16 %v5674_v34  ;;  %v2054_v50 = vsel %vm891_vm4, %v5437_v62, %v5445_v3 }
  0x46   : > { %4625 = vmatmul.mubr.msk.bf16.gmra.mrb[12].mxu0 %vm462_vm3, %v1792_v16  ;;  %v376_v18 = vsel %vm331_vm2, %v373_v37, %v375_v47  ;;  %v377_v58 = vrot.slane %v7319_v46, 1  ;;  %v2056_v15 = vsel %vm891_vm4, %v5445_v3, %v5447_v5  ;;  %v7320_v27 = vunpack.c.l.bf16 %v5684_v38  ;;  %v5713_v37 = vld [vmem:[%s5360_s9 + $0x84] sm:$0xff]  }
  0x47   : > { %v452_v60 = vpack.c.bf16 %v376_v18, %v374_v30  ;;  %4646 = vmatprep.mubr.msk.bf16.mxu0 %vm462_vm3, %v2159_v13  ;;  %v378_v62 = vrot.slane %v7343_v31, 1  ;;  %v380_v16 = vrot.slane %v7321_v48, 1  ;;  %v2160_v26 = vpack.c.bf16 %v2056_v15, %v2054_v50  ;;  %v5722_v13 = vld [vmem:[%s5360_s9 + $0x8c] sm:$0x1] }
  0x48   : > { %v7342_v47 = vunpack.c.h.bf16 %v5684_v38  ;;  %v7322_v46 = vunpack.c.l.bf16 %v5697_v54  ;;  %v382_v3 = vrot.slane %v7320_v27, 1  ;;  %v2057_v5 = vrot.slane %v1321_v21, 2 }
  0x49   : > { %4492 = vmatprep.mubr.msk.bf16.mxu1 %vm462_vm3, %v452_v60  ;;  %v379_v30 = vsel %vm331_vm2, %v377_v58, %v378_v62  ;;  %v381_v50 = vsel %vm331_vm2, %v378_v62, %v380_v16  ;;  %v2058_v18 = vrot.slane %v1322_v22, 2  ;;  %v2060_v15 = vrot.slane %v1323_v23, 2 }
  0x4a   : > { %v453_v27 = vpack.c.bf16 %v381_v50, %v379_v30  ;;  %v383_v48 = vrot.slane %v7342_v47, 1  ;;  %v385_v21 = vrot.slane %v7322_v46, 1  ;;  %v7341_v60 = vunpack.c.l.bf16 %v5713_v37  ;;  %v5749_v46 = vld [vmem:[%s5360_s9 + $0x98] sm:$0x1] }
  0x4b   : > { %v2059_v58 = vsel %vm891_vm4, %v2057_v5, %v2058_v18  ;;  %v2061_v62 = vsel %vm891_vm4, %v2058_v18, %v2060_v15  ;;  %v7327_v63 = vunpack.c.h.bf16 %v5713_v37  ;;  %v7326_v22 = vunpack.c.l.bf16 %v5722_v13 }
  0x4c   : > { %4493 = vmatmul.mubr.msk.bf16.gmra.mrb[16].mxu1 %vm462_vm3, %v453_v27  ;;  %v384_v23 = vsel %vm331_vm2, %v382_v3, %v383_v48  ;;  %v386_v16 = vsel %vm331_vm2, %v383_v48, %v385_v21  ;;  %v2161_v30 = vpack.c.bf16 %v2061_v62, %v2059_v58  ;;  %v387_v50 = vrot.slane %v7341_v60, 1 }
  0x4d   : > { %v454_v5 = vpack.c.bf16 %v386_v16, %v384_v23  ;;  %v388_v18 = vrot.slane %v7327_v63, 1  ;;  %v390_v15 = vrot.slane %v7326_v22, 1  ;;  %v2062_v27 = vrot.slane %v1324_v59, 2  ;;  %v5772_v23 = vld [vmem:[%s5360_s9 + $0x9c] sm:$0xff]  }
  0x4e   : > { %4647 = vmatmul.mubr.msk.bf16.vlgmr.msra.gmra.mrb[0].mxu0 %vm462_vm3, %v2160_v26  ;;  %v2063_v48 = vrot.slane %v1325_v10, 2  ;;  %v2065_v3 = vrot.slane %v1326_v61, 2  ;;  %v7325_v21 = vunpack.c.l.bf16 %v5741_v0  ;;  %v7323_v58 = vunpack.c.h.bf16 %v5741_v0  ;;  %7439 = vst [vmem:[#allocation6_spill] sm:$0xff] %v5772_v23 }
  0x4f   : > { %4679 = vmatpush3.bf16.msra.mxu0 %v5403_v39  ;;  %4496 = vmatprep.mubr.msk.bf16.mxu1 %vm462_vm3, %v454_v5  ;;  %v389_v62 = vsel %vm331_vm2, %v387_v50, %v388_v18  ;;  %v391_v59 = vsel %vm331_vm2, %v388_v18, %v390_v15  ;;  %v7324_v26 = vunpack.c.l.bf16 %v5749_v46  ;;  %v7438_v35 = vunpack.c.l.bf16 %v5513_v7 }
  0x50   : > { %4650 = vmatprep.mubr.msk.bf16.mxu0 %vm462_vm3, %v2161_v30  ;;  %v455_v61 = vpack.c.bf16 %v391_v59, %v389_v62  ;;  %v2064_v39 = vsel %vm891_vm4, %v2062_v27, %v2063_v48  ;;  %v2066_v16 = vsel %vm891_vm4, %v2063_v48, %v2065_v3  ;;  %v392_v50 = vrot.slane %v7325_v21, 1  ;;  %4712 = vmatprep.subr.bf16.mxu0 %v5422_v49 }
  0x51   : > { %v2067_v10 = vrot.slane %v7438_v35, 2  ;;  %v2162_v5 = vpack.c.bf16 %v2066_v16, %v2064_v39  ;;  %v393_v18 = vrot.slane %v7323_v58, 1  ;;  %v395_v15 = vrot.slane %v7324_v26, 1 }
  0x52   : > { %v7441_v30 = vunpack.c.h.bf16 %v5513_v7  ;;  %v7442_v27 = vunpack.c.l.bf16 %v5523_v28  ;;  %v7334_v48 = vunpack.c.l.bf16 %v5772_v23  ;;  %v7332_v3 = vunpack.c.h.bf16 %v5772_v23  ;;  %v5800_v7 = vld [vmem:[%s5360_s9 + $0xa8] sm:$0xff]  }
  0x53   : > { %v7328_v35 = vunpack.c.l.bf16 %v5775_v42  ;;  %v394_v39 = vsel %vm331_vm2, %v392_v50, %v393_v18  ;;  %v396_v16 = vsel %vm331_vm2, %v393_v18, %v395_v15  ;;  %v7443_v26 = vunpack.c.l.bf16 %v5548_v20  ;;  %7444 = vst [vmem:[#allocation8_spill] sm:$0xff] %v5800_v7 }
  0x54   : > { %v2068_v62 = vrot.slane %v7441_v30, 2  ;;  %v2070_v59 = vrot.slane %v7442_v27, 2  ;;  %v5803_v30 = vld [vmem:[%s5360_s9 + $0xb0] sm:$0x1]  ;;  %4497 = vmatmul.mubr.msk.bf16.gmra.mrb[20].mxu1 %vm462_vm3, %v455_v61  ;;  %v456_v28 = vpack.c.bf16 %v396_v16, %v394_v39  ;;  %v397_v50 = vrot.slane %v7334_v48, 1  ;;  %v5824_v16 = vld [vmem:[%s5360_s9 + $0xb4] sm:$0xff]  }
  0x55   : > { %v2072_v21 = vrot.slane %v7443_v26, 2  ;;  %7445 = vst [vmem:[#allocation9_spill] sm:$0xff] %v5803_v30  ;;  %v398_v18 = vrot.slane %v7332_v3, 1  ;;  %v400_v26 = vrot.slane %v7328_v35, 1  ;;  %v7446_v15 = vunpack.c.h.bf16 %v5548_v20  ;;  %7448 = vst [vmem:[#allocation10_spill] sm:$0xff] %v5824_v16  ;;  %v5873_v48 = vld [vmem:[%s5360_s9 + $0x78] sm:$0xff]  }
  0x56   : > { %v2069_v58 = vsel %vm891_vm4, %v2067_v10, %v2068_v62  ;;  %v2071_v27 = vsel %vm891_vm4, %v2068_v62, %v2070_v59  ;;  %v7447_v63 = vunpack.c.l.bf16 %v5556_v33  ;;  %4651 = vmatmul.mubr.msk.bf16.gmra.mrb[4].mxu0 %vm462_vm3, %v2162_v5  ;;  %4500 = vmatprep.mubr.msk.bf16.mxu1 %vm462_vm3, %v456_v28  ;;  %v7330_v59 = vunpack.c.l.bf16 %v5800_v7 }
  0x57   : > { %v2163_v10 = vpack.c.bf16 %v2071_v27, %v2069_v58  ;;  %v2073_v22 = vrot.slane %v7446_v15, 2  ;;  %v399_v62 = vsel %vm331_vm2, %v397_v50, %v398_v18  ;;  %v7329_v58 = vunpack.c.h.bf16 %v5800_v7  ;;  %v5833_v27 = vld [vmem:[%s5360_s9 + $0xbc] sm:$0x1] }
  0x58   : > { %v2075_v61 = vrot.slane %v7447_v63, 2  ;;  %v7331_v39 = vunpack.c.l.bf16 %v5803_v30  ;;  %v401_v20 = vsel %vm331_vm2, %v398_v18, %v400_v26  ;;  %v7449_v5 = vunpack.c.l.bf16 %v5587_v9  ;;  %7450 = vst [vmem:[#allocation11_spill] sm:$0xff] %v5833_v27 }
  0x59   : > { %4654 = vmatprep.mubr.msk.bf16.mxu0 %vm462_vm3, %v2163_v10  ;;  %v2074_v33 = vsel %vm891_vm4, %v2072_v21, %v2073_v22  ;;  %v457_v50 = vpack.c.bf16 %v401_v20, %v399_v62  ;;  %v402_v35 = vrot.slane %v7330_v59, 1  ;;  %v403_v10 = vrot.slane %v7329_v58, 1  ;;  %v5852_v59 = vld [vmem:[%s5360_s9 + $0x6c] sm:$0xff]  }
  0x5a   : > { %v2076_v63 = vsel %vm891_vm4, %v2073_v22, %v2075_v61  ;;  %v2077_v28 = vrot.slane %v7449_v5, 2  ;;  %v405_v21 = vrot.slane %v7331_v39, 1  ;;  %v7451_v18 = vunpack.c.h.bf16 %v5587_v9  ;;  %7454 = vst [vmem:[#allocation12_spill] sm:$0xff] %v5852_v59 }
  0x5b   : > { %v2164_v15 = vpack.c.bf16 %v2076_v63, %v2074_v33  ;;  %v7452_v26 = vunpack.c.l.bf16 %v5595_v56  ;;  %v7333_v5 = vunpack.c.l.bf16 %v5824_v16  ;;  %v404_v62 = vsel %vm331_vm2, %v402_v35, %v403_v10  ;;  %v5860_v35 = vld [vmem:[%s5360_s9 + $0x74] sm:$0x1] }
  0x5c   : > { %v2078_v22 = vrot.slane %v7451_v18, 2  ;;  %v7339_v20 = vunpack.c.h.bf16 %v5824_v16  ;;  %v7338_v33 = vunpack.c.l.bf16 %v5833_v27  ;;  %v7453_v63 = vunpack.c.l.bf16 %v5619_v36  ;;  %7455 = vst [vmem:[#allocation13_spill] sm:$0xff] %v5860_v35  ;;  %4501 = vmatmul.mubr.msk.bf16.gmra.mrb[24].mxu1 %vm462_vm3, %v457_v50 }
  0x5d   : > { %v2080_v61 = vrot.slane %v7452_v26, 2  ;;  %v406_v9 = vsel %vm331_vm2, %v403_v10, %v405_v21  ;;  %v407_v26 = vrot.slane %v7333_v5, 1  ;;  %v7337_v5 = vunpack.c.l.bf16 %v5852_v59 }
  0x5e   : > { %v2082_v58 = vrot.slane %v7453_v63, 2  ;;  %v2079_v18 = vsel %vm891_vm4, %v2077_v28, %v2078_v22  ;;  %v458_v39 = vpack.c.bf16 %v406_v9, %v404_v62  ;;  %v408_v63 = vrot.slane %v7339_v20, 1  ;;  %4655 = vmatmul.mubr.msk.bf16.gmra.mrb[8].mxu0 %vm462_vm3, %v2164_v15 }
  0x5f   : > { %v2081_v56 = vsel %vm891_vm4, %v2078_v22, %v2080_v61  ;;  %v410_v10 = vrot.slane %v7338_v33, 1  ;;  %v7456_v28 = vunpack.c.h.bf16 %v5619_v36  ;;  %v7457_v22 = vunpack.c.l.bf16 %v5628_v25  ;;  %v5885_v25 = vld [vmem:[%s5360_s9 + $0x84] sm:$0xff]  }
  0x60   : > { %v2165_v3 = vpack.c.bf16 %v2081_v56, %v2079_v18  ;;  %4504 = vmatprep.mubr.msk.bf16.mxu1 %vm462_vm3, %v458_v39  ;;  %v409_v50 = vsel %vm331_vm2, %v407_v26, %v408_v63  ;;  %v7336_v9 = vunpack.c.h.bf16 %v5852_v59  ;;  %v7335_v36 = vunpack.c.l.bf16 %v5860_v35  ;;  %v5882_v18 = vld [vmem:[%s5360_s9 + $0x80] sm:$0x1]  ;;  %7458 = vst [vmem:[#allocation14_spill] sm:$0xff] %v5885_v25  ;;  %v4233_v59 = vld [vmem:[%s7278_s1 + $0x10] sm:$0x3] }
  0x61   : > { %v2083_v21 = vrot.slane %v7456_v28, 2  ;;  %v2085_v61 = vrot.slane %v7457_v22, 2  ;;  %v411_v62 = vsel %vm331_vm2, %v408_v63, %v410_v10  ;;  %v2087_v39 = vrot.slane %v7337_v5, 2 }
  0x62   : > { %4658 = vmatprep.mubr.msk.bf16.mxu0 %vm462_vm3, %v2165_v3  ;;  %v459_v26 = vpack.c.bf16 %v411_v62, %v409_v50  ;;  %v2088_v63 = vrot.slane %v7336_v9, 2  ;;  %v2090_v10 = vrot.slane %v7335_v36, 2  ;;  %v7349_v28 = vunpack.c.l.bf16 %v5873_v48 }
  0x63   : > { %v2084_v56 = vsel %vm891_vm4, %v2082_v58, %v2083_v21  ;;  %v2086_v15 = vsel %vm891_vm4, %v2083_v21, %v2085_v61  ;;  %v7348_v22 = vunpack.c.h.bf16 %v5873_v48  ;;  %v7347_v3 = vunpack.c.l.bf16 %v5882_v18  ;;  %v5900_v58 = vld [vmem:[%s5360_s9 + $0x8c] sm:$0x1] }
  0x64   : > { %7459 = vst [vmem:[#allocation15_spill] sm:$0xff] %v5900_v58  ;;  %v7340_v21 = vunpack.c.l.bf16 %v5885_v25  ;;  %v2166_v61 = vpack.c.bf16 %v2086_v15, %v2084_v56  ;;  %v2089_v50 = vsel %vm891_vm4, %v2087_v39, %v2088_v63  ;;  %v2091_v62 = vsel %vm891_vm4, %v2088_v63, %v2090_v10  ;;  %4505 = vmatmul.mubr.msk.bf16.gmra.mrb[28].mxu1 %vm462_vm3, %v459_v26  ;;  %v5917_v39 = vld [vmem:[%s5360_s9 + $0x90] sm:$0xff]   ;;  %v5920_v63 = vld [vmem:[%s5360_s9 + $0x98] sm:$0x1]  ;;  %v5925_v10 = vld [vmem:[%s5360_s9 + $0x9c] sm:$0xff]  }
  0x65   : > { %v2092_v36 = vrot.slane %v7349_v28, 2  ;;  %v2167_v9 = vpack.c.bf16 %v2091_v62, %v2089_v50  ;;  %v2093_v5 = vrot.slane %v7348_v22, 2  ;;  %v2095_v33 = vrot.slane %v7347_v3, 2  ;;  %7460 = vst [vmem:[#allocation16_spill] sm:$0xff] %v5917_v39  ;;  %7461 = vst [vmem:[#allocation17_spill] sm:$0xff] %v5920_v63  ;;  %4510 = vmatprep.mubr.msk.bf16.mxu1 %vm462_vm3, %v5363_v11  ;;  %v5953_v28 = vld [vmem:[%s5360_s9 + $0xa8] sm:$0xff]  }
  0x66   : > { %v7344_v20 = vunpack.c.h.bf16 %v5885_v25  ;;  %v7345_v56 = vunpack.c.l.bf16 %v5900_v58  ;;  %v2097_v15 = vrot.slane %v7340_v21, 2  ;;  %7462 = vst [vmem:[#allocation18_spill] sm:$0xff] %v5925_v10  ;;  %4659 = vmatmul.mubr.msk.bf16.gmra.mrb[12].mxu0 %vm462_vm3, %v2166_v61  ;;  %v5934_v21 = vld [vmem:[%s5360_s9 + $0xa4] sm:$0x1]  ;;  %v7355_v47 = vunpack.c.l.bf16 %v5917_v39  ;;  %7464 = vst [vmem:[#allocation20_spill] sm:$0xff] %v5953_v28 }
  0x67   : > { %v2094_v26 = vsel %vm891_vm4, %v2092_v36, %v2093_v5  ;;  %7463 = vst [vmem:[#allocation19_spill] sm:$0xff] %v5934_v21  ;;  %4662 = vmatprep.mubr.msk.bf16.mxu0 %vm462_vm3, %v2167_v9  ;;  %v2096_v60 = vsel %vm891_vm4, %v2093_v5, %v2095_v33  ;;  %v7354_v31 = vunpack.c.h.bf16 %v5917_v39  ;;  %v7353_v61 = vunpack.c.l.bf16 %v5920_v63 }
  0x68   : > { %v2098_v50 = vrot.slane %v7344_v20, 2  ;;  %v2100_v62 = vrot.slane %v7345_v56, 2  ;;  %v7350_v56 = vunpack.c.l.bf16 %v5925_v10  ;;  %v7351_v55 = vunpack.c.h.bf16 %v5925_v10 }
  0x69   : > { %v7352_v9 = vunpack.c.l.bf16 %v5934_v21  ;;  %v2168_v5 = vpack.c.bf16 %v2096_v60, %v2094_v26  ;;  %v2102_v3 = vrot.slane %v7355_v47, 2  ;;  %v2103_v22 = vrot.slane %v7354_v31, 2  ;;  %v5964_v26 = vld [vmem:[%s5360_s9 + $0xb0] sm:$0x1] }
  0x6a   : > { %v2099_v36 = vsel %vm891_vm4, %v2097_v15, %v2098_v50  ;;  %v2101_v20 = vsel %vm891_vm4, %v2098_v50, %v2100_v62  ;;  %v2105_v15 = vrot.slane %v7353_v61, 2  ;;  %v2107_v50 = vrot.slane %v7350_v56, 2  ;;  %7465 = vst [vmem:[#allocation21_spill] sm:$0xff] %v5964_v26  ;;  %v5967_v62 = vld [vmem:[%s5360_s9 + $0xb4] sm:$0xff]  }
  0x6b   : > { %v2169_v33 = vpack.c.bf16 %v2101_v20, %v2099_v36  ;;  %v2108_v60 = vrot.slane %v7351_v55, 2  ;;  %v2110_v20 = vrot.slane %v7352_v9, 2  ;;  %7466 = vst [vmem:[#allocation22_spill] sm:$0xff] %v5967_v62  ;;  %v5973_v36 = vld [vmem:[%s5360_s9 + $0xbc] sm:$0x1]  ;;  %v2104_v9 = vsel %vm891_vm4, %v2102_v3, %v2103_v22 }
  0x6c   : > { %4511 = vmatmul.mubr.msk.bf16.vlgmr.msra.gmra.mrb[0].mxu1 %vm462_vm3, %v5376_v19  ;;  %7467 = vst [vmem:[#allocation23_spill] sm:$0xff] %v5973_v36  ;;  %v2106_v61 = vsel %vm891_vm4, %v2103_v22, %v2105_v15  ;;  %v7362_v31 = vunpack.c.l.bf16 %v5967_v62  ;;  %v7361_v56 = vunpack.c.h.bf16 %v5967_v62  ;;  %v7360_v55 = vunpack.c.l.bf16 %v5973_v36 }
  0x6d   : > { %4543 = vmatpush3.bf16.msra.mxu1 %v5414_v45  ;;  %4514 = vmatprep.mubr.msk.bf16.mxu1 %vm462_vm3, %v5411_v44  ;;  %v7363_v45 = vunpack.c.l.bf16 %v5964_v26  ;;  %v2109_v47 = vsel %vm891_vm4, %v2107_v50, %v2108_v60  ;;  %v2170_v21 = vpack.c.bf16 %v2106_v61, %v2104_v9  ;;  %v7469_v22 = vunpack.c.h.bf16 %v5953_v28  ;;  %v6002_v9 = vld [vmem:[%s5360_s9 + $0xc0] sm:$0xff]  }
  0x6e   : > { %4663 = vmatmul.mubr.msk.bf16.gmra.mrb[16].mxu0 %vm462_vm3, %v2168_v5  ;;  %v2111_v5 = vsel %vm891_vm4, %v2108_v60, %v2110_v20  ;;  %v2117_v50 = vrot.slane %v7362_v31, 2  ;;  %v2118_v60 = vrot.slane %v7361_v56, 2  ;;  %v2120_v61 = vrot.slane %v7360_v55, 2  ;;  %7470 = vst [vmem:[#allocation24_spill] sm:$0xff] %v6002_v9  ;;  %v6005_v20 = vld [vmem:[%s5360_s9 + $0xc8] sm:$0x1] }
  0x6f   : > { %4666 = vmatprep.mubr.msk.bf16.mxu0 %vm462_vm3, %v2169_v33  ;;  %v7468_v33 = vunpack.c.l.bf16 %v5953_v28  ;;  %v2113_v15 = vrot.slane %v7469_v22, 2  ;;  %v2171_v10 = vpack.c.bf16 %v2111_v5, %v2109_v47  ;;  %v2115_v63 = vrot.slane %v7363_v45, 2  ;;  %7471 = vst [vmem:[#allocation25_spill] sm:$0xff] %v6005_v20  ;;  %v4153_v28 = vld [vmem:[%s5360_s9 + $0x60] sm:$0xff]  }
  0x70   : > { %v7366_v22 = vunpack.c.h.bf16 %v6002_v9  ;;  %v7365_v55 = vunpack.c.l.bf16 %v6005_v20  ;;  %v2119_v56 = vsel %vm891_vm4, %v2117_v50, %v2118_v60  ;;  %v2121_v31 = vsel %vm891_vm4, %v2118_v60, %v2120_v61 }
  0x71   : > { %v2112_v3 = vrot.slane %v7468_v33, 2  ;;  %v2116_v5 = vsel %vm891_vm4, %v2113_v15, %v2115_v63  ;;  %v7367_v33 = vunpack.c.l.bf16 %v6002_v9  ;;  %v2173_v36 = vpack.c.bf16 %v2121_v31, %v2119_v56  ;;  %v4150_v9 = vld [vmem:[%s5360_s9 + $0x54] sm:$0xff]  }
  0x72   : > { %v2125_v63 = vrot.slane %v7365_v55, 2  ;;  %v7473_v31 = vunpack.c.h.bf16 %v5363_v11  ;;  %v7474_v50 = vunpack.c.l.bf16 %v5366_v12  ;;  %v4084_v55 = vld [vmem:[%s7278_s1 + $0x6] sm:$0x3]  ;;  %v7476_v12 = vunpack.c.h.bf16 %v5376_v19 }
  0x73   : > { %v2114_v47 = vsel %vm891_vm4, %v2112_v3, %v2113_v15  ;;  %v7472_v3 = vunpack.c.l.bf16 %v5363_v11  ;;  %v2485_v58 = vunpack.c.l.bf16 %v4150_v9  ;;  %v2486_v35 = vunpack.c.h.bf16 %v4150_v9 }
  0x74   : > { %4515 = vmatmul.mubr.msk.bf16.gmra.mrb[4].mxu1 %vm462_vm3, %v5450_v6  ;;  %v2172_v45 = vpack.c.bf16 %v2116_v5, %v2114_v47  ;;  %v893_v56 = vrot.slane %v7473_v31, 2  ;;  %v895_v60 = vrot.slane %v7474_v50, 2  ;;  %v4135_v5 = vld [vmem:[%s5360_s9 + $0x18] sm:$0xff]   ;;  %v898_v31 = vrot.slane %v7476_v12, 2 }
  0x75   : > { %4518 = vmatprep.mubr.msk.bf16.mxu1 %vm462_vm3, %v5492_v43  ;;  %v892_v15 = vrot.slane %v7472_v3, 2  ;;  %v7475_v3 = vunpack.c.l.bf16 %v5376_v19 }
  0x76   : > { %4667 = vmatmul.mubr.msk.bf16.gmra.mrb[20].mxu0 %vm462_vm3, %v2170_v21  ;;  %v2122_v21 = vrot.slane %v7367_v33, 2 }
  0x77   : > { %4670 = vmatprep.mubr.msk.bf16.mxu0 %vm462_vm3, %v2171_v10  ;;  %v2123_v10 = vrot.slane %v7366_v22, 2  ;;  %v897_v11 = vrot.slane %v7475_v3, 2  ;;  %v6057_v22 = vand.u32 %v4084_v55, %v5336_v4  ;;  %v4138_v55 = vld [vmem:[%s5360_s9 + $0x24] sm:$0xff]   ;;  %v2471_v3 = vunpack.c.h.bf16 %v4135_v5 }
  0x78   : > { %v2474_v12 = vunpack.c.h.bf16 %v4138_v55 }
  0x79   : > { %v2124_v61 = vsel %vm891_vm4, %v2122_v21, %v2123_v10  ;;  %v2126_v47 = vsel %vm891_vm4, %v2123_v10, %v2125_v63  ;;  %v6049_v21 = vsel %vm891_vm4, %v892_v15, %v893_v56  ;;  %v6052_v10 = vsel %vm891_vm4, %v893_v56, %v895_v60  ;;  %4576 = vmatprep.subr.bf16.mxu1 %v6057_v22  ;;  %v4141_v56 = vld [vmem:[%s5360_s9 + $0x30] sm:$0xff]   ;;  %v4144_v60 = vld [vmem:[%s5360_s9 + $0x3c] sm:$0xff]  }
  0x7a   : > { %v2174_v50 = vpack.c.bf16 %v2126_v47, %v2124_v61  ;;  %v6065_v19 = vsel %vm891_vm4, %v897_v11, %v898_v31  ;;  %v4147_v61 = vld [vmem:[%s5360_s9 + $0x48] sm:$0xff]   ;;  %v2470_v47 = vunpack.c.l.bf16 %v4135_v5  ;;  %v2473_v11 = vunpack.c.l.bf16 %v4138_v55 }
  0x7b   : > { %v2477_v63 = vunpack.c.h.bf16 %v4141_v56  ;;  %v2482_v26 = vunpack.c.l.bf16 %v4147_v61 }
  0x7c   : > { %4519 = vmatmul.mubr.msk.bf16.gmra.mrb[8].mxu1 %vm462_vm3, %v5526_v32  ;;  %v6111_v20 = vrot.slane %v2473_v11, 2 }
  0x7d   : > { %4522 = vmatprep.mubr.msk.bf16.mxu1 %vm462_vm3, %v5563_v40  ;;  %v6125_v39 = vrot.slane %v2477_v63, 1  ;;  %v6127_v25 = vrot.slane %v2477_v63, 2  ;;  %v6142_v63 = vrot.slane %v2482_v26, 2 }
  0x7e   : > { %4671 = vmatmul.mubr.msk.bf16.gmra.mrb[24].mxu0 %vm462_vm3, %v2172_v45  ;;  %v7477_v45 = vunpack.c.l.bf16 %v5389_v29 }
  0x7f   : > { %4674 = vmatprep.mubr.msk.bf16.mxu0 %vm462_vm3, %v2173_v36 }
  0x80   : > { %v900_v36 = vrot.slane %v7477_v45, 2  ;;  %v7478_v45 = vunpack.c.l.bf16 %v5873_v48 }
  0x82   : > { %v6068_v29 = vsel %vm891_vm4, %v898_v31, %v900_v36  ;;  %v2476_v31 = vunpack.c.l.bf16 %v4141_v56  ;;  %v6087_v36 = vrot.slane %v7478_v45, 1  ;;  %v6107_v45 = vrot.slane %v2471_v3, 2 }
  0x84   : > { %4523 = vmatmul.mubr.msk.bf16.gmra.mrb[12].mxu1 %vm462_vm3, %v5598_v41  ;;  %7479 = vst [vmem:[#allocation26_spill] sm:$0xff] %v6087_v36  ;;  %v6122_v62 = vrot.slane %v2476_v31, 2 }
  0x85   : > { %4526 = vmatprep.mubr.msk.bf16.mxu1 %vm462_vm3, %v5638_v2 }
  0x86   : > { %4675 = vmatmul.mubr.msk.bf16.gmra.mrb[28].mxu0 %vm462_vm3, %v2174_v50  ;;  %v7480_v50 = vunpack.c.h.bf16 %v5873_v48  ;;  %v6105_v48 = vrot.slane %v2471_v3, 1  ;;  %v2480_v3 = vunpack.c.h.bf16 %v4144_v60 }
  0x87   : > { %4680 = vmatprep.mubr.msk.bf16.mxu0 %vm462_vm3, %v4135_v5  ;;  %v6099_v5 = vrot.slane %v2470_v47, 1 }
  0x88   : > { %v6091_v33 = vrot.slane %v7480_v50, 1  ;;  %v6109_v50 = vrot.slane %v2473_v11, 1  ;;  %v2483_v11 = vunpack.c.h.bf16 %v4147_v61  ;;  %v6138_v42 = vrot.slane %v2480_v3, 2 }
  0x8a   : > { %7481 = vst [vmem:[#allocation27_spill] sm:$0xff] %v6091_v33  ;;  %v6148_v36 = vrot.slane %v2483_v11, 2 }
  0x8c   : > { %4527 = vmatmul.mubr.msk.bf16.gmra.mrb[16].mxu1 %vm462_vm3, %v5664_v14 }
  0x8d   : > { %4530 = vmatprep.mubr.msk.bf16.mxu1 %vm462_vm3, %v5684_v38 }
  0x8e   : > { %4681 = vmatmul.mubr.msk.bf16.vlgmr.msra.gmra.mrb[0].mxu0 %vm462_vm3, %v4138_v55  ;;  %v6101_v55 = vrot.slane %v2470_v47, 2  ;;  %v6118_v47 = vrot.slane %v2476_v31, 1  ;;  %v2489_v31 = vunpack.c.h.bf16 %v4153_v28 }
  0x8f   : > { %4713 = vmatpush3.bf16.msra.mxu0 %v5422_v49  ;;  %4684 = vmatprep.mubr.msk.bf16.mxu0 %vm462_vm3, %v4141_v56  ;;  %v7482_v49 = vunpack.c.l.bf16 %v5882_v18  ;;  %v6114_v18 = vrot.slane %v2474_v12, 1  ;;  %v2479_v56 = vunpack.c.l.bf16 %v4144_v60 }
  0x90   : > { %v6189_v33 = vrot.slane %v2489_v31, 2 }
  0x91   : > { %v6097_v15 = vrot.slane %v7482_v49, 1  ;;  %v6116_v49 = vrot.slane %v2474_v12, 2  ;;  %v2488_v12 = vunpack.c.l.bf16 %v4153_v28  ;;  %v6132_v27 = vrot.slane %v2479_v56, 1 }
  0x92   : > { %v6134_v30 = vrot.slane %v2479_v56, 2  ;;  %v6150_v56 = vrot.slane %v2485_v58, 1 }
  0x93   : > { %7483 = vst [vmem:[#allocation28_spill] sm:$0xff] %v6097_v15  ;;  %v6146_v15 = vrot.slane %v2483_v11, 1  ;;  %v6167_v11 = vld [vmem:[%s5360_s9 + $0x6c] sm:$0xff]  }
  0x94   : > { %4531 = vmatmul.mubr.msk.bf16.gmra.mrb[20].mxu1 %vm462_vm3, %v5713_v37  ;;  %7486 = vst [vmem:[#allocation31_spill] sm:$0xff] %v6150_v56  ;;  %7492 = vst [vmem:[#allocation37_spill] sm:$0xff] %v6167_v11  ;;  %v6170_v56 = vrot.slane %v2489_v31, 1 }
  0x95   : > { %4534 = vmatprep.mubr.msk.bf16.mxu1 %vm462_vm3, %v5741_v0  ;;  %7485 = vst [vmem:[#allocation30_spill] sm:$0xff] %v6146_v15  ;;  %v6164_v15 = vrot.slane %v2488_v12, 1 }
  0x96   : > { %4685 = vmatmul.mubr.msk.bf16.gmra.mrb[4].mxu0 %vm462_vm3, %v4144_v60  ;;  %v6136_v60 = vrot.slane %v2480_v3, 1  ;;  %v6155_v3 = vand.u32 %v4233_v59, %v5336_v4  ;;  %7493 = vst [vmem:[#allocation38_spill] sm:$0xff] %v6170_v56  ;;  %v6176_v59 = vld [vmem:[%s5360_s9 + $0x78] sm:$0xff]  }
  0x97   : > { %4688 = vmatprep.mubr.msk.bf16.mxu0 %vm462_vm3, %v4147_v61  ;;  %v6140_v61 = vrot.slane %v2482_v26, 1  ;;  %v6158_v26 = vrot.slane %v2486_v35, 1  ;;  %7491 = vst [vmem:[#allocation36_spill] sm:$0xff] %v6164_v15  ;;  %7495 = vst [vmem:[#allocation40_spill] sm:$0xff] %v6176_v59  ;;  %v7397_v4 = vunpack.c.l.bf16 %v6176_v59 }
  0x98   : > { %7487 = vst [vmem:[#allocation32_spill] sm:$0xff] %v6155_v3  ;;  %4746 = vmatprep.subr.bf16.mxu0 %v6155_v3  ;;  %v7500_v3 = vunpack.c.l.bf16 %v6167_v11 }
  0x99   : > { %7484 = vst [vmem:[#allocation29_spill] sm:$0xff] %v6140_v61  ;;  %7488 = vst [vmem:[#allocation33_spill] sm:$0xff] %v6158_v26  ;;  %v6160_v61 = vrot.slane %v2485_v58, 2  ;;  %v6181_v58 = vld [vmem:[%s5360_s9 + $0x84] sm:$0xff]  }
  0x9a   : > { %7496 = vst [vmem:[#allocation41_spill] sm:$0xff] %v6181_v58 }
  0x9b   : > { %7489 = vst [vmem:[#allocation34_spill] sm:$0xff] %v6160_v61  ;;  %v7502_v61 = vunpack.c.h.bf16 %v6167_v11 }
  0x9c   : > { %4535 = vmatmul.mubr.msk.bf16.gmra.mrb[24].mxu1 %vm462_vm3, %v5772_v23  ;;  %v6162_v23 = vrot.slane %v2486_v35, 2  ;;  %v6195_v35 = vrot.slane %v7500_v3, 2 }
  0x9d   : > { %4538 = vmatprep.mubr.msk.bf16.mxu1 %vm462_vm3, %v5800_v7  ;;  %v6172_v7 = vrot.slane %v2488_v12, 2  ;;  %v7499_v12 = vunpack.c.l.bf16 %v5433_v57  ;;  %v6204_v57 = vrot.slane %v7397_v4, 2  ;;  %v6235_v4 = vld [vmem:[%s5360_s9 + $0x9c] sm:$0xff]  }
  0x9e   : > { %4689 = vmatmul.mubr.msk.bf16.gmra.mrb[8].mxu0 %vm462_vm3, %v4150_v9  ;;  %7490 = vst [vmem:[#allocation35_spill] sm:$0xff] %v6162_v23  ;;  %v7497_v9 = vunpack.c.l.bf16 %v5411_v44  ;;  %7501 = vst [vmem:[#allocation42_spill] sm:$0xff] %v6195_v35  ;;  %v6199_v23 = vrot.slane %v7502_v61, 2 }
  0x9f   : > { %4692 = vmatprep.mubr.msk.bf16.mxu0 %vm462_vm3, %v4153_v28  ;;  %7494 = vst [vmem:[#allocation39_spill] sm:$0xff] %v6172_v7  ;;  %v7498_v28 = vunpack.c.h.bf16 %v5411_v44  ;;  %v905_v56 = vrot.slane %v7499_v12, 2  ;;  %v7398_v7 = vunpack.c.h.bf16 %v6176_v59  ;;  %7503 = vst [vmem:[#allocation43_spill] sm:$0xff] %v6204_v57  ;;  %v7506_v44 = vpack.c.bf16 %v6052_v10, %v6049_v21 }
  0xa0   : > { %v902_v15 = vrot.slane %v7497_v9, 2  ;;  %v7508_v57 = vunpack.c.h.bf16 %v5450_v6  ;;  %v7511_v21 = vunpack.c.h.bf16 %v5492_v43 }
  0xa1   : > { %v903_v26 = vrot.slane %v7498_v28, 2  ;;  %v6208_v31 = vrot.slane %v7398_v7, 2  ;;  %v6212_v28 = vld [vmem:[%s5360_s9 + $0x90] sm:$0xff]   ;;  %v7507_v7 = vunpack.c.l.bf16 %v5450_v6  ;;  %v7513_v6 = vunpack.c.l.bf16 %v5526_v32 }
  0xa2   : > { %7505 = vst [vmem:[#allocation45_spill] sm:$0xff] %v6212_v28  ;;  %v913_v10 = vrot.slane %v7511_v21, 2 }
  0xa3   : > { %7504 = vst [vmem:[#allocation44_spill] sm:$0xff] %v6208_v31  ;;  %v904_v61 = vsel %vm891_vm4, %v902_v15, %v903_v26  ;;  %v906_v3 = vsel %vm891_vm4, %v903_v26, %v905_v56  ;;  %v907_v9 = vrot.slane %v7507_v7, 2  ;;  %v908_v31 = vrot.slane %v7508_v57, 2 }
  0xa4   : > { %4539 = vmatmul.mubr.msk.bf16.gmra.mrb[28].mxu1 %vm462_vm3, %v5824_v16  ;;  %v7509_v16 = vunpack.c.l.bf16 %v5463_v24  ;;  %v7510_v56 = vunpack.c.l.bf16 %v5492_v43  ;;  %v7512_v7 = vunpack.c.l.bf16 %v5500_v53  ;;  %v917_v57 = vrot.slane %v7513_v6, 2 }
  0xa5   : > { %4544 = vmatprep.mubr.msk.bf16.mxu1 %vm462_vm3, %v7506_v44  ;;  %v7514_v24 = vunpack.c.h.bf16 %v5526_v32  ;;  %v7517_v43 = vunpack.c.h.bf16 %v6181_v58  ;;  %v7519_v53 = vunpack.c.l.bf16 %v5540_v52  ;;  %v7520_v6 = vunpack.c.l.bf16 %v6212_v28 }
  0xa6   : > { %v910_v15 = vrot.slane %v7509_v16, 2  ;;  %v912_v26 = vrot.slane %v7510_v56, 2  ;;  %4693 = vmatmul.mubr.msk.bf16.gmra.mrb[12].mxu0 %vm462_vm3, %v6167_v11  ;;  %v915_v44 = vrot.slane %v7512_v7, 2  ;;  %v7515_v56 = vunpack.c.l.bf16 %v6181_v58 }
  0xa7   : > { %v918_v16 = vrot.slane %v7514_v24, 2  ;;  %4696 = vmatprep.mubr.msk.bf16.mxu0 %vm462_vm3, %v6176_v59  ;;  %v6253_v21 = vrot.slane %v7517_v43, 2  ;;  %v920_v7 = vrot.slane %v7519_v53, 2  ;;  %v1006_v11 = vpack.c.bf16 %v906_v3, %v904_v61 }
  0xa8   : > { %v6249_v12 = vrot.slane %v7515_v56, 2  ;;  %v6259_v32 = vrot.slane %v7520_v6, 2  ;;  %v7521_v24 = vunpack.c.h.bf16 %v6212_v28  ;;  %v7409_v56 = vunpack.c.l.bf16 %v6235_v4 }
  0xa9   : > { %7518 = vst [vmem:[#allocation47_spill] sm:$0xff] %v6253_v21  ;;  %v911_v35 = vsel %vm891_vm4, %v908_v31, %v910_v15  ;;  %v6270_v21 = vld [vmem:[%s5360_s9 + $0xa8] sm:$0xff]   ;;  %v914_v52 = vsel %vm891_vm4, %v912_v26, %v913_v10  ;;  %v916_v61 = vsel %vm891_vm4, %v913_v10, %v915_v44  ;;  %v6276_v53 = vsel %vm891_vm4, %v917_v57, %v918_v16 }
  0xaa   : > { %7516 = vst [vmem:[#allocation46_spill] sm:$0xff] %v6249_v12  ;;  %v6263_v59 = vrot.slane %v7521_v24, 2  ;;  %v909_v12 = vsel %vm891_vm4, %v907_v9, %v908_v31  ;;  %v7408_v3 = vunpack.c.l.bf16 %v6270_v21  ;;  %v6279_v6 = vsel %vm891_vm4, %v918_v16, %v920_v7  ;;  %v6282_v9 = vld [vmem:[%s5360_s9 + $0xb4] sm:$0xff]  }
  0xab   : > { %v7522_v31 = vunpack.c.l.bf16 %v5563_v40  ;;  %v7523_v24 = vunpack.c.h.bf16 %v5563_v40  ;;  %v7524_v26 = vunpack.c.l.bf16 %v5579_v17  ;;  %v7525_v44 = vpack.c.bf16 %v6068_v29, %v6065_v19 }
  0xac   : > { %v1007_v57 = vpack.c.bf16 %v911_v35, %v909_v12  ;;  %v6296_v16 = vrot.slane %v7409_v56, 2  ;;  %v7526_v7 = vunpack.c.h.bf16 %v6235_v4  ;;  %v7407_v40 = vunpack.c.h.bf16 %v6270_v21  ;;  %v6311_v35 = vld [vmem:[%s5360_s9 + $0x20] sm:$0x1] }
  0xad   : > { %v922_v15 = vrot.slane %v7522_v31, 2  ;;  %v923_v43 = vrot.slane %v7523_v24, 2  ;;  %v925_v10 = vrot.slane %v7524_v26, 2  ;;  %4545 = vmatmul.mubr.msk.bf16.vlgmr.msra.gmra.mrb[0].mxu1 %vm462_vm3, %v7525_v44  ;;  %v1008_v17 = vpack.c.bf16 %v916_v61, %v914_v52  ;;  %v6323_v52 = vld [vmem:[%s5360_s9 + $0xc0] sm:$0xff]   ;;  %v6326_v61 = vld [vmem:[%s5360_s9 + $0x2c] sm:$0x1] }
  0xae   : > { %v6300_v31 = vrot.slane %v7526_v7, 2  ;;  %4577 = vmatpush3.bf16.msra.mxu1 %v6057_v22  ;;  %4548 = vmatprep.mubr.msk.bf16.mxu1 %vm462_vm3, %v1006_v11  ;;  %v6307_v19 = vrot.slane %v7408_v3, 2  ;;  %v7413_v29 = vunpack.c.l.bf16 %v6282_v9  ;;  %v6317_v12 = vrot.slane %v7407_v40, 2 }
  0xaf   : > { %4697 = vmatmul.mubr.msk.bf16.gmra.mrb[16].mxu0 %vm462_vm3, %v6181_v58  ;;  %4780 = vmatprep.subr.bf16.mxu1 %v5347_v8  ;;  %v924_v26 = vsel %vm891_vm4, %v922_v15, %v923_v43  ;;  %v926_v44 = vsel %vm891_vm4, %v923_v43, %v925_v10  ;;  %v7417_v7 = vunpack.c.l.bf16 %v6323_v52  ;;  %v7528_v40 = vunpack.c.l.bf16 %v5598_v41 }
  0xb0   : > { %4700 = vmatprep.mubr.msk.bf16.mxu0 %vm462_vm3, %v6212_v28  ;;  %v6333_v24 = vrot.slane %v7413_v29, 2  ;;  %v7529_v56 = vunpack.c.h.bf16 %v5598_v41  ;;  %v7530_v11 = vunpack.c.l.bf16 %v5611_v1  ;;  %v2472_v28 = vunpack.c.l.bf16 %v6311_v35  ;;  %v6356_v41 = vld [vmem:[%s5360_s9 + $0xcc] sm:$0xff]  }
  0xb1   : > { %v927_v3 = vrot.slane %v7528_v40, 2  ;;  %v7531_v29 = vunpack.c.h.bf16 %v6282_v9  ;;  %v1010_v10 = vpack.c.bf16 %v926_v44, %v924_v26  ;;  %v6353_v40 = vrot.slane %v7417_v7, 2 }
  0xb2   : > { %7527 = vst [vmem:[#allocation48_spill] sm:$0xff] %v6333_v24  ;;  %v928_v22 = vrot.slane %v7529_v56, 2  ;;  %v930_v8 = vrot.slane %v7530_v11, 2  ;;  %v7534_v1 = vunpack.c.l.bf16 %v5638_v2  ;;  %v7535_v35 = vunpack.c.h.bf16 %v5638_v2 }
  0xb3   : > { %v6347_v58 = vrot.slane %v7531_v29, 2  ;;  %7533 = vst [vmem:[#allocation50_spill] sm:$0xff] %v6353_v40  ;;  %v7536_v29 = vunpack.c.l.bf16 %v5650_v51  ;;  %v7537_v43 = vunpack.c.l.bf16 %v5664_v14  ;;  %v7538_v26 = vunpack.c.h.bf16 %v5664_v14  ;;  %v6371_v40 = vld [vmem:[%s5360_s9 + $0x38] sm:$0x1] }
  0xb4   : > { %v932_v56 = vrot.slane %v7534_v1, 2  ;;  %v933_v11 = vrot.slane %v7535_v35, 2  ;;  %v7539_v7 = vunpack.c.l.bf16 %v5674_v34  ;;  %v7540_v1 = vunpack.c.h.bf16 %v6323_v52 }
  0xb5   : > { %7532 = vst [vmem:[#allocation49_spill] sm:$0xff] %v6347_v58  ;;  %v935_v24 = vrot.slane %v7536_v29, 2  ;;  %v937_v58 = vrot.slane %v7537_v43, 2  ;;  %v938_v44 = vrot.slane %v7538_v26, 2  ;;  %4549 = vmatmul.mubr.msk.bf16.gmra.mrb[4].mxu1 %vm462_vm3, %v1007_v57  ;;  %v6379_v51 = vsel %vm891_vm4, %v927_v3, %v928_v22 }
  0xb6   : > { %v940_v15 = vrot.slane %v7539_v7, 2  ;;  %v6376_v2 = vrot.slane %v7540_v1, 2  ;;  %v6382_v35 = vsel %vm891_vm4, %v928_v22, %v930_v8  ;;  %v2831_v43 = vrot.slane %v2472_v28, 1  ;;  %4552 = vmatprep.mubr.msk.bf16.mxu1 %vm462_vm3, %v1008_v17 }
  0xb7   : > { %v7542_v14 = vunpack.c.l.bf16 %v6326_v61  ;;  %v7543_v7 = vunpack.c.l.bf16 %v5684_v38  ;;  %v7544_v57 = vunpack.c.h.bf16 %v5684_v38  ;;  %v7545_v1 = vunpack.c.l.bf16 %v5697_v54  ;;  %4701 = vmatmul.mubr.msk.bf16.gmra.mrb[20].mxu0 %vm462_vm3, %v6235_v4 }
  0xb8   : > { %7541 = vst [vmem:[#allocation51_spill] sm:$0xff] %v6376_v2  ;;  %v7420_v8 = vunpack.c.l.bf16 %v6356_v41  ;;  %v7419_v3 = vunpack.c.h.bf16 %v6356_v41  ;;  %v2478_v17 = vunpack.c.l.bf16 %v6371_v40  ;;  %4704 = vmatprep.mubr.msk.bf16.mxu0 %vm462_vm3, %v6270_v21  ;;  %v6401_v22 = vsel %vm891_vm4, %v932_v56, %v933_v11 }
  0xb9   : > { %v2836_v34 = vrot.slane %v7542_v14, 1  ;;  %v942_v29 = vrot.slane %v7543_v7, 2  ;;  %v943_v26 = vrot.slane %v7544_v57, 2  ;;  %v945_v2 = vrot.slane %v7545_v1, 2 }
  0xba   : > { %v6404_v38 = vsel %vm891_vm4, %v933_v11, %v935_v24  ;;  %v6407_v54 = vsel %vm891_vm4, %v937_v58, %v938_v44  ;;  %v6410_v14 = vsel %vm891_vm4, %v938_v44, %v940_v15  ;;  %v1011_v7 = vpack.c.bf16 %v6382_v35, %v6379_v51 }
  0xbb   : > { %v6416_v40 = vrot.slane %v7420_v8, 2  ;;  %v6421_v56 = vsel %vm331_vm2, %v6099_v5, %v6105_v48  ;;  %v6425_v24 = vsel %vm331_vm2, %v6105_v48, %v2831_v43  ;;  %v6430_v58 = vsel %vm331_vm2, %v6109_v50, %v6114_v18  ;;  %v6443_v5 = vld [vmem:[%s5360_s9 + $0x44] sm:$0x1] }
  0xbc   : > { %v6434_v15 = vsel %vm331_vm2, %v6114_v18, %v2836_v34  ;;  %v6437_v11 = vsel %vm891_vm4, %v942_v29, %v943_v26  ;;  %v6440_v44 = vsel %vm891_vm4, %v943_v26, %v945_v2  ;;  %v6447_v48 = vrot.slane %v7419_v3, 2 }
  0xbd   : > { %v1012_v50 = vpack.c.bf16 %v6404_v38, %v6401_v22  ;;  %v2841_v51 = vrot.slane %v2478_v17, 1  ;;  %v2940_v35 = vpack.c.bf16 %v6425_v24, %v6421_v56  ;;  %v7546_v2 = vunpack.c.l.bf16 %v5713_v37  ;;  %v6484_v24 = vld [vmem:[%s5360_s9 + $0x50] sm:$0x1] }
  0xbe   : > { %v7547_v34 = vunpack.c.h.bf16 %v5713_v37  ;;  %v7548_v57 = vunpack.c.l.bf16 %v5722_v13  ;;  %v7549_v1 = vpack.c.bf16 %v6279_v6, %v6276_v53  ;;  %v6472_v37 = vsel %vm331_vm2, %v6118_v47, %v6125_v39  ;;  %v7561_v38 = vld [vmem:[#allocation43_spill] sm:$0xff] }
  0xbf   : > { %v947_v43 = vrot.slane %v7546_v2, 2  ;;  %v2481_v13 = vunpack.c.l.bf16 %v6443_v5  ;;  %v6479_v53 = vsel %vm331_vm2, %v6132_v27, %v6136_v60  ;;  %v7550_v6 = vunpack.c.l.bf16 %v5741_v0  ;;  %4705 = vmatmul.mubr.msk.bf16.gmra.mrb[24].mxu0 %vm462_vm3, %v6282_v9 }
  0xc0   : > { %v948_v29 = vrot.slane %v7547_v34, 2  ;;  %v950_v26 = vrot.slane %v7548_v57, 2  ;;  %4553 = vmatmul.mubr.msk.bf16.gmra.mrb[8].mxu1 %vm462_vm3, %v7549_v1  ;;  %v6489_v47 = vsel %vm891_vm4, %v6101_v55, %v6107_v45  ;;  %v3205_v2 = vrot.slane %v2472_v28, 2  ;;  %v6500_v34 = vld [vmem:[%s5360_s9 + $0x5c] sm:$0x1]  ;;  %4708 = vmatprep.mubr.msk.bf16.mxu0 %vm462_vm3, %v6323_v52 }
  0xc1   : > { %4556 = vmatprep.mubr.msk.bf16.mxu1 %vm462_vm3, %v1010_v10  ;;  %v952_v56 = vrot.slane %v7550_v6, 2  ;;  %v6495_v10 = vsel %vm331_vm2, %v6125_v39, %v2841_v51  ;;  %v7551_v27 = vunpack.c.h.bf16 %v5741_v0  ;;  %v6505_v57 = vsel %vm891_vm4, %v6111_v20, %v6116_v49 }
  0xc2   : > { %v7552_v55 = vunpack.c.l.bf16 %v6326_v61  ;;  %v6512_v39 = vsel %vm891_vm4, %v947_v43, %v948_v29  ;;  %v6515_v0 = vsel %vm891_vm4, %v948_v29, %v950_v26  ;;  %v7553_v51 = vunpack.c.l.bf16 %v5749_v46  ;;  %v6525_v61 = vld [vmem:[%s5360_s9 + $0x68] sm:$0x1]  ;;  %v6540_v29 = vld [vmem:[%s5360_s9 + $0x74] sm:$0x1] }
  0xc3   : > { %v953_v5 = vrot.slane %v7551_v27, 2  ;;  %v6521_v6 = vsel %vm891_vm4, %v6107_v45, %v3205_v2  ;;  %v2484_v20 = vunpack.c.l.bf16 %v6484_v24  ;;  %v6536_v46 = vsel %vm891_vm4, %v6122_v62, %v6127_v25  ;;  %v6558_v27 = vld [vmem:[%s5360_s9 + $0x80] sm:$0x1]  ;;  %v7555_v26 = vld [vmem:[#allocation34_spill] sm:$0xff] }
  0xc4   : > { %v3210_v28 = vrot.slane %v7552_v55, 2  ;;  %v955_v1 = vrot.slane %v7553_v51, 2  ;;  %v7421_v45 = vunpack.c.l.bf16 %v6500_v34  ;;  %v3215_v24 = vrot.slane %v2478_v17, 2 }
  0xc5   : > { %v6547_v2 = vsel %vm891_vm4, %v6134_v30, %v6138_v42  ;;  %v3220_v55 = vrot.slane %v2481_v13, 2  ;;  %v6554_v62 = vsel %vm891_vm4, %v6142_v63, %v6148_v36  ;;  %v7422_v51 = vunpack.c.l.bf16 %v6525_v61  ;;  %v7554_v30 = vld [vmem:[#allocation35_spill] sm:$0xff] }
  0xc6   : > { %v6531_v43 = vsel %vm891_vm4, %v6116_v49, %v3210_v28  ;;  %v3225_v28 = vrot.slane %v2484_v20, 2  ;;  %v6562_v17 = vsel %vm891_vm4, %v6127_v25, %v3215_v24  ;;  %v6567_v3 = vsel %vm891_vm4, %v7555_v26, %v7554_v30 }
  0xc7   : > { %7556 = vst [vmem:[#allocation35_spill] sm:$0xff] %v6567_v3  ;;  %v3230_v8 = vrot.slane %v7421_v45, 2  ;;  %v7424_v63 = vunpack.c.l.bf16 %v6540_v29  ;;  %v6577_v22 = vsel %vm891_vm4, %v6138_v42, %v3220_v55  ;;  %v7558_v42 = vld [vmem:[#allocation39_spill] sm:$0xff]  ;;  %4709 = vmatmul.mubr.msk.bf16.gmra.mrb[28].mxu0 %vm462_vm3, %v6356_v41  ;;  %v2846_v26 = vrot.slane %v2481_v13, 1  ;;  %v6619_v45 = vld [vmem:[%s5360_s9 + $0x98] sm:$0x1] }
  0xc8   : > { %4557 = vmatmul.mubr.msk.bf16.gmra.mrb[12].mxu1 %vm462_vm3, %v1011_v7  ;;  %v6581_v25 = vsel %vm891_vm4, %v6148_v36, %v3225_v28  ;;  %v6595_v55 = vsel %vm891_vm4, %v7558_v42, %v6189_v33  ;;  %v7426_v36 = vunpack.c.l.bf16 %v6558_v27  ;;  %v3235_v7 = vrot.slane %v7422_v51, 2  ;;  %4714 = vmatprep.mubr.msk.bf16.mxu0 %vm462_vm3, %v2940_v35  ;;  %v7563_v42 = vld [vmem:[#allocation27_spill] sm:$0xff] }
  0xc9   : > { %4560 = vmatprep.mubr.msk.bf16.mxu1 %vm462_vm3, %v1012_v50  ;;  %v6590_v24 = vsel %vm891_vm4, %v7554_v30, %v3230_v8  ;;  %v6601_v50 = vld [vmem:[%s5360_s9 + $0x8c] sm:$0x1]  ;;  %v6616_v49 = vsel %vm891_vm4, %v952_v56, %v953_v5  ;;  %v3240_v28 = vrot.slane %v7424_v63, 2  ;;  %v956_v3 = vsel %vm891_vm4, %v953_v5, %v955_v1  ;;  %v7566_v1 = vld [vmem:[#allocation28_spill] sm:$0xff] }
  0xca   : > { %7557 = vst [vmem:[#allocation34_spill] sm:$0xff] %v6590_v24  ;;  %v7559_v8 = vld [vmem:[#allocation42_spill] sm:$0xff]  ;;  %v6625_v51 = vsel %vm891_vm4, %v6189_v33, %v3235_v7  ;;  %v3245_v13 = vrot.slane %v7426_v36, 2  ;;  %v6649_v24 = vld [vmem:[%s5360_s9 + $0xa4] sm:$0x1]  ;;  %v6660_v33 = vsel %vm331_vm2, %v7563_v42, %v7566_v1  ;;  %v7568_v36 = vld [vmem:[#allocation47_spill] sm:$0xff] }
  0xcb   : > { %v6610_v30 = vsel %vm891_vm4, %v7559_v8, %v6199_v23  ;;  %v7560_v8 = vld [vmem:[#allocation44_spill] sm:$0xff]  ;;  %v7564_v56 = vld [vmem:[#allocation26_spill] sm:$0xff]  ;;  %v6645_v7 = vsel %vm891_vm4, %v6199_v23, %v3240_v28  ;;  %v7573_v23 = vld [vmem:[#allocation29_spill] sm:$0xff] }
  0xcc   : > { %v6630_v35 = vsel %vm891_vm4, %v7561_v38, %v7560_v8  ;;  %v6637_v18 = vsel %vm331_vm2, %v7564_v56, %v7563_v42  ;;  %v6655_v5 = vsel %vm891_vm4, %v7560_v8, %v3245_v13  ;;  %7567 = vst [vmem:[#allocation44_spill] sm:$0xff] %v6660_v33  ;;  %v7569_v38 = vld [vmem:[#allocation46_spill] sm:$0xff]  ;;  %v7570_v56 = vunpack.c.l.bf16 %v6601_v50 }
  0xcd   : > { %7562 = vst [vmem:[#allocation39_spill] sm:$0xff] %v6630_v35  ;;  %7565 = vst [vmem:[#allocation42_spill] sm:$0xff] %v6637_v18  ;;  %v6669_v63 = vsel %vm891_vm4, %v7569_v38, %v7568_v36  ;;  %v7571_v13 = vpack.c.bf16 %v6410_v14, %v6407_v54  ;;  %v2847_v42 = vsel %vm331_vm2, %v6136_v60, %v2846_v26  ;;  %v7572_v1 = vld [vmem:[#allocation30_spill] sm:$0xff]  ;;  %v2851_v18 = vrot.slane %v2484_v20, 1  ;;  %v6695_v26 = vld [vmem:[%s5360_s9 + $0xb0] sm:$0x1] }
  0xce   : > { %v3250_v8 = vrot.slane %v7570_v56, 2  ;;  %v2850_v28 = vsel %vm331_vm2, %v7573_v23, %v7572_v1  ;;  %v6685_v38 = vsel %vm891_vm4, %v6259_v32, %v6263_v59  ;;  %v7574_v56 = vpack.c.bf16 %v6440_v44, %v6437_v11  ;;  %v7575_v54 = vld [vmem:[#allocation6_spill] sm:$0xff]  ;;  %v7580_v60 = vld [vmem:[#allocation7_spill] sm:$0xff] }
  0xcf   : > { %v7576_v14 = vunpack.c.l.bf16 %v7575_v54  ;;  %v7577_v32 = vunpack.c.l.bf16 %v6619_v45  ;;  %v7578_v11 = vpack.c.bf16 %v6434_v15, %v6430_v58  ;;  %v1016_v44 = vpack.c.bf16 %v956_v3, %v6616_v49  ;;  %v7584_v3 = vld [vmem:[#allocation8_spill] sm:$0xff] }
  0xd0   : > { %4561 = vmatmul.mubr.msk.bf16.gmra.mrb[16].mxu1 %vm462_vm3, %v7571_v13  ;;  %v6699_v20 = vsel %vm891_vm4, %v7568_v36, %v3250_v8  ;;  %v7581_v33 = vunpack.c.l.bf16 %v7580_v60  ;;  %v7582_v8 = vld [vmem:[#allocation32_spill] sm:$0xff]  ;;  %v2943_v58 = vpack.c.bf16 %v2847_v42, %v6479_v53  ;;  %v7585_v15 = vunpack.c.l.bf16 %v7584_v3  ;;  %v6753_v53 = vld [vmem:[%s5360_s9 + $0xc8] sm:$0x1] }
  0xd1   : > { %4564 = vmatprep.mubr.msk.bf16.mxu1 %vm462_vm3, %v7574_v56  ;;  %v957_v13 = vrot.slane %v7576_v14, 2  ;;  %v3255_v23 = vrot.slane %v7577_v32, 2  ;;  %4715 = vmatmul.mubr.msk.bf16.vlgmr.msra.gmra.mrb[0].mxu0 %vm462_vm3, %v7578_v11  ;;  %v7579_v56 = vunpack.c.h.bf16 %v7575_v54  ;;  %v7583_v32 = vpack.c.bf16 %v6495_v10, %v6472_v37  ;;  %v6723_v54 = vld [vmem:[%s5360_s9 + $0xbc] sm:$0x1] }
  0xd2   : > { %v960_v35 = vrot.slane %v7581_v33, 2  ;;  %4747 = vmatpush3.bf16.msra.mxu0 %v7582_v8  ;;  %v962_v49 = vrot.slane %v7585_v15, 2  ;;  %v7586_v60 = vunpack.c.l.bf16 %v6649_v24  ;;  %v2852_v37 = vsel %vm331_vm2, %v7572_v1, %v2851_v18 }
  0xd3   : > { %v958_v14 = vrot.slane %v7579_v56, 2  ;;  %4718 = vmatprep.mubr.msk.bf16.mxu0 %vm462_vm3, %v7583_v32  ;;  %v6727_v33 = vsel %vm891_vm4, %v6263_v59, %v3255_v23  ;;  %v7430_v10 = vunpack.c.l.bf16 %v6695_v26  ;;  %v6739_v42 = vsel %vm891_vm4, %v6296_v16, %v6300_v31  ;;  %v7589_v32 = vld [vmem:[#allocation9_spill] sm:$0xff] }
  0xd4   : > { %v3260_v11 = vrot.slane %v7586_v60, 2  ;;  %v7587_v56 = vunpack.c.l.bf16 %v6500_v34  ;;  %v7588_v23 = vunpack.c.h.bf16 %v7584_v3  ;;  %v7590_v15 = vunpack.c.l.bf16 %v7589_v32  ;;  %v7593_v32 = vld [vmem:[#allocation31_spill] sm:$0xff] }
  0xd5   : > { %v6760_v34 = vsel %vm891_vm4, %v6307_v19, %v6317_v12  ;;  %v3265_v3 = vrot.slane %v7430_v10, 2  ;;  %v7594_v16 = vpack.c.bf16 %v6515_v0, %v6512_v39  ;;  %v7595_v19 = vunpack.c.l.bf16 %v6525_v61  ;;  %v6776_v60 = vld [vmem:[%s5360_s9 + $0xd4] sm:$0x1] }
  0xd6   : > { %v2856_v59 = vrot.slane %v7587_v56, 1  ;;  %v963_v8 = vrot.slane %v7588_v23, 2  ;;  %v965_v18 = vrot.slane %v7590_v15, 2  ;;  %v6749_v1 = vsel %vm891_vm4, %v6300_v31, %v3260_v11  ;;  %7591 = vst [vmem:[#allocation43_spill] sm:$0xff] %v6760_v34  ;;  %v7592_v11 = vld [vmem:[#allocation33_spill] sm:$0xff]  ;;  %v7608_v10 = vld [vmem:[#allocation11_spill] sm:$0xff] }
  0xd7   : > { %v2944_v56 = vpack.c.bf16 %v2852_v37, %v2850_v28  ;;  %v959_v23 = vsel %vm891_vm4, %v957_v13, %v958_v14  ;;  %v961_v31 = vsel %vm891_vm4, %v958_v14, %v960_v35  ;;  %v2855_v15 = vsel %vm331_vm2, %v7593_v32, %v7592_v11  ;;  %v7596_v13 = vld [vmem:[#allocation49_spill] sm:$0xff]  ;;  %v7597_v35 = vld [vmem:[#allocation48_spill] sm:$0xff] }
  0xd8   : > { %4565 = vmatmul.mubr.msk.bf16.gmra.mrb[20].mxu1 %vm462_vm3, %v7594_v16  ;;  %v2861_v36 = vrot.slane %v7595_v19, 1  ;;  %v6780_v28 = vsel %vm891_vm4, %v6317_v12, %v3265_v3  ;;  %v6785_v14 = vsel %vm891_vm4, %v7597_v35, %v7596_v13  ;;  %v7599_v37 = vunpack.c.l.bf16 %v6723_v54  ;;  %v7600_v19 = vld [vmem:[#allocation38_spill] sm:$0xff]  ;;  %v7601_v35 = vld [vmem:[#allocation36_spill] sm:$0xff] }
  0xd9   : > { %7598 = vst [vmem:[#allocation27_spill] sm:$0xff] %v6785_v14  ;;  %4568 = vmatprep.mubr.msk.bf16.mxu1 %vm462_vm3, %v1016_v44  ;;  %v964_v39 = vsel %vm891_vm4, %v962_v49, %v963_v8  ;;  %v966_v0 = vsel %vm891_vm4, %v963_v8, %v965_v18  ;;  %v7431_v61 = vunpack.c.l.bf16 %v6753_v53  ;;  %4719 = vmatmul.mubr.msk.bf16.gmra.mrb[4].mxu0 %vm462_vm3, %v2943_v58  ;;  %v7603_v58 = vld [vmem:[#allocation51_spill] sm:$0xff]  ;;  %v7604_v18 = vld [vmem:[#allocation50_spill] sm:$0xff]  ;;  %v7609_v8 = vunpack.c.l.bf16 %v7608_v10 }
  0xda   : > { %v3270_v32 = vrot.slane %v7599_v37, 2  ;;  %v1017_v16 = vpack.c.bf16 %v961_v31, %v959_v23  ;;  %v2857_v3 = vsel %vm331_vm2, %v7592_v11, %v2856_v59  ;;  %v2860_v37 = vsel %vm331_vm2, %v7601_v35, %v7600_v19  ;;  %4722 = vmatprep.mubr.msk.bf16.mxu0 %vm462_vm3, %v2944_v56 }
  0xdb   : > { %v6812_v23 = vsel %vm891_vm4, %v7604_v18, %v7603_v58  ;;  %v3275_v59 = vrot.slane %v7431_v61, 2  ;;  %v1018_v31 = vpack.c.bf16 %v966_v0, %v964_v39  ;;  %v2862_v11 = vsel %vm331_vm2, %v7600_v19, %v2861_v36  ;;  %v7611_v19 = vld [vmem:[#allocation37_spill] sm:$0xff] }
  0xdc   : > { %v6803_v44 = vsel %vm891_vm4, %v7596_v13, %v3270_v32  ;;  %v7605_v13 = vld [vmem:[#allocation10_spill] sm:$0xff]  ;;  %v970_v49 = vrot.slane %v7609_v8, 2  ;;  %v6831_v39 = vsel %vm891_vm4, %v6416_v40, %v6447_v48  ;;  %v7610_v36 = vunpack.c.l.bf16 %v6776_v60 }
  0xdd   : > { %7602 = vst [vmem:[#allocation26_spill] sm:$0xff] %v6803_v44  ;;  %v7606_v32 = vunpack.c.l.bf16 %v7605_v13  ;;  %v7607_v35 = vunpack.c.h.bf16 %v7605_v13  ;;  %v6826_v18 = vsel %vm891_vm4, %v7603_v58, %v3275_v59  ;;  %v2945_v13 = vpack.c.bf16 %v2857_v3, %v2855_v15  ;;  %v7615_v44 = vld [vmem:[#allocation40_spill] sm:$0xff] }
  0xde   : > { %v3280_v0 = vrot.slane %v7610_v36, 2  ;;  %v3328_v10 = vpack.c.bf16 %v6826_v18, %v6812_v23  ;;  %v7613_v8 = vunpack.c.h.bf16 %v7611_v19  ;;  %v2946_v58 = vpack.c.bf16 %v2862_v11, %v2860_v37 }
  0xdf   : > { %v967_v56 = vrot.slane %v7606_v32, 2  ;;  %v968_v12 = vrot.slane %v7607_v35, 2  ;;  %v7612_v32 = vunpack.c.l.bf16 %v7611_v19  ;;  %v7614_v59 = vunpack.c.l.bf16 %v6540_v29 }
  0xe0   : > { %v2864_v35 = vrot.slane %v7613_v8, 1  ;;  %v6845_v40 = vsel %vm891_vm4, %v6447_v48, %v3280_v0  ;;  %v7616_v36 = vunpack.c.l.bf16 %v7615_v44  ;;  %v7617_v15 = vunpack.c.h.bf16 %v7615_v44  ;;  %4569 = vmatmul.mubr.msk.bf16.gmra.mrb[24].mxu1 %vm462_vm3, %v1017_v16  ;;  %v5177_v8 = vld [vmem:[%s5360_s9 + $0xc] sm:$0xff]  }
  0xe1   : > { %v2863_v61 = vrot.slane %v7612_v32, 1  ;;  %v2866_v14 = vrot.slane %v7614_v59, 1  ;;  %v7618_v19 = vunpack.c.l.bf16 %v6558_v27  ;;  %v3329_v29 = vpack.c.bf16 %v6845_v40, %v6831_v39  ;;  %4572 = vmatprep.mubr.msk.bf16.mxu1 %vm462_vm3, %v1018_v31  ;;  %4723 = vmatmul.mubr.msk.bf16.gmra.mrb[8].mxu0 %vm462_vm3, %v2945_v13  ;;  %v7619_v59 = vld [vmem:[#allocation41_spill] sm:$0xff] }
  0xe2   : > { %v2868_v34 = vrot.slane %v7616_v36, 1  ;;  %v2869_v3 = vrot.slane %v7617_v15, 1  ;;  %v969_v48 = vsel %vm891_vm4, %v967_v56, %v968_v12  ;;  %v971_v37 = vsel %vm891_vm4, %v968_v12, %v970_v49  ;;  %4726 = vmatprep.mubr.msk.bf16.mxu0 %vm462_vm3, %v2946_v58 }
  0xe3   : > { %v2871_v32 = vrot.slane %v7618_v19, 1  ;;  %v2865_v44 = vsel %vm331_vm2, %v2863_v61, %v2864_v35  ;;  %v2867_v16 = vsel %vm331_vm2, %v2864_v35, %v2866_v14  ;;  %v1019_v11 = vpack.c.bf16 %v971_v37, %v969_v48  ;;  %v7623_v14 = vld [vmem:[#allocation45_spill] sm:$0xff]  ;;  %v5178_v37 = vld [vmem:[%s5360_s9 + $0x18] sm:$0xff]  }
  0xe4   : > { %v2870_v27 = vsel %vm331_vm2, %v2868_v34, %v2869_v3  ;;  %v2947_v31 = vpack.c.bf16 %v2867_v16, %v2865_v44  ;;  %v7620_v56 = vunpack.c.l.bf16 %v7619_v59  ;;  %v7621_v12 = vunpack.c.h.bf16 %v7619_v59 }
  0xe5   : > { %v2872_v0 = vsel %vm331_vm2, %v2869_v3, %v2871_v32  ;;  %v7622_v61 = vunpack.c.l.bf16 %v6601_v50  ;;  %v7624_v35 = vunpack.c.l.bf16 %v7623_v14  ;;  %v7625_v34 = vunpack.c.h.bf16 %v7623_v14 }
  0xe6   : > { %v2873_v36 = vrot.slane %v7620_v56, 1  ;;  %v2874_v49 = vrot.slane %v7621_v12, 1  ;;  %v2948_v13 = vpack.c.bf16 %v2872_v0, %v2870_v27  ;;  %v7626_v19 = vunpack.c.l.bf16 %v6619_v45  ;;  %v5179_v27 = vld [vmem:[%s5360_s9 + $0x24] sm:$0xff]  }
  0xe7   : > { %v2876_v58 = vrot.slane %v7622_v61, 1  ;;  %v2878_v15 = vrot.slane %v7624_v35, 1  ;;  %v2879_v3 = vrot.slane %v7625_v34, 1  ;;  %v7627_v45 = vunpack.c.l.bf16 %v6235_v4  ;;  %v7633_v35 = vld [vmem:[#allocation5_spill] sm:$0xff] }
  0xe8   : > { %4573 = vmatmul.mubr.msk.bf16.gmra.mrb[28].mxu1 %vm462_vm3, %v1019_v11  ;;  %v2881_v32 = vrot.slane %v7626_v19, 1  ;;  %v2875_v50 = vsel %vm331_vm2, %v2873_v36, %v2874_v49  ;;  %v7629_v56 = vunpack.c.l.bf16 %v6649_v24  ;;  %v7630_v12 = vunpack.c.l.bf16 %v6270_v21 }
  0xe9   : > { %4578 = vmatprep.mubr.msk.bf16.mxu1 %vm462_vm3, %v5177_v8  ;;  %4727 = vmatmul.mubr.msk.bf16.gmra.mrb[12].mxu0 %vm462_vm3, %v2947_v31  ;;  %v2877_v48 = vsel %vm331_vm2, %v2874_v49, %v2876_v58  ;;  %v2880_v44 = vsel %vm331_vm2, %v2878_v15, %v2879_v3  ;;  %v2883_v0 = vrot.slane %v7627_v45, 1  ;;  %v7628_v8 = vunpack.c.h.bf16 %v6235_v4  ;;  %v5180_v15 = vld [vmem:[%s5360_s9 + $0x30] sm:$0xff]  }
  0xea   : > { %4730 = vmatprep.mubr.msk.bf16.mxu0 %vm462_vm3, %v2948_v13  ;;  %v2882_v16 = vsel %vm331_vm2, %v2879_v3, %v2881_v32  ;;  %v2949_v11 = vpack.c.bf16 %v2877_v48, %v2875_v50  ;;  %v2886_v36 = vrot.slane %v7629_v56, 1  ;;  %v2888_v49 = vrot.slane %v7630_v12, 1 }
  0xeb   : > { %v2884_v31 = vrot.slane %v7628_v8, 1  ;;  %v2950_v59 = vpack.c.bf16 %v2882_v16, %v2880_v44  ;;  %v7631_v13 = vunpack.c.h.bf16 %v6270_v21  ;;  %v7632_v58 = vunpack.c.l.bf16 %v6695_v26  ;;  %v5181_v26 = vld [vmem:[%s5360_s9 + $0x3c] sm:$0xff]  }
  0xec   : > { %v7634_v19 = vunpack.c.l.bf16 %v6282_v9  ;;  %v7635_v50 = vunpack.c.h.bf16 %v6282_v9  ;;  %v7636_v44 = vunpack.c.l.bf16 %v6723_v54  ;;  %v7638_v45 = vunpack.c.h.bf16 %v6323_v52 }
  0xed   : > { %v2889_v61 = vrot.slane %v7631_v13, 1  ;;  %v2891_v14 = vrot.slane %v7632_v58, 1  ;;  %v2885_v4 = vsel %vm331_vm2, %v2883_v0, %v2884_v31  ;;  %v2887_v24 = vsel %vm331_vm2, %v2884_v31, %v2886_v36  ;;  %v5183_v36 = vld [vmem:[%s5360_s9 + $0x54] sm:$0xff]  }
  0xee   : > { %v2951_v3 = vpack.c.bf16 %v2887_v24, %v2885_v4  ;;  %v2893_v32 = vrot.slane %v7634_v19, 1  ;;  %v2894_v48 = vrot.slane %v7635_v50, 1  ;;  %v2896_v16 = vrot.slane %v7636_v44, 1  ;;  %v5184_v24 = vld [vmem:[%s5360_s9 + $0x60] sm:$0xff]  }
  0xef   : > { %v2890_v21 = vsel %vm331_vm2, %v2888_v49, %v2889_v61  ;;  %v2892_v34 = vsel %vm331_vm2, %v2889_v61, %v2891_v14  ;;  %v2899_v0 = vrot.slane %v7638_v45, 1  ;;  %v7639_v8 = vunpack.c.l.bf16 %v6753_v53 }
  0xf0   : > { %4579 = vmatmul.mubr.msk.bf16.vlgmr.msra.gmra.mrb[0].mxu1 %vm462_vm3, %v5178_v37  ;;  %v2952_v37 = vpack.c.bf16 %v2892_v34, %v2890_v21  ;;  %v2895_v9 = vsel %vm331_vm2, %v2893_v32, %v2894_v48  ;;  %v2897_v54 = vsel %vm331_vm2, %v2894_v48, %v2896_v16  ;;  %v7640_v12 = vunpack.c.l.bf16 %v6356_v41  ;;  %v5186_v34 = vld [vmem:[%s5360_s9 + $0x78] sm:$0xff]   ;;  %v5188_v32 = vld [vmem:[%s5360_s9 + $0x90] sm:$0xff]   ;;  %v7651_v16 = vld [vmem:[#allocation13_spill] sm:$0xff] }
  0xf1   : > { %4781 = vmatpush3.bf16.msra.mxu1 %v7633_v35  ;;  %4582 = vmatprep.mubr.msk.bf16.mxu1 %vm462_vm3, %v5179_v27  ;;  %v7637_v27 = vunpack.c.l.bf16 %v6323_v52  ;;  %v2901_v31 = vrot.slane %v7639_v8, 1  ;;  %v2953_v53 = vpack.c.bf16 %v2897_v54, %v2895_v9  ;;  %v7641_v13 = vunpack.c.h.bf16 %v6356_v41  ;;  %v5192_v8 = vld [vmem:[%s5360_s9 + $0xc0] sm:$0xff]   ;;  %v7657_v9 = vld [vmem:[#allocation14_spill] sm:$0xff] }
  0xf2   : > { %4731 = vmatmul.mubr.msk.bf16.gmra.mrb[16].mxu0 %vm462_vm3, %v2949_v11  ;;  %v2903_v49 = vrot.slane %v7640_v12, 1  ;;  %v7642_v14 = vunpack.c.l.bf16 %v6776_v60  ;;  %v7643_v60 = vpack.c.bf16 %v6521_v6, %v6489_v47  ;;  %v7645_v19 = vpack.c.bf16 %v6562_v17, %v6536_v46  ;;  %v5189_v47 = vld [vmem:[%s5360_s9 + $0x9c] sm:$0xff]   ;;  %v5191_v46 = vld [vmem:[%s5360_s9 + $0xb4] sm:$0xff]  }
  0xf3   : > { %4734 = vmatprep.mubr.msk.bf16.mxu0 %vm462_vm3, %v2950_v59  ;;  %v2898_v11 = vrot.slane %v7637_v27, 1  ;;  %v5182_v59 = vld [vmem:[%s5360_s9 + $0x48] sm:$0xff]   ;;  %v2902_v56 = vsel %vm331_vm2, %v2899_v0, %v2901_v31  ;;  %v2904_v61 = vrot.slane %v7641_v13, 1  ;;  %v7646_v6 = vpack.c.bf16 %v6577_v22, %v6547_v2  ;;  %v7648_v17 = vld [vmem:[#allocation12_spill] sm:$0xff]  ;;  %v7654_v2 = vld [vmem:[#allocation35_spill] sm:$0xff] }
  0xf4   : > { %v2906_v35 = vrot.slane %v7642_v14, 1  ;;  %v7649_v50 = vunpack.c.l.bf16 %v7648_v17  ;;  %v7652_v27 = vunpack.c.l.bf16 %v7651_v16  ;;  %v7653_v22 = vld [vmem:[#allocation34_spill] sm:$0xff]  ;;  %v7658_v54 = vunpack.c.l.bf16 %v7657_v9  ;;  %v7663_v13 = vld [vmem:[#allocation39_spill] sm:$0xff]  ;;  %v7665_v14 = vld [vmem:[#allocation16_spill] sm:$0xff] }
  0xf5   : > { %v2900_v52 = vsel %vm331_vm2, %v2898_v11, %v2899_v0  ;;  %v2905_v4 = vsel %vm331_vm2, %v2903_v49, %v2904_v61  ;;  %v7656_v0 = vpack.c.bf16 %v6625_v51, %v6595_v55  ;;  %v7662_v51 = vpack.c.bf16 %v6645_v7, %v6610_v30 }
  0xf6   : > { %v2954_v58 = vpack.c.bf16 %v2902_v56, %v2900_v52  ;;  %v2907_v41 = vsel %vm331_vm2, %v2904_v61, %v2906_v35  ;;  %v1713_v48 = vrot.slane %v7649_v50, 1  ;;  %v1716_v11 = vrot.slane %v7652_v27, 1  ;;  %v7680_v27 = vld [vmem:[#allocation20_spill] sm:$0xff] }
  0xf7   : > { %v2955_v21 = vpack.c.bf16 %v2907_v41, %v2905_v4  ;;  %v7659_v52 = vunpack.c.h.bf16 %v7657_v9  ;;  %v7664_v61 = vpack.c.bf16 %v6655_v5, %v7663_v13  ;;  %v7666_v35 = vunpack.c.l.bf16 %v7665_v14  ;;  %v7693_v13 = vld [vmem:[#allocation24_spill] sm:$0xff] }
  0xf8   : > { %4583 = vmatmul.mubr.msk.bf16.gmra.mrb[4].mxu1 %vm462_vm3, %v5180_v15  ;;  %v5185_v15 = vld [vmem:[%s5360_s9 + $0x6c] sm:$0xff]   ;;  %v7667_v41 = vunpack.c.h.bf16 %v7665_v14  ;;  %v7695_v14 = vunpack.c.h.bf16 %v7693_v13 }
  0xf9   : > { %4586 = vmatprep.mubr.msk.bf16.mxu1 %vm462_vm3, %v5181_v26  ;;  %v5187_v26 = vld [vmem:[%s5360_s9 + $0x84] sm:$0xff]   ;;  %v1724_v56 = vrot.slane %v7659_v52, 1  ;;  %v1728_v4 = vrot.slane %v7666_v35, 1 }
  0xfa   : > { %4735 = vmatmul.mubr.msk.bf16.gmra.mrb[20].mxu0 %vm462_vm3, %v2951_v3  ;;  %v7644_v3 = vpack.c.bf16 %v6531_v43, %v6505_v57  ;;  %v7647_v57 = vpack.c.bf16 %v6581_v25, %v6554_v62  ;;  %v5190_v43 = vld [vmem:[%s5360_s9 + $0xa8] sm:$0xff]   ;;  %v7655_v62 = vpack.c.bf16 %v7653_v22, %v7654_v2  ;;  %v7682_v2 = vunpack.c.h.bf16 %v7680_v27 }
  0xfb   : > { %4738 = vmatprep.mubr.msk.bf16.mxu0 %vm462_vm3, %v2952_v37  ;;  %v7650_v37 = vunpack.c.h.bf16 %v7648_v17  ;;  %v7678_v17 = vpack.c.bf16 %v6699_v20, %v6669_v63  ;;  %v7683_v63 = vld [vmem:[#allocation21_spill] sm:$0xff]  ;;  %v1749_v35 = vrot.slane %v7695_v14, 1 }
  0xfc   : > { %v7684_v20 = vunpack.c.l.bf16 %v7683_v63 }
  0xfd   : > { %v1714_v44 = vrot.slane %v7650_v37, 1  ;;  %v7679_v37 = vpack.c.bf16 %v6727_v33, %v6685_v38  ;;  %v7688_v38 = vld [vmem:[#allocation23_spill] sm:$0xff] }
  0xfe   : > { %v7689_v33 = vunpack.c.l.bf16 %v7688_v38 }
  0xff   : > { %v1715_v25 = vsel %vm331_vm2, %v1713_v48, %v1714_v44  ;;  %v1717_v45 = vsel %vm331_vm2, %v1714_v44, %v1716_v11  ;;  %v7681_v11 = vunpack.c.l.bf16 %v7680_v27 }
 0x100   : > { %4587 = vmatmul.mubr.msk.bf16.gmra.mrb[8].mxu1 %vm462_vm3, %v5182_v59  ;;  %v1793_v31 = vpack.c.bf16 %v1717_v45, %v1715_v25  ;;  %v1723_v59 = vrot.slane %v7658_v54, 1  ;;  %v1741_v25 = vrot.slane %v7684_v20, 1  ;;  %v7685_v45 = vld [vmem:[#allocation22_spill] sm:$0xff]  ;;  %v1746_v54 = vrot.slane %v7689_v33, 1 }
 0x101   : > { %4590 = vmatprep.mubr.msk.bf16.mxu1 %vm462_vm3, %v5183_v36  ;;  %v7660_v36 = vld [vmem:[#allocation15_spill] sm:$0xff]  ;;  %v1738_v22 = vrot.slane %v7681_v11, 1 }
 0x102   : > { %4739 = vmatmul.mubr.msk.bf16.gmra.mrb[24].mxu0 %vm462_vm3, %v2953_v53  ;;  %v7661_v53 = vunpack.c.l.bf16 %v7660_v36  ;;  %v1725_v55 = vsel %vm331_vm2, %v1723_v59, %v1724_v56 }
 0x103   : > { %4742 = vmatprep.mubr.msk.bf16.mxu0 %vm462_vm3, %v2954_v58 }
 0x104   : > { %v1726_v12 = vrot.slane %v7661_v53, 1 }
 0x106   : > { %v1727_v49 = vsel %vm331_vm2, %v1724_v56, %v1726_v12  ;;  %v7690_v56 = vpack.c.bf16 %v6749_v1, %v6739_v42  ;;  %v7691_v12 = vld [vmem:[#allocation43_spill] sm:$0xff]  ;;  %v7696_v42 = vld [vmem:[#allocation25_spill] sm:$0xff] }
 0x107   : > { %v1795_v58 = vpack.c.bf16 %v1727_v49, %v1725_v55  ;;  %v7697_v1 = vunpack.c.l.bf16 %v7696_v42 }
 0x108   : > { %4591 = vmatmul.mubr.msk.bf16.gmra.mrb[12].mxu1 %vm462_vm3, %v5184_v24  ;;  %v1729_v24 = vrot.slane %v7667_v41, 1 }
 0x109   : > { %4594 = vmatprep.mubr.msk.bf16.mxu1 %vm462_vm3, %v5185_v15  ;;  %v7668_v15 = vld [vmem:[#allocation17_spill] sm:$0xff] }
 0x10a   : > { %4743 = vmatmul.mubr.msk.bf16.gmra.mrb[28].mxu0 %vm462_vm3, %v2955_v21  ;;  %v7669_v30 = vunpack.c.l.bf16 %v7668_v15  ;;  %v7670_v21 = vld [vmem:[#allocation18_spill] sm:$0xff]  ;;  %v7699_v15 = vld [vmem:[#allocation27_spill] sm:$0xff] }
 0x10b   : > { %4748 = vmatprep.mubr.msk.bf16.mxu0 %vm462_vm3, %v7643_v60  ;;  %v7671_v60 = vunpack.c.l.bf16 %v7670_v21 }
 0x10c   : > { %v1731_v7 = vrot.slane %v7669_v30, 1 }
 0x110   : > { %4595 = vmatmul.mubr.msk.bf16.gmra.mrb[16].mxu1 %vm462_vm3, %v5186_v34  ;;  %v1733_v34 = vrot.slane %v7671_v60, 1 }
 0x111   : > { %4598 = vmatprep.mubr.msk.bf16.mxu1 %vm462_vm3, %v5187_v26  ;;  %v7672_v26 = vunpack.c.h.bf16 %v7670_v21 }
 0x112   : > { %4749 = vmatmul.mubr.msk.bf16.vlgmr.msra.gmra.mrb[0].mxu0 %vm462_vm3, %v7644_v3 }
 0x113   : > { %4752 = vmatprep.mubr.msk.bf16.mxu0 %vm462_vm3, %v7645_v19  ;;  %v1734_v3 = vrot.slane %v7672_v26, 1  ;;  %v7673_v19 = vld [vmem:[#allocation19_spill] sm:$0xff] }
 0x114   : > { %v7674_v5 = vunpack.c.l.bf16 %v7673_v19 }
 0x115   : > { %v1735_v50 = vsel %vm331_vm2, %v1733_v34, %v1734_v3 }
 0x118   : > { %4599 = vmatmul.mubr.msk.bf16.gmra.mrb[20].mxu1 %vm462_vm3, %v5188_v32  ;;  %v1736_v32 = vrot.slane %v7674_v5, 1 }
 0x119   : > { %4602 = vmatprep.mubr.msk.bf16.mxu1 %vm462_vm3, %v5189_v47  ;;  %v7675_v47 = vld [vmem:[#allocation44_spill] sm:$0xff] }
 0x11a   : > { %4753 = vmatmul.mubr.msk.bf16.gmra.mrb[4].mxu0 %vm462_vm3, %v7646_v6  ;;  %v7676_v6 = vld [vmem:[#allocation42_spill] sm:$0xff]  ;;  %v1737_v48 = vsel %vm331_vm2, %v1734_v3, %v1736_v32 }
 0x11b   : > { %4756 = vmatprep.mubr.msk.bf16.mxu0 %vm462_vm3, %v7647_v57  ;;  %v7677_v57 = vpack.c.bf16 %v7675_v47, %v7676_v6  ;;  %v1797_v16 = vpack.c.bf16 %v1737_v48, %v1735_v50 }
 0x120   : > { %4603 = vmatmul.mubr.msk.bf16.gmra.mrb[24].mxu1 %vm462_vm3, %v5190_v43  ;;  %v1730_v43 = vsel %vm331_vm2, %v1728_v4, %v1729_v24  ;;  %v1751_v4 = vrot.slane %v7697_v1, 1 }
 0x121   : > { %4606 = vmatprep.mubr.msk.bf16.mxu1 %vm462_vm3, %v5191_v46  ;;  %v1732_v46 = vsel %vm331_vm2, %v1729_v24, %v1731_v7  ;;  %v7698_v24 = vld [vmem:[#allocation26_spill] sm:$0xff] }
 0x122   : > { %4757 = vmatmul.mubr.msk.bf16.gmra.mrb[8].mxu0 %vm462_vm3, %v7655_v62  ;;  %v1796_v44 = vpack.c.bf16 %v1732_v46, %v1730_v43  ;;  %v1739_v62 = vrot.slane %v7682_v2, 1  ;;  %v7700_v30 = vpack.c.bf16 %v7698_v24, %v7699_v15  ;;  %v7114_v43 = vld [vmem:[%s7279_s2] ss:$0 sm:$0xff] }
 0x123   : > { %4760 = vmatprep.mubr.msk.bf16.mxu0 %vm462_vm3, %v7656_v0  ;;  %v7686_v0 = vunpack.c.l.bf16 %v7685_v45 }
 0x124   : > { %v1740_v59 = vsel %vm331_vm2, %v1738_v22, %v1739_v62  ;;  %v1742_v52 = vsel %vm331_vm2, %v1739_v62, %v1741_v25 }
 0x125   : > { %v1798_v55 = vpack.c.bf16 %v1742_v52, %v1740_v59 }
 0x128   : > { %4607 = vmatmul.mubr.msk.bf16.gmra.mrb[28].mxu1 %vm462_vm3, %v5192_v8  ;;  %v1743_v8 = vrot.slane %v7686_v0, 1 }
 0x129   : > { %4628 = vmatprep.mubr.msk.bf16.mxu1 %vm462_vm3, %v1793_v31  ;;  %v7687_v31 = vunpack.c.h.bf16 %v7685_v45 }
 0x12a   : > { %4761 = vmatmul.mubr.msk.bf16.gmra.mrb[12].mxu0 %vm462_vm3, %v7662_v51  ;;  %v7692_v51 = vpack.c.bf16 %v6780_v28, %v7691_v12  ;;  %v1752_v28 = vsel %vm331_vm2, %v1749_v35, %v1751_v4 }
 0x12b   : > { %4764 = vmatprep.mubr.msk.bf16.mxu0 %vm462_vm3, %v7664_v61  ;;  %v1744_v9 = vrot.slane %v7687_v31, 1  ;;  %v7694_v61 = vunpack.c.l.bf16 %v7693_v13 }
 0x12d   : > { %v1745_v36 = vsel %vm331_vm2, %v1743_v8, %v1744_v9  ;;  %v1747_v53 = vsel %vm331_vm2, %v1744_v9, %v1746_v54 }
 0x12e   : > { %v1799_v49 = vpack.c.bf16 %v1747_v53, %v1745_v36 }
 0x130   : > { %4629 = vmatmul.mubr.msk.bf16.vlgmr.msra.gmra.mrb[16].mxu1 %vm462_vm3, %v7677_v57 }
 0x131   : > { %4632 = vmatprep.mubr.msk.bf16.mxu1 %vm462_vm3, %v1795_v58  ;;  %v1748_v58 = vrot.slane %v7694_v61, 1 }
 0x132   : > { %4765 = vmatmul.mubr.msk.bf16.gmra.mrb[16].mxu0 %vm462_vm3, %v7678_v17 }
 0x133   : > { %4768 = vmatprep.mubr.msk.bf16.mxu0 %vm462_vm3, %v7679_v37  ;;  %v1750_v41 = vsel %vm331_vm2, %v1748_v58, %v1749_v35 }
 0x134   : > { %v1800_v7 = vpack.c.bf16 %v1752_v28, %v1750_v41 }
 0x138   : > { %4633 = vmatmul.mubr.msk.bf16.gmra.mrb[20].mxu1 %vm462_vm3, %v1796_v44 }
 0x139   : > { %4636 = vmatprep.mubr.msk.bf16.mxu1 %vm462_vm3, %v1797_v16 }
 0x13a   : > { %4769 = vmatmul.mubr.msk.bf16.gmra.mrb[20].mxu0 %vm462_vm3, %v7690_v56 }
 0x13b   : > { %4772 = vmatprep.mubr.msk.bf16.mxu0 %vm462_vm3, %v7692_v51 }
 0x140   : > { %4637 = vmatmul.mubr.msk.bf16.gmra.mrb[24].mxu1 %vm462_vm3, %v1798_v55 }
 0x141   : > { %4640 = vmatprep.mubr.msk.bf16.mxu1 %vm462_vm3, %v1799_v49 }
 0x142   : > { %4773 = vmatmul.mubr.msk.bf16.gmra.mrb[24].mxu0 %vm462_vm3, %v7700_v30 }
 0x143   : > { %4776 = vmatprep.mubr.msk.bf16.mxu0 %vm462_vm3, %v3328_v10 }
 0x148   : > { %4641 = vmatmul.mubr.msk.bf16.gmra.mrb[28].mxu1 %vm462_vm3, %v1800_v7 }
 0x14a   : > { %4777 = vmatmul.mubr.msk.bf16.gmra.mrb[28].mxu0 %vm462_vm3, %v3329_v29 }
 0x1c3   : > { %v4580_v21 = vpop.f32.mrb[0].mxu1 }
 0x1c4   : > { %v1466_v60 = vpop.f32.mrb[1].mxu1 }
 0x1c5   : > { %v4581_v34 = vpop.f32.mrb[2].mxu1 }
 0x1c6   : > { %v1469_v26 = vpop.f32.mrb[3].mxu1 }
 0x1cb   : > { %v4584_v3 = vpop.f32.mrb[4].mxu1 }
 0x1cc   : > { %v1482_v19 = vpop.f32.mrb[5].mxu1 }
 0x1cd   : > { %v4585_v5 = vpop.f32.mrb[6].mxu1 }
 0x1ce   : > { %v1485_v32 = vpop.f32.mrb[7].mxu1 }
 0x1d3   : > { %v7095_v23 = vpop.f32.mrb[8].mxu1 }
 0x1d4   : > { %v7097_v18 = vpop.f32.mrb[9].mxu1 }
 0x1d5   : > { %v7099_v10 = vpop.f32.mrb[10].mxu1 }
 0x1d6   : > { %v7101_v47 = vpop.f32.mrb[11].mxu1 }
 0x1db   : > { %v7103_v39 = vpop.f32.mrb[12].mxu1 }
 0x1dc   : > { %v7105_v40 = vpop.f32.mrb[13].mxu1 }
 0x1dd   : > { %v7107_v29 = vpop.f32.mrb[14].mxu1 }
 0x1de   : > { %v7109_v6 = vpop.f32.mrb[15].mxu1 }
 0x1e5   : > { %v4750_v57 = vpop.f32.mrb[0].mxu0 }
 0x1e6   : > { %v4782_v46 = vadd.f32 %v4750_v57, %v4580_v21  ;;  %v3417_v17 = vpop.f32.mrb[1].mxu0 }
 0x1e7   : > { %v4783_v50 = vadd.f32 %v3417_v17, %v1466_v60  ;;  %v4751_v48 = vpop.f32.mrb[2].mxu0 }
 0x1e8   : > { %v3585_v37 = vadd.f32 %v4782_v46, %v7114_v43  ;;  %v4784_v44 = vadd.f32 %v4751_v48, %v4581_v34  ;;  %v3420_v16 = vpop.f32.mrb[3].mxu0 }
 0x1e9   : > { %v3583_v27 = vadd.f32 %v4783_v50, %v7114_v43  ;;  %v4785_v11 = vadd.f32 %v3420_v16, %v1469_v26 }
 0x1ea   : > { %vm3617_vm5 = vcmp.ge.f32.partialorder %v3585_v37, 0.0  ;;  %v3649_v22 = vmul.f32 0.1, %v3585_v37  ;;  %v3586_v2 = vadd.f32 %v4784_v44, %v7114_v43 }
 0x1eb   : > { %vm3615_vm6 = vcmp.ge.f32.partialorder %v3583_v27, 0.0  ;;  %v3647_v62 = vmul.f32 0.1, %v3583_v27  ;;  %v3584_v63 = vadd.f32 %v4785_v11, %v7114_v43 }
 0x1ec   : > { %v3681_v20 = vsel %vm3617_vm5, %v3585_v37, %v3649_v22  ;;  %vm3618_vm8 = vcmp.ge.f32.partialorder %v3586_v2, 0.0  ;;  %v3650_v25 = vmul.f32 0.1, %v3586_v2 }
 0x1ed   : > { %v4290_v45 = vpack.c.bf16 %v3681_v20, %v3681_v20  ;;  %v3679_v0 = vsel %vm3615_vm6, %v3583_v27, %v3647_v62  ;;  %vm3616_vm9 = vcmp.ge.f32.partialorder %v3584_v63, 0.0  ;;  %v3648_v8 = vmul.f32 0.1, %v3584_v63  ;;  %v4754_v31 = vpop.f32.mrb[4].mxu0 }
 0x1ee   : > { %v4288_v9 = vpack.c.bf16 %v3679_v0, %v3679_v0  ;;  %v3682_v38 = vsel %vm3618_vm8, %v3586_v2, %v3650_v25  ;;  %v4786_v33 = vadd.f32 %v4754_v31, %v4584_v3  ;;  %v3433_v54 = vpop.f32.mrb[5].mxu0 }
 0x1ef   : > { %3842 = vst.msk [vmem:[%s7123_s6 + $0x8] sm:$0xf] %vm3839_vm7, %v4290_v45  ;;  %v4291_v59 = vpack.c.bf16 %v3682_v38, %v3682_v38  ;;  %v3680_v52 = vsel %vm3616_vm9, %v3584_v63, %v3648_v8  ;;  %v4787_v56 = vadd.f32 %v3433_v54, %v1482_v19  ;;  %v4755_v36 = vpop.f32.mrb[6].mxu0 }
 0x1f0   : > { %3840 = vst.msk [vmem:[%s7123_s6] sm:$0xf] %vm3839_vm7, %v4288_v9  ;;  %v4289_v53 = vpack.c.bf16 %v3680_v52, %v3680_v52  ;;  %v3589_v12 = vadd.f32 %v4786_v33, %v7114_v43  ;;  %v4788_v51 = vadd.f32 %v4755_v36, %v4585_v5  ;;  %v3436_v55 = vpop.f32.mrb[7].mxu0 }
 0x1f1   : > { %3843 = vst.msk [vmem:[%s7123_s6 + $0xc] sm:$0xf] %vm3839_vm7, %v4291_v59  ;;  %v3587_v49 = vadd.f32 %v4787_v56, %v7114_v43  ;;  %v4789_v13 = vadd.f32 %v3436_v55, %v1485_v32 }
 0x1f2   : > { %3841 = vst.msk [vmem:[%s7123_s6 + $0x4] sm:$0xf] %vm3839_vm7, %v4289_v53  ;;  %vm3621_vm10 = vcmp.ge.f32.partialorder %v3589_v12, 0.0  ;;  %v3653_v61 = vmul.f32 0.1, %v3589_v12  ;;  %v3590_v58 = vadd.f32 %v4788_v51, %v7114_v43 }
 0x1f3   : > { %vm3619_vm11 = vcmp.ge.f32.partialorder %v3587_v49, 0.0  ;;  %v3651_v14 = vmul.f32 0.1, %v3587_v49  ;;  %v3588_v35 = vadd.f32 %v4789_v13, %v7114_v43 }
 0x1f4   : > { %v3685_v42 = vsel %vm3621_vm10, %v3589_v12, %v3653_v61  ;;  %vm3622_vm12 = vcmp.ge.f32.partialorder %v3590_v58, 0.0  ;;  %v3654_v1 = vmul.f32 0.1, %v3590_v58 }
 0x1f5   : > { %v4294_v4 = vpack.c.bf16 %v3685_v42, %v3685_v42  ;;  %v3683_v41 = vsel %vm3619_vm11, %v3587_v49, %v3651_v14  ;;  %vm3620_vm13 = vcmp.ge.f32.partialorder %v3588_v35, 0.0  ;;  %v3652_v28 = vmul.f32 0.1, %v3588_v35  ;;  %v4758_v24 = vpop.f32.mrb[8].mxu0 }
 0x1f6   : > { %v4292_v15 = vpack.c.bf16 %v3683_v41, %v3683_v41  ;;  %v3686_v30 = vsel %vm3622_vm12, %v3590_v58, %v3654_v1  ;;  %v4790_v7 = vadd.f32 %v4758_v24, %v7095_v23  ;;  %v3449_v21 = vpop.f32.mrb[9].mxu0 }
 0x1f7   : > { %3846 = vst.msk [vmem:[%s7123_s6 + $0x18] sm:$0xf] %vm3839_vm7, %v4294_v4  ;;  %v4295_v60 = vpack.c.bf16 %v3686_v30, %v3686_v30  ;;  %v3684_v34 = vsel %vm3620_vm13, %v3588_v35, %v3652_v28  ;;  %v4791_v26 = vadd.f32 %v3449_v21, %v7097_v18  ;;  %v4759_v3 = vpop.f32.mrb[10].mxu0 }
 0x1f8   : > { %3844 = vst.msk [vmem:[%s7123_s6 + $0x10] sm:$0xf] %vm3839_vm7, %v4292_v15  ;;  %v4293_v19 = vpack.c.bf16 %v3684_v34, %v3684_v34  ;;  %v3593_v5 = vadd.f32 %v4790_v7, %v7114_v43  ;;  %v4792_v32 = vadd.f32 %v4759_v3, %v7099_v10  ;;  %v3452_v57 = vpop.f32.mrb[11].mxu0 }
 0x1f9   : > { %3847 = vst.msk [vmem:[%s7123_s6 + $0x1c] sm:$0xf] %vm3839_vm7, %v4295_v60  ;;  %v3591_v23 = vadd.f32 %v4791_v26, %v7114_v43  ;;  %v4793_v46 = vadd.f32 %v3452_v57, %v7101_v47 }
 0x1fa   : > { %3845 = vst.msk [vmem:[%s7123_s6 + $0x14] sm:$0xf] %vm3839_vm7, %v4293_v19  ;;  %vm3625_vm14 = vcmp.ge.f32.partialorder %v3593_v5, 0.0  ;;  %v3657_v17 = vmul.f32 0.1, %v3593_v5  ;;  %v3594_v18 = vadd.f32 %v4792_v32, %v7114_v43 }
 0x1fb   : > { %vm3623_vm15 = vcmp.ge.f32.partialorder %v3591_v23, 0.0  ;;  %v3655_v50 = vmul.f32 0.1, %v3591_v23  ;;  %v3592_v48 = vadd.f32 %v4793_v46, %v7114_v43 }
 0x1fc   : > { %v3689_v37 = vsel %vm3625_vm14, %v3593_v5, %v3657_v17  ;;  %vm3626_vm0 = vcmp.ge.f32.partialorder %v3594_v18, 0.0  ;;  %v3658_v10 = vmul.f32 0.1, %v3594_v18 }
 0x1fd   : > { %v4298_v44 = vpack.c.bf16 %v3689_v37, %v3689_v37  ;;  %v3687_v16 = vsel %vm3623_vm15, %v3591_v23, %v3655_v50  ;;  %vm3624_vm1 = vcmp.ge.f32.partialorder %v3592_v48, 0.0  ;;  %v3656_v27 = vmul.f32 0.1, %v3592_v48  ;;  %v4762_v47 = vpop.f32.mrb[12].mxu0 }
 0x1fe   : > { %v4296_v11 = vpack.c.bf16 %v3687_v16, %v3687_v16  ;;  %v3690_v22 = vsel %vm3626_vm0, %v3594_v18, %v3658_v10  ;;  %v4794_v2 = vadd.f32 %v4762_v47, %v7103_v39  ;;  %v3465_v62 = vpop.f32.mrb[13].mxu0 }
 0x1ff   : > { %3850 = vst.msk [vmem:[%s7123_s6 + $0x28] sm:$0xf] %vm3839_vm7, %v4298_v44  ;;  %v4299_v63 = vpack.c.bf16 %v3690_v22, %v3690_v22  ;;  %v3688_v20 = vsel %vm3624_vm1, %v3592_v48, %v3656_v27  ;;  %v4795_v25 = vadd.f32 %v3465_v62, %v7105_v40  ;;  %v4763_v45 = vpop.f32.mrb[14].mxu0 }
 0x200   : > { %3848 = vst.msk [vmem:[%s7123_s6 + $0x20] sm:$0xf] %vm3839_vm7, %v4296_v11  ;;  %v4297_v0 = vpack.c.bf16 %v3688_v20, %v3688_v20  ;;  %v3597_v8 = vadd.f32 %v4794_v2, %v7114_v43  ;;  %v4796_v31 = vadd.f32 %v4763_v45, %v7107_v29  ;;  %v3468_v9 = vpop.f32.mrb[15].mxu0 }
 0x201   : > { %3851 = vst.msk [vmem:[%s7123_s6 + $0x2c] sm:$0xf] %vm3839_vm7, %v4299_v63  ;;  %v3595_v39 = vadd.f32 %v4795_v25, %v7114_v43  ;;  %v4797_v38 = vadd.f32 %v3468_v9, %v7109_v6 }
 0x202   : > { %3849 = vst.msk [vmem:[%s7123_s6 + $0x24] sm:$0xf] %vm3839_vm7, %v4297_v0  ;;  %vm3629_vm2 = vcmp.ge.f32.partialorder %v3597_v8, 0.0  ;;  %v3661_v33 = vmul.f32 0.1, %v3597_v8  ;;  %v3598_v40 = vadd.f32 %v4796_v31, %v7114_v43 }
 0x203   : > { %vm3627_vm3 = vcmp.ge.f32.partialorder %v3595_v39, 0.0  ;;  %v3659_v54 = vmul.f32 0.1, %v3595_v39  ;;  %v3596_v59 = vadd.f32 %v4797_v38, %v7114_v43  ;;  %v4630_v52 = vpop.f32.mrb[16].mxu1 }
 0x204   : > { %v3693_v29 = vsel %vm3629_vm2, %v3597_v8, %v3661_v33  ;;  %vm3630_vm4 = vcmp.ge.f32.partialorder %v3598_v40, 0.0  ;;  %v3662_v56 = vmul.f32 0.1, %v3598_v40  ;;  %v1952_v36 = vpop.f32.mrb[17].mxu1 }
 0x205   : > { %v4302_v53 = vpack.c.bf16 %v3693_v29, %v3693_v29  ;;  %v3691_v12 = vsel %vm3627_vm3, %v3595_v39, %v3659_v54  ;;  %vm3628_vm5 = vcmp.ge.f32.partialorder %v3596_v59, 0.0  ;;  %v3660_v6 = vmul.f32 0.1, %v3596_v59  ;;  %v4766_v51 = vpop.f32.mrb[16].mxu0  ;;  %v4631_v55 = vpop.f32.mrb[18].mxu1 }
 0x206   : > { %v4300_v49 = vpack.c.bf16 %v3691_v12, %v3691_v12  ;;  %v3694_v13 = vsel %vm3630_vm4, %v3598_v40, %v3662_v56  ;;  %v4798_v61 = vadd.f32 %v4766_v51, %v4630_v52  ;;  %v3481_v58 = vpop.f32.mrb[17].mxu0  ;;  %v1955_v14 = vpop.f32.mrb[19].mxu1 }
 0x207   : > { %3854 = vst.msk [vmem:[%s7123_s6 + $0x38] sm:$0xf] %vm3839_vm7, %v4302_v53  ;;  %v4303_v35 = vpack.c.bf16 %v3694_v13, %v3694_v13  ;;  %v3692_v42 = vsel %vm3628_vm5, %v3596_v59, %v3660_v6  ;;  %v4799_v1 = vadd.f32 %v3481_v58, %v1952_v36  ;;  %v4767_v4 = vpop.f32.mrb[18].mxu0 }
 0x208   : > { %3852 = vst.msk [vmem:[%s7123_s6 + $0x30] sm:$0xf] %vm3839_vm7, %v4300_v49  ;;  %v4301_v41 = vpack.c.bf16 %v3692_v42, %v3692_v42  ;;  %v3601_v28 = vadd.f32 %v4798_v61, %v7114_v43  ;;  %v4800_v24 = vadd.f32 %v4767_v4, %v4631_v55  ;;  %v3484_v15 = vpop.f32.mrb[19].mxu0 }
 0x209   : > { %3855 = vst.msk [vmem:[%s7123_s6 + $0x3c] sm:$0xf] %vm3839_vm7, %v4303_v35  ;;  %v3599_v30 = vadd.f32 %v4799_v1, %v7114_v43  ;;  %v4801_v7 = vadd.f32 %v3484_v15, %v1955_v14 }
 0x20a   : > { %3853 = vst.msk [vmem:[%s7123_s6 + $0x34] sm:$0xf] %vm3839_vm7, %v4301_v41  ;;  %vm3633_vm6 = vcmp.ge.f32.partialorder %v3601_v28, 0.0  ;;  %v3665_v21 = vmul.f32 0.1, %v3601_v28  ;;  %v3602_v60 = vadd.f32 %v4800_v24, %v7114_v43 }
 0x20b   : > { %vm3631_vm8 = vcmp.ge.f32.partialorder %v3599_v30, 0.0  ;;  %v3663_v34 = vmul.f32 0.1, %v3599_v30  ;;  %v3600_v26 = vadd.f32 %v4801_v7, %v7114_v43  ;;  %v4634_v3 = vpop.f32.mrb[20].mxu1 }
 0x20c   : > { %v3697_v19 = vsel %vm3633_vm6, %v3601_v28, %v3665_v21  ;;  %vm3634_vm9 = vcmp.ge.f32.partialorder %v3602_v60, 0.0  ;;  %v3666_v5 = vmul.f32 0.1, %v3602_v60  ;;  %v1968_v32 = vpop.f32.mrb[21].mxu1 }
 0x20d   : > { %v4306_v57 = vpack.c.bf16 %v3697_v19, %v3697_v19  ;;  %v3695_v23 = vsel %vm3631_vm8, %v3599_v30, %v3663_v34  ;;  %vm3632_vm10 = vcmp.ge.f32.partialorder %v3600_v26, 0.0  ;;  %v3664_v46 = vmul.f32 0.1, %v3600_v26  ;;  %v4770_v17 = vpop.f32.mrb[20].mxu0  ;;  %v4635_v18 = vpop.f32.mrb[22].mxu1 }
 0x20e   : > { %v4304_v50 = vpack.c.bf16 %v3695_v23, %v3695_v23  ;;  %v3698_v48 = vsel %vm3634_vm9, %v3602_v60, %v3666_v5  ;;  %v4802_v37 = vadd.f32 %v4770_v17, %v4634_v3  ;;  %v3497_v10 = vpop.f32.mrb[21].mxu0  ;;  %v1971_v44 = vpop.f32.mrb[23].mxu1 }
 0x20f   : > { %3858 = vst.msk [vmem:[%s7123_s6 + $0x48] sm:$0xf] %vm3839_vm7, %v4306_v57  ;;  %v4307_v16 = vpack.c.bf16 %v3698_v48, %v3698_v48  ;;  %v3696_v27 = vsel %vm3632_vm10, %v3600_v26, %v3664_v46  ;;  %v4803_v47 = vadd.f32 %v3497_v10, %v1968_v32  ;;  %v4771_v11 = vpop.f32.mrb[22].mxu0 }
 0x210   : > { %3856 = vst.msk [vmem:[%s7123_s6 + $0x40] sm:$0xf] %vm3839_vm7, %v4304_v50  ;;  %v4305_v22 = vpack.c.bf16 %v3696_v27, %v3696_v27  ;;  %v3605_v2 = vadd.f32 %v4802_v37, %v7114_v43  ;;  %v4804_v62 = vadd.f32 %v4771_v11, %v4635_v18  ;;  %v3500_v63 = vpop.f32.mrb[23].mxu0 }
 0x211   : > { %3859 = vst.msk [vmem:[%s7123_s6 + $0x4c] sm:$0xf] %vm3839_vm7, %v4307_v16  ;;  %v3603_v20 = vadd.f32 %v4803_v47, %v7114_v43  ;;  %v4805_v25 = vadd.f32 %v3500_v63, %v1971_v44 }
 0x212   : > { %3857 = vst.msk [vmem:[%s7123_s6 + $0x44] sm:$0xf] %vm3839_vm7, %v4305_v22  ;;  %vm3637_vm11 = vcmp.ge.f32.partialorder %v3605_v2, 0.0  ;;  %v3669_v45 = vmul.f32 0.1, %v3605_v2  ;;  %v3606_v0 = vadd.f32 %v4804_v62, %v7114_v43 }
 0x213   : > { %vm3635_vm12 = vcmp.ge.f32.partialorder %v3603_v20, 0.0  ;;  %v3667_v8 = vmul.f32 0.1, %v3603_v20  ;;  %v3604_v31 = vadd.f32 %v4805_v25, %v7114_v43  ;;  %v4638_v9 = vpop.f32.mrb[24].mxu1 }
 0x214   : > { %v3701_v39 = vsel %vm3637_vm11, %v3605_v2, %v3669_v45  ;;  %vm3638_vm13 = vcmp.ge.f32.partialorder %v3606_v0, 0.0  ;;  %v3670_v38 = vmul.f32 0.1, %v3606_v0  ;;  %v1984_v33 = vpop.f32.mrb[25].mxu1 }
 0x215   : > { %v4310_v40 = vpack.c.bf16 %v3701_v39, %v3701_v39  ;;  %v3699_v54 = vsel %vm3635_vm12, %v3603_v20, %v3667_v8  ;;  %vm3636_vm14 = vcmp.ge.f32.partialorder %v3604_v31, 0.0  ;;  %v3668_v59 = vmul.f32 0.1, %v3604_v31  ;;  %v4774_v52 = vpop.f32.mrb[24].mxu0  ;;  %v4639_v29 = vpop.f32.mrb[26].mxu1 }
 0x216   : > { %v4308_v56 = vpack.c.bf16 %v3699_v54, %v3699_v54  ;;  %v3702_v36 = vsel %vm3638_vm13, %v3606_v0, %v3670_v38  ;;  %v4806_v53 = vadd.f32 %v4774_v52, %v4638_v9  ;;  %v3513_v12 = vpop.f32.mrb[25].mxu0  ;;  %v1987_v6 = vpop.f32.mrb[27].mxu1 }
 0x217   : > { %3862 = vst.msk [vmem:[%s7123_s6 + $0x58] sm:$0xf] %vm3839_vm7, %v4310_v40  ;;  %v4311_v51 = vpack.c.bf16 %v3702_v36, %v3702_v36  ;;  %v3700_v55 = vsel %vm3636_vm14, %v3604_v31, %v3668_v59  ;;  %v4807_v49 = vadd.f32 %v3513_v12, %v1984_v33  ;;  %v4775_v13 = vpop.f32.mrb[26].mxu0 }
 0x218   : > { %3860 = vst.msk [vmem:[%s7123_s6 + $0x50] sm:$0xf] %vm3839_vm7, %v4308_v56  ;;  %v4309_v61 = vpack.c.bf16 %v3700_v55, %v3700_v55  ;;  %v3609_v58 = vadd.f32 %v4806_v53, %v7114_v43  ;;  %v4808_v14 = vadd.f32 %v4775_v13, %v4639_v29  ;;  %v3516_v35 = vpop.f32.mrb[27].mxu0 }
 0x219   : > { %3863 = vst.msk [vmem:[%s7123_s6 + $0x5c] sm:$0xf] %vm3839_vm7, %v4311_v51  ;;  %v3607_v42 = vadd.f32 %v4807_v49, %v7114_v43  ;;  %v4809_v1 = vadd.f32 %v3516_v35, %v1987_v6 }
 0x21a   : > { %3861 = vst.msk [vmem:[%s7123_s6 + $0x54] sm:$0xf] %vm3839_vm7, %v4309_v61  ;;  %vm3641_vm15 = vcmp.ge.f32.partialorder %v3609_v58, 0.0  ;;  %v3673_v4 = vmul.f32 0.1, %v3609_v58  ;;  %v3610_v41 = vadd.f32 %v4808_v14, %v7114_v43 }
 0x21b   : > { %vm3639_vm0 = vcmp.ge.f32.partialorder %v3607_v42, 0.0  ;;  %v3671_v28 = vmul.f32 0.1, %v3607_v42  ;;  %v3608_v24 = vadd.f32 %v4809_v1, %v7114_v43  ;;  %v4642_v15 = vpop.f32.mrb[28].mxu1 }
 0x21c   : > { %v3705_v30 = vsel %vm3641_vm15, %v3609_v58, %v3673_v4  ;;  %vm3642_vm1 = vcmp.ge.f32.partialorder %v3610_v41, 0.0  ;;  %v3674_v7 = vmul.f32 0.1, %v3610_v41  ;;  %v2000_v21 = vpop.f32.mrb[29].mxu1 }
 0x21d   : > { %v4314_v60 = vpack.c.bf16 %v3705_v30, %v3705_v30  ;;  %v3703_v34 = vsel %vm3639_vm0, %v3607_v42, %v3671_v28  ;;  %vm3640_vm2 = vcmp.ge.f32.partialorder %v3608_v24, 0.0  ;;  %v3672_v26 = vmul.f32 0.1, %v3608_v24  ;;  %v4778_v3 = vpop.f32.mrb[28].mxu0  ;;  %v4643_v19 = vpop.f32.mrb[30].mxu1 }
 0x21e   : > { %v4312_v5 = vpack.c.bf16 %v3703_v34, %v3703_v34  ;;  %v3706_v32 = vsel %vm3642_vm1, %v3610_v41, %v3674_v7  ;;  %v4810_v57 = vadd.f32 %v4778_v3, %v4642_v15  ;;  %v3529_v23 = vpop.f32.mrb[29].mxu0  ;;  %v2003_v46 = vpop.f32.mrb[31].mxu1 }
 0x21f   : > { %3866 = vst.msk [vmem:[%s7123_s6 + $0x68] sm:$0xf] %vm3839_vm7, %v4314_v60  ;;  %v4315_v17 = vpack.c.bf16 %v3706_v32, %v3706_v32  ;;  %v3704_v18 = vsel %vm3640_vm2, %v3608_v24, %v3672_v26  ;;  %v4811_v50 = vadd.f32 %v3529_v23, %v2000_v21  ;;  %v4779_v48 = vpop.f32.mrb[30].mxu0 }
 0x220   : > { %3864 = vst.msk [vmem:[%s7123_s6 + $0x60] sm:$0xf] %vm3839_vm7, %v4312_v5  ;;  %v4313_v37 = vpack.c.bf16 %v3704_v18, %v3704_v18  ;;  %v3613_v10 = vadd.f32 %v4810_v57, %v7114_v43  ;;  %v4812_v44 = vadd.f32 %v4779_v48, %v4643_v19  ;;  %v3532_v16 = vpop.f32.mrb[31].mxu0 }
 0x221   : > { %3867 = vst.msk [vmem:[%s7123_s6 + $0x6c] sm:$0xf] %vm3839_vm7, %v4315_v17  ;;  %v3611_v27 = vadd.f32 %v4811_v50, %v7114_v43  ;;  %v4813_v47 = vadd.f32 %v3532_v16, %v2003_v46 }
 0x222   : > { %3865 = vst.msk [vmem:[%s7123_s6 + $0x64] sm:$0xf] %vm3839_vm7, %v4313_v37  ;;  %vm3645_vm3 = vcmp.ge.f32.partialorder %v3613_v10, 0.0  ;;  %v3677_v11 = vmul.f32 0.1, %v3613_v10  ;;  %v3614_v22 = vadd.f32 %v4812_v44, %v7114_v43 }
 0x223   : > { %vm3643_vm4 = vcmp.ge.f32.partialorder %v3611_v27, 0.0  ;;  %v3675_v2 = vmul.f32 0.1, %v3611_v27  ;;  %v3612_v62 = vadd.f32 %v4813_v47, %v7114_v43 }
 0x224   : > { %v3709_v63 = vsel %vm3645_vm3, %v3613_v10, %v3677_v11  ;;  %vm3646_vm5 = vcmp.ge.f32.partialorder %v3614_v22, 0.0  ;;  %v3678_v20 = vmul.f32 0.1, %v3614_v22 }
 0x225   : > { %v4318_v25 = vpack.c.bf16 %v3709_v63, %v3709_v63  ;;  %v3707_v45 = vsel %vm3643_vm4, %v3611_v27, %v3675_v2  ;;  %vm3644_vm6 = vcmp.ge.f32.partialorder %v3612_v62, 0.0  ;;  %v3676_v0 = vmul.f32 0.1, %v3612_v62 }
 0x226   : > { %v4316_v8 = vpack.c.bf16 %v3707_v45, %v3707_v45  ;;  %v3710_v31 = vsel %vm3646_vm5, %v3614_v22, %v3678_v20 }
 0x227   : > { %3870 = vst.msk [vmem:[%s7123_s6 + $0x78] sm:$0xf] %vm3839_vm7, %v4318_v25  ;;  %v4319_v9 = vpack.c.bf16 %v3710_v31, %v3710_v31  ;;  %v3708_v43 = vsel %vm3644_vm6, %v3612_v62, %v3676_v0 }
 0x228   : > { %3868 = vst.msk [vmem:[%s7123_s6 + $0x70] sm:$0xf] %vm3839_vm7, %v4316_v8  ;;  %v4317_v39 = vpack.c.bf16 %v3708_v43, %v3708_v43 }
 0x229   : > { %3871 = vst.msk [vmem:[%s7123_s6 + $0x7c] sm:$0xf] %vm3839_vm7, %v4319_v9 }
 0x22a   : > { %3869 = vst.msk [vmem:[%s7123_s6 + $0x74] sm:$0xf] %vm3839_vm7, %v4317_v39 }
 0x22b   : > { %5206 = shalt.err (!%p5203_p3)
}
 0x22c   : > { %s5207_s25 = scalar_lea.hbm %s7224_s11, 2048  ;;  %s5211_s28 = scalar_lea.hbm %s7280_s3, 4096 }
 0x22d   : > { %p5208_p4 = scmp.ne.s32.totalorder %s7224_s11, %s5207_s25  ;;  %p5212_p9 = scmp.lt.u32.totalorder %s7224_s11, %s7280_s3 }
 0x22e   : > { %p5213_p10 = scmp.lt.u32.totalorder %s5211_s28, %s5207_s25  ;;  %p5215_p12 = scmp.lt.u32.totalorder %s5207_s25, %s7224_s11 }
 0x22f   : > { %p5209_p7 = pnand %p5208_p4, %p5319_p5 }
 0x230   : > { %p5214_p11 = por %p5213_p10, %p5212_p9 }
 0x231   : > { %p5210_p8 = pneg %p5209_p7 }
 0x232   : > { %p5216_p13 = por %p5215_p12, %p5214_p11 }
 0x234   : > { %p5217_p0 = pnand %p5216_p13, %p5210_p8 }
 0x236   : > { %5220 = shalt.err (!%p5217_p0)
}
 0x237   : > { %s5259_s4 = smov 64   ;;  %s5260_s5 = smov 4  }
 0x238   : > { %5039 = dma.vmem_to_hbm [thread:$0]  (%p5319_p5), %s7226_s8, 2048, %s7224_s11, %s7236_s16, %s5259_s4, %s5259_s4, %s5260_s5  }
 0x239 PF: > { %p5045_p1 = scmp.ge.s32.totalorder %s5255_s15, 2  ;;  %s3901_s6 = sand.u32 1, %s5243_s12  }
 0x23a   : > { %s3902_s7 = scalar_lea.sflag [#allocation3], %s3901_s6 }
 0x23b   : > { %p5042_p2 = pnand %p5045_p1, %p5323_p6 }
 0x23d   : > { %5238 = dma.done.wait (!%p5042_p2), %s3902_s7, 2048  }
 0x23e   : > { %5240 = vsyncadd (!%p5042_p2), %s3902_s7, 4294965248  ;;  %p13_p3 = scmp.ge.s32.totalorder %s5306_s18, 4   ;;  %s7701_s12 = smov %s5247_s13 }
 0x23f   : > { %s7702_s13 = smov %s5251_s14  ;;  %s7703_s14 = smov %s5317_s21 }
 0x240   : > { %s7704_s15 = smov %s5306_s18  ;;  %15 = sbr.rel (!%p13_p3) target bundleno = 3 (0x3), region = 77 }
 0x247   :  { %3907 = vsyncpa [#allocation3], 1 }
 0x248   :  { %3909 = vsyncpa [#allocation3 + $0x1], 1 }

</bundles_post_ra>
